<compile_context>
chip_gen: v7x
topology: tpu7x:2x2x1
jax: 0.10.0
libtpu: 0.0.40
codegen_flags: <defaults>
</compile_context>

<pallas_src>
import functools

import jax
import jax.numpy as jnp
from jax.experimental import pallas as pl
from jax.experimental.pallas import tpu as pltpu


# ----------------------------------------------------------------------------
# Pallas kernel 1: fused dual-modality LinearAutoEncoder chain.
#   amp: x -> relu(xW1+b1) -> ... ;  ph: same layer shapes, different weights.
# Every operand is tiny (< 200 KB), so the whole chain runs in a single launch
# with all intermediates resident in VMEM/vregs (no grid needed).
# ----------------------------------------------------------------------------
def _make_dual_mlp_kernel(num_layers):
    def kernel(*refs):
        # refs = (xa, xp, [wa, ba, wp, bp] * L, oa, op)
        xa_ref, xp_ref = refs[0], refs[1]
        oa_ref, op_ref = refs[-2], refs[-1]
        ha = xa_ref[...]
        hp = xp_ref[...]
        for l in range(num_layers):
            base = 2 + 4 * l
            wa = refs[base][...]
            ba = refs[base + 1][...]
            wp = refs[base + 2][...]
            bp = refs[base + 3][...]
            ha = jnp.maximum(
                jnp.dot(ha, wa, preferred_element_type=jnp.float32) + ba, 0.0)
            hp = jnp.maximum(
                jnp.dot(hp, wp, preferred_element_type=jnp.float32) + bp, 0.0)
        oa_ref[...] = ha.astype(oa_ref.dtype)
        op_ref[...] = hp.astype(op_ref.dtype)
    return kernel


def dual_mlp_chain_pallas(xa, xp, params_a, params_p):
    """Apply the amp + ph LinearAutoEncoder chains of one group in one launch."""
    M = xa.shape[0]
    out_f = params_a[-1][0].shape[1]
    args = [xa, xp]
    for (wa, ba), (wp_, bp) in zip(params_a, params_p):
        args += [wa, ba.reshape(1, -1), wp_, bp.reshape(1, -1)]
    vmem = pl.BlockSpec(memory_space=pltpu.MemorySpace.VMEM)
    oa, op_ = pl.pallas_call(
        _make_dual_mlp_kernel(len(params_a)),
        out_shape=(jax.ShapeDtypeStruct((M, out_f), xa.dtype),
                   jax.ShapeDtypeStruct((M, out_f), xp.dtype)),
        in_specs=[vmem] * len(args),
        out_specs=(vmem, vmem),
    )(*args)
    return oa, op_


# ----------------------------------------------------------------------------
# Pallas kernel 2: fused GCNConv for BOTH modalities.
#   per grid row-block i:
#     H   = X_cat @ blockdiag(W_amp, W_ph)   (a few MFLOP, recomputed per block
#                                              so the grid axis stays parallel)
#     out = relu(A_hat[i-block] @ H + b_cat)
# A_hat is bf16, H is cast to bf16, accumulation is f32.
# ----------------------------------------------------------------------------
def _gcn_fused_kernel(a_ref, x_ref, w_ref, b_ref, o_ref):
    h = jnp.dot(x_ref[...], w_ref[...], preferred_element_type=jnp.float32)
    agg = jnp.dot(a_ref[...], h.astype(jnp.bfloat16),
                  preferred_element_type=jnp.float32)
    o_ref[...] = jnp.maximum(agg + b_ref[...], 0.0)


def gcn_fused_pallas(a_hat_bf16, x_cat, w_bd, b_cat, *, tile_m=256):
    Np = a_hat_bf16.shape[0]
    F = x_cat.shape[1]
    Hc = w_bd.shape[1]
    assert Np % tile_m == 0, (Np, tile_m)
    grid = (Np // tile_m,)
    return pl.pallas_call(
        _gcn_fused_kernel,
        out_shape=jax.ShapeDtypeStruct((Np, Hc), jnp.float32),
        grid_spec=pltpu.PrefetchScalarGridSpec(
            num_scalar_prefetch=0,
            grid=grid,
            in_specs=[
                pl.BlockSpec((tile_m, Np), lambda i: (i, 0)),  # A_hat row strip (bf16)
                pl.BlockSpec((Np, F), lambda i: (0, 0)),       # all node features
                pl.BlockSpec((F, Hc), lambda i: (0, 0)),       # blockdiag(W_amp, W_ph)
                pl.BlockSpec((1, Hc), lambda i: (0, 0)),       # [b_amp | b_ph]
            ],
            out_specs=pl.BlockSpec((tile_m, Hc), lambda i: (i, 0)),
        ),
        compiler_params=pltpu.CompilerParams(
            dimension_semantics=("parallel",)),
    )(a_hat_bf16, x_cat, w_bd, b_cat)


# ----------------------------------------------------------------------------
# Parameter construction (deterministic, synthetic — mirrors the torch shapes)
# ----------------------------------------------------------------------------
def init_linear(key, in_f, out_f):
    k1, k2 = jax.random.split(key)
    bound = 1.0 / jnp.sqrt(float(in_f))
    w = jax.random.uniform(k1, (in_f, out_f), jnp.float32, -bound, bound)
    b = jax.random.uniform(k2, (out_f,), jnp.float32, -bound, bound)
    return w, b


def autoencoder_dims(features, hidden, out_features, div_val):
    # Exactly mirrors LinearAutoEncoder.__init__ layer-shape logic.
    dims = []
    inp = features
    while inp // div_val > hidden:
        dims.append((inp, inp // div_val))
        inp //= div_val
    dims.append((inp, hidden))
    while inp * div_val < out_features:   # never triggers for these params
        dims.append((inp, inp * div_val))
        inp *= div_val
    return dims


def init_params(key, *, hidden_encoder, hidden_GCN, num_classes, size,
                encoder_out, div_val, num_blocks, iso_amount, b_size):
    keys = list(jax.random.split(key, 64))
    kit = iter(keys)

    def enc_params(features):
        dims = autoencoder_dims(features, hidden_encoder, encoder_out, div_val)
        return [init_linear(next(kit), i, o) for (i, o) in dims]

    # create_layers with tp='linear': one LinearAutoEncoder per split coefficient.
    split_coefs = [2 ** i for i in range(num_blocks)]
    layers_amp = [enc_params(size ** 2 // (iso_amount * c ** 2)) for c in split_coefs]
    layers_ph = [enc_params(size ** 2 // (iso_amount * c ** 2)) for c in split_coefs]

    params = dict(
        layers_amp=layers_amp,
        layers_ph=layers_ph,
        # nn.Parameter(torch.zeros(...)) -> zeros, matching __init__
        pos_embed=jnp.zeros((b_size, 21 * iso_amount, hidden_encoder), jnp.float32),
        conv1_amp_w=init_linear(next(kit), hidden_GCN, hidden_GCN)[0],
        conv1_amp_b=jnp.zeros((hidden_GCN,), jnp.float32),
        conv1_ph_w=init_linear(next(kit), hidden_GCN, hidden_GCN)[0],
        conv1_ph_b=jnp.zeros((hidden_GCN,), jnp.float32),
        conv1d_w=jax.random.uniform(next(kit), (1, 2, 1), jnp.float32, -0.7, 0.7),
        conv1d_b=jax.random.uniform(next(kit), (1,), jnp.float32, -0.7, 0.7),
        lin_w=init_linear(next(kit), hidden_GCN, num_classes)[0],
        lin_b=init_linear(next(kit), hidden_GCN, num_classes)[1],
    )
    return params


# ----------------------------------------------------------------------------
# Forward-pass pieces
# ----------------------------------------------------------------------------
def get_embeddings_dual(amp_list, ph_list, layers_amp, layers_ph,
                        iso_amount, batch_size):
    # it_val 0 -> layer 0, 1..4 -> layer 1, 5..20 -> layer 2 (same ordering as torch).
    groups = [(0, 1, 0), (1, 5, 1), (5, 21, 2)]
    amp_parts, ph_parts = [], []
    for start, end, lid in groups:
        xa = jnp.concatenate(
            [amp_list[t].reshape(batch_size, iso_amount, -1)
             for t in range(start, end)], axis=1)            # (B, (end-start)*iso, f)
        xp = jnp.concatenate(
            [ph_list[t].reshape(batch_size, iso_amount, -1)
             for t in range(start, end)], axis=1)
        B, n, f = xa.shape
        ea, ep = dual_mlp_chain_pallas(xa.reshape(B * n, f), xp.reshape(B * n, f),
                                       layers_amp[lid], layers_ph[lid])
        amp_parts.append(ea.reshape(B, n, -1))
        ph_parts.append(ep.reshape(B, n, -1))
    return (jnp.concatenate(amp_parts, axis=1),
            jnp.concatenate(ph_parts, axis=1))                # (B, 21*iso, hidden)


def get_position_encoding(seq_len, d, n=10000):
    k = jnp.arange(seq_len, dtype=jnp.float32)[:, None]
    i = jnp.arange(d // 2, dtype=jnp.float32)[None, :]
    denom = jnp.power(float(n), 2.0 * i / float(d))
    ang = k / denom
    P = jnp.zeros((seq_len, d), jnp.float32)
    P = P.at[:, 0::2].set(jnp.sin(ang))
    P = P.at[:, 1::2].set(jnp.cos(ang))
    return P


def add_positional_encoding(embedding, iso_amount=16):
    b, h, c = embedding.shape
    big = jnp.zeros((b, iso_amount, c), jnp.float32)
    four = get_position_encoding(4, c)
    medium = jnp.broadcast_to(jnp.repeat(four, iso_amount, axis=0)[None],
                              (b, 4 * iso_amount, c))
    sixt = get_position_encoding(16, c)
    small = jnp.broadcast_to(jnp.repeat(sixt, iso_amount, axis=0)[None],
                             (b, 16 * iso_amount, c))
    pos = jnp.concatenate([big, medium, small], axis=1)  # (b, 21*iso, c)
    return embedding + pos


def gcn_norm_dense_padded(edge_index, num_nodes, pad_to):
    """PyG GCNConv default normalization (self loops + D^-1/2 A D^-1/2),
    zero-padded to `pad_to` and cast to bf16.  Static graph -> computed once."""
    src, dst = edge_index[0], edge_index[1]
    A = jnp.zeros((num_nodes, num_nodes), jnp.float32).at[dst, src].add(1.0)
    A = A + jnp.eye(num_nodes, dtype=jnp.float32)
    deg = A.sum(axis=1)
    dinv = jnp.where(deg > 0, 1.0 / jnp.sqrt(deg), 0.0)
    A = A * dinv[:, None] * dinv[None, :]
    Ap = jnp.zeros((pad_to, pad_to), jnp.float32).at[:num_nodes, :num_nodes].set(A)
    return Ap.astype(jnp.bfloat16)


def global_mean_pool(x, batch, num_graphs):
    # Tiny (G,N)@(N,H): plain JAX — as a Pallas launch it is >99% padding.
    onehot = (batch[None, :] == jnp.arange(num_graphs)[:, None]).astype(x.dtype)
    counts = onehot.sum(axis=1, keepdims=True)
    return (onehot @ x) / jnp.maximum(counts, 1.0)


@functools.partial(jax.jit,
                   static_argnames=("batch_size", "iso_amount", "is_pos_embed"))
def gnn_forward(params, amp_list, ph_list, a_hat_bf16, batch, *,
                batch_size, iso_amount=16, is_pos_embed="full"):
    amp, ph = get_embeddings_dual(amp_list, ph_list,
                                  params["layers_amp"], params["layers_ph"],
                                  iso_amount, batch_size)

    if is_pos_embed == "only_train":
        amp = add_positional_encoding(amp, iso_amount)
        ph = add_positional_encoding(ph, iso_amount)
    elif is_pos_embed == "only_param":
        amp = amp + params["pos_embed"]
        ph = ph + params["pos_embed"]
    elif is_pos_embed == "full":
        amp = add_positional_encoding(amp, iso_amount) + params["pos_embed"]
        ph = add_positional_encoding(ph, iso_amount) + params["pos_embed"]

    H = amp.shape[-1]
    N = batch_size * 21 * iso_amount
    amp = amp.reshape(N, H)
    ph = ph.reshape(N, H)

    # NOTE: edge_weight_amp/ph .repeat().sigmoid() is computed but never used by
    # the reference forward (GCNConv is called without edge weights) -> skipped.

    # Fused GCNConv for both modalities, sharing the single A_hat read.
    Np = a_hat_bf16.shape[0]
    x_cat = jnp.concatenate([amp, ph], axis=1)               # (N, 2H)
    x_cat = jnp.pad(x_cat, ((0, Np - N), (0, 0)))            # zero rows -> H rows = 0
    w_bd = jnp.zeros((2 * H, 2 * H), jnp.float32)
    w_bd = w_bd.at[:H, :H].set(params["conv1_amp_w"])
    w_bd = w_bd.at[H:, H:].set(params["conv1_ph_w"])
    b_cat = jnp.concatenate(
        [params["conv1_amp_b"], params["conv1_ph_b"]]).reshape(1, 2 * H)

    agg = gcn_fused_pallas(a_hat_bf16, x_cat, w_bd, b_cat)   # (Np, 2H)
    amp = agg[:N, :H]     # padded rows (relu(bias)) discarded here
    ph = agg[:N, H:]
    # depth == 1 in this configuration (depth==2 would repeat with conv2_*).

    amp_p = global_mean_pool(amp, batch, batch_size)         # (B, H)
    ph_p = global_mean_pool(ph, batch, batch_size)           # (B, H)

    # Conv1d(in=2, out=1, kernel=1) over channels {amp, ph}, then squeeze.
    w1d, b1d = params["conv1d_w"], params["conv1d_b"]
    x = w1d[0, 0, 0] * amp_p + w1d[0, 1, 0] * ph_p + b1d[0]  # (B, H)

    # TODO(synk): F.dropout(p=0.1, training=self.training) — inference identity here.
    logits = x @ params["lin_w"] + params["lin_b"]           # (B, num_classes)
    return jax.nn.softmax(logits, axis=1)


# ----------------------------------------------------------------------------
# Main
# ----------------------------------------------------------------------------
if __name__ == "__main__":
    B = 2                 # batch_size == b_size (required for pos_embed broadcast)
    size = 64             # image side -> per-isocline feature dims 256 / 64 / 16
    iso = 16
    hidden_enc = 32
    hidden_gcn = 32       # must equal hidden_enc for GCNConv input
    num_classes = 4
    encoder_out = 10
    div_val = 2
    num_blocks = 3

    root = jax.random.PRNGKey(0)
    k_params, k_data = jax.random.split(root)

    params = init_params(
        k_params, hidden_encoder=hidden_enc, hidden_GCN=hidden_gcn,
        num_classes=num_classes, size=size, encoder_out=encoder_out,
        div_val=div_val, num_blocks=num_blocks, iso_amount=iso, b_size=B)

    # 21 input tensors per modality: it_val 0 -> 256 feats, 1..4 -> 64, 5..20 -> 16
    feats = ([size ** 2 // (iso * 1)] +
             [size ** 2 // (iso * 4)] * 4 +
             [size ** 2 // (iso * 16)] * 16)
    dkeys = jax.random.split(k_data, 42)
    amp_list = tuple(jax.random.normal(dkeys[i], (B, iso, feats[i]), jnp.float32)
                     for i in range(21))
    ph_list = tuple(jax.random.normal(dkeys[21 + i], (B, iso, feats[i]), jnp.float32)
                    for i in range(21))

    # Deterministic graph: symmetric chain within each of the B graphs.
    per = 21 * iso
    N = B * per
    src_parts, dst_parts = [], []
    for g in range(B):
        base = g * per
        s = jnp.arange(per - 1, dtype=jnp.int32) + base
        d = s + 1
        src_parts += [s, d]
        dst_parts += [d, s]
    edge_index = jnp.stack([jnp.concatenate(src_parts), jnp.concatenate(dst_parts)])
    batch = jnp.repeat(jnp.arange(B, dtype=jnp.int32), per)

    # A_hat is static for a fixed edge_index: build it once, padded to a multiple
    # of the 256-row aggregation tile, in bf16 (f32 accumulation in-kernel).
    N_pad = ((N + 255) // 256) * 256
    a_hat_bf16 = gcn_norm_dense_padded(edge_index, N, N_pad)

    out = gnn_forward(params, amp_list, ph_list, a_hat_bf16, batch,
                      batch_size=B, iso_amount=iso, is_pos_embed="full")
    out = jax.block_until_ready(out)
    assert out.shape == (B, num_classes), out.shape
    assert jnp.allclose(out.sum(axis=1), 1.0, atol=1e-5)
    print("KERNEL_OK")
</pallas_src>

<mosaic_0001>
module attributes {stable_mosaic.version = 11 : i64} {
  func.func @kernel(%arg0: memref<512x16xf32, #tpu.memory_space<vmem>>, %arg1: memref<512x16xf32, #tpu.memory_space<vmem>>, %arg2: memref<16x32xf32, #tpu.memory_space<vmem>>, %arg3: memref<1x32xf32, #tpu.memory_space<vmem>>, %arg4: memref<16x32xf32, #tpu.memory_space<vmem>>, %arg5: memref<1x32xf32, #tpu.memory_space<vmem>>, %arg6: memref<512x32xf32, #tpu.memory_space<vmem>>, %arg7: memref<512x32xf32, #tpu.memory_space<vmem>>) attributes {dimension_semantics = [], scalar_prefetch = 0 : i64, scratch_operands = 0 : i64, tpu.core_type = #tpu.core_type<tc>} {
    %c0 = arith.constant 0 : index
    %c0_0 = arith.constant 0 : index
    %0 = vector.load %arg0[%c0, %c0_0] : memref<512x16xf32, #tpu.memory_space<vmem>>, vector<512x16xf32>
    %c0_1 = arith.constant 0 : index
    %c0_2 = arith.constant 0 : index
    %1 = vector.load %arg1[%c0_1, %c0_2] : memref<512x16xf32, #tpu.memory_space<vmem>>, vector<512x16xf32>
    %c0_3 = arith.constant 0 : index
    %c0_4 = arith.constant 0 : index
    %2 = vector.load %arg2[%c0_3, %c0_4] : memref<16x32xf32, #tpu.memory_space<vmem>>, vector<16x32xf32>
    %c0_5 = arith.constant 0 : index
    %c0_6 = arith.constant 0 : index
    %3 = vector.load %arg3[%c0_5, %c0_6] : memref<1x32xf32, #tpu.memory_space<vmem>>, vector<1x32xf32>
    %c0_7 = arith.constant 0 : index
    %c0_8 = arith.constant 0 : index
    %4 = vector.load %arg4[%c0_7, %c0_8] : memref<16x32xf32, #tpu.memory_space<vmem>>, vector<16x32xf32>
    %c0_9 = arith.constant 0 : index
    %c0_10 = arith.constant 0 : index
    %5 = vector.load %arg5[%c0_9, %c0_10] : memref<1x32xf32, #tpu.memory_space<vmem>>, vector<1x32xf32>
    %cst = arith.constant dense<0.000000e+00> : vector<512x32xf32>
    %6 = tpu.matmul %0, %2, %cst {dimension_numbers = #tpu.dot_dimension_numbers<[1], [0], [0], [1], [0, 0, 1, 1], [], []>} : vector<512x16xf32>, vector<16x32xf32>, vector<512x32xf32> -> vector<512x32xf32>
    %7 = vector.broadcast %3 : vector<1x32xf32> to vector<512x32xf32>
    %8 = arith.addf %6, %7 : vector<512x32xf32>
    %cst_11 = arith.constant 0.000000e+00 : f32
    %9 = vector.broadcast %cst_11 : f32 to vector<512x32xf32>
    %10 = arith.maximumf %8, %9 : vector<512x32xf32>
    %cst_12 = arith.constant dense<0.000000e+00> : vector<512x32xf32>
    %11 = tpu.matmul %1, %4, %cst_12 {dimension_numbers = #tpu.dot_dimension_numbers<[1], [0], [0], [1], [0, 0, 1, 1], [], []>} : vector<512x16xf32>, vector<16x32xf32>, vector<512x32xf32> -> vector<512x32xf32>
    %12 = vector.broadcast %5 : vector<1x32xf32> to vector<512x32xf32>
    %13 = arith.addf %11, %12 : vector<512x32xf32>
    %cst_13 = arith.constant 0.000000e+00 : f32
    %14 = vector.broadcast %cst_13 : f32 to vector<512x32xf32>
    %15 = arith.maximumf %13, %14 : vector<512x32xf32>
    %c0_14 = arith.constant 0 : index
    %c0_15 = arith.constant 0 : index
    %16 = vector.load %arg6[%c0_14, %c0_15] : memref<512x32xf32, #tpu.memory_space<vmem>>, vector<512x32xf32>
    tpu.vector_store %arg6[%c0_14, %c0_15], %10 {strides = array<i32>} : memref<512x32xf32, #tpu.memory_space<vmem>>, vector<512x32xf32>,
    %c0_16 = arith.constant 0 : index
    %c0_17 = arith.constant 0 : index
    %17 = vector.load %arg7[%c0_16, %c0_17] : memref<512x32xf32, #tpu.memory_space<vmem>>, vector<512x32xf32>
    tpu.vector_store %arg7[%c0_16, %c0_17], %15 {strides = array<i32>} : memref<512x32xf32, #tpu.memory_space<vmem>>, vector<512x32xf32>,
    return
  }
}

module attributes {stable_mosaic.version = 11 : i64} {
  func.func @kernel(%arg0: memref<128x64xf32, #tpu.memory_space<vmem>>, %arg1: memref<128x64xf32, #tpu.memory_space<vmem>>, %arg2: memref<64x32xf32, #tpu.memory_space<vmem>>, %arg3: memref<1x32xf32, #tpu.memory_space<vmem>>, %arg4: memref<64x32xf32, #tpu.memory_space<vmem>>, %arg5: memref<1x32xf32, #tpu.memory_space<vmem>>, %arg6: memref<128x32xf32, #tpu.memory_space<vmem>>, %arg7: memref<128x32xf32, #tpu.memory_space<vmem>>) attributes {dimension_semantics = [], scalar_prefetch = 0 : i64, scratch_operands = 0 : i64, tpu.core_type = #tpu.core_type<tc>} {
    %c0 = arith.constant 0 : index
    %c0_0 = arith.constant 0 : index
    %0 = vector.load %arg0[%c0, %c0_0] : memref<128x64xf32, #tpu.memory_space<vmem>>, vector<128x64xf32>
    %c0_1 = arith.constant 0 : index
    %c0_2 = arith.constant 0 : index
    %1 = vector.load %arg1[%c0_1, %c0_2] : memref<128x64xf32, #tpu.memory_space<vmem>>, vector<128x64xf32>
    %c0_3 = arith.constant 0 : index
    %c0_4 = arith.constant 0 : index
    %2 = vector.load %arg2[%c0_3, %c0_4] : memref<64x32xf32, #tpu.memory_space<vmem>>, vector<64x32xf32>
    %c0_5 = arith.constant 0 : index
    %c0_6 = arith.constant 0 : index
    %3 = vector.load %arg3[%c0_5, %c0_6] : memref<1x32xf32, #tpu.memory_space<vmem>>, vector<1x32xf32>
    %c0_7 = arith.constant 0 : index
    %c0_8 = arith.constant 0 : index
    %4 = vector.load %arg4[%c0_7, %c0_8] : memref<64x32xf32, #tpu.memory_space<vmem>>, vector<64x32xf32>
    %c0_9 = arith.constant 0 : index
    %c0_10 = arith.constant 0 : index
    %5 = vector.load %arg5[%c0_9, %c0_10] : memref<1x32xf32, #tpu.memory_space<vmem>>, vector<1x32xf32>
    %cst = arith.constant dense<0.000000e+00> : vector<128x32xf32>
    %6 = tpu.matmul %0, %2, %cst {dimension_numbers = #tpu.dot_dimension_numbers<[1], [0], [0], [1], [0, 0, 1, 1], [], []>} : vector<128x64xf32>, vector<64x32xf32>, vector<128x32xf32> -> vector<128x32xf32>
    %7 = vector.broadcast %3 : vector<1x32xf32> to vector<128x32xf32>
    %8 = arith.addf %6, %7 : vector<128x32xf32>
    %cst_11 = arith.constant 0.000000e+00 : f32
    %9 = vector.broadcast %cst_11 : f32 to vector<128x32xf32>
    %10 = arith.maximumf %8, %9 : vector<128x32xf32>
    %cst_12 = arith.constant dense<0.000000e+00> : vector<128x32xf32>
    %11 = tpu.matmul %1, %4, %cst_12 {dimension_numbers = #tpu.dot_dimension_numbers<[1], [0], [0], [1], [0, 0, 1, 1], [], []>} : vector<128x64xf32>, vector<64x32xf32>, vector<128x32xf32> -> vector<128x32xf32>
    %12 = vector.broadcast %5 : vector<1x32xf32> to vector<128x32xf32>
    %13 = arith.addf %11, %12 : vector<128x32xf32>
    %cst_13 = arith.constant 0.000000e+00 : f32
    %14 = vector.broadcast %cst_13 : f32 to vector<128x32xf32>
    %15 = arith.maximumf %13, %14 : vector<128x32xf32>
    %c0_14 = arith.constant 0 : index
    %c0_15 = arith.constant 0 : index
    %16 = vector.load %arg6[%c0_14, %c0_15] : memref<128x32xf32, #tpu.memory_space<vmem>>, vector<128x32xf32>
    tpu.vector_store %arg6[%c0_14, %c0_15], %10 {strides = array<i32>} : memref<128x32xf32, #tpu.memory_space<vmem>>, vector<128x32xf32>,
    %c0_16 = arith.constant 0 : index
    %c0_17 = arith.constant 0 : index
    %17 = vector.load %arg7[%c0_16, %c0_17] : memref<128x32xf32, #tpu.memory_space<vmem>>, vector<128x32xf32>
    tpu.vector_store %arg7[%c0_16, %c0_17], %15 {strides = array<i32>} : memref<128x32xf32, #tpu.memory_space<vmem>>, vector<128x32xf32>,
    return
  }
}

module attributes {stable_mosaic.version = 11 : i64} {
  func.func @kernel(%arg0: memref<32x256xf32, #tpu.memory_space<vmem>>, %arg1: memref<32x256xf32, #tpu.memory_space<vmem>>, %arg2: memref<256x128xf32, #tpu.memory_space<vmem>>, %arg3: memref<1x128xf32, #tpu.memory_space<vmem>>, %arg4: memref<256x128xf32, #tpu.memory_space<vmem>>, %arg5: memref<1x128xf32, #tpu.memory_space<vmem>>, %arg6: memref<128x64xf32, #tpu.memory_space<vmem>>, %arg7: memref<1x64xf32, #tpu.memory_space<vmem>>, %arg8: memref<128x64xf32, #tpu.memory_space<vmem>>, %arg9: memref<1x64xf32, #tpu.memory_space<vmem>>, %arg10: memref<64x32xf32, #tpu.memory_space<vmem>>, %arg11: memref<1x32xf32, #tpu.memory_space<vmem>>, %arg12: memref<64x32xf32, #tpu.memory_space<vmem>>, %arg13: memref<1x32xf32, #tpu.memory_space<vmem>>, %arg14: memref<32x32xf32, #tpu.memory_space<vmem>>, %arg15: memref<32x32xf32, #tpu.memory_space<vmem>>) attributes {dimension_semantics = [], scalar_prefetch = 0 : i64, scratch_operands = 0 : i64, tpu.core_type = #tpu.core_type<tc>} {
    %c0 = arith.constant 0 : index
    %c0_0 = arith.constant 0 : index
    %0 = vector.load %arg0[%c0, %c0_0] : memref<32x256xf32, #tpu.memory_space<vmem>>, vector<32x256xf32>
    %c0_1 = arith.constant 0 : index
    %c0_2 = arith.constant 0 : index
    %1 = vector.load %arg1[%c0_1, %c0_2] : memref<32x256xf32, #tpu.memory_space<vmem>>, vector<32x256xf32>
    %c0_3 = arith.constant 0 : index
    %c0_4 = arith.constant 0 : index
    %2 = vector.load %arg2[%c0_3, %c0_4] : memref<256x128xf32, #tpu.memory_space<vmem>>, vector<256x128xf32>
    %c0_5 = arith.constant 0 : index
    %c0_6 = arith.constant 0 : index
    %3 = vector.load %arg3[%c0_5, %c0_6] : memref<1x128xf32, #tpu.memory_space<vmem>>, vector<1x128xf32>
    %c0_7 = arith.constant 0 : index
    %c0_8 = arith.constant 0 : index
    %4 = vector.load %arg4[%c0_7, %c0_8] : memref<256x128xf32, #tpu.memory_space<vmem>>, vector<256x128xf32>
    %c0_9 = arith.constant 0 : index
    %c0_10 = arith.constant 0 : index
    %5 = vector.load %arg5[%c0_9, %c0_10] : memref<1x128xf32, #tpu.memory_space<vmem>>, vector<1x128xf32>
    %cst = arith.constant dense<0.000000e+00> : vector<32x128xf32>
    %6 = tpu.matmul %0, %2, %cst {dimension_numbers = #tpu.dot_dimension_numbers<[1], [0], [0], [1], [0, 0, 1, 1], [], []>} : vector<32x256xf32>, vector<256x128xf32>, vector<32x128xf32> -> vector<32x128xf32>
    %7 = vector.broadcast %3 : vector<1x128xf32> to vector<32x128xf32>
    %8 = arith.addf %6, %7 : vector<32x128xf32>
    %cst_11 = arith.constant 0.000000e+00 : f32
    %9 = vector.broadcast %cst_11 : f32 to vector<32x128xf32>
    %10 = arith.maximumf %8, %9 : vector<32x128xf32>
    %cst_12 = arith.constant dense<0.000000e+00> : vector<32x128xf32>
    %11 = tpu.matmul %1, %4, %cst_12 {dimension_numbers = #tpu.dot_dimension_numbers<[1], [0], [0], [1], [0, 0, 1, 1], [], []>} : vector<32x256xf32>, vector<256x128xf32>, vector<32x128xf32> -> vector<32x128xf32>
    %12 = vector.broadcast %5 : vector<1x128xf32> to vector<32x128xf32>
    %13 = arith.addf %11, %12 : vector<32x128xf32>
    %cst_13 = arith.constant 0.000000e+00 : f32
    %14 = vector.broadcast %cst_13 : f32 to vector<32x128xf32>
    %15 = arith.maximumf %13, %14 : vector<32x128xf32>
    %c0_14 = arith.constant 0 : index
    %c0_15 = arith.constant 0 : index
    %16 = vector.load %arg6[%c0_14, %c0_15] : memref<128x64xf32, #tpu.memory_space<vmem>>, vector<128x64xf32>
    %c0_16 = arith.constant 0 : index
    %c0_17 = arith.constant 0 : index
    %17 = vector.load %arg7[%c0_16, %c0_17] : memref<1x64xf32, #tpu.memory_space<vmem>>, vector<1x64xf32>
    %c0_18 = arith.constant 0 : index
    %c0_19 = arith.constant 0 : index
    %18 = vector.load %arg8[%c0_18, %c0_19] : memref<128x64xf32, #tpu.memory_space<vmem>>, vector<128x64xf32>
    %c0_20 = arith.constant 0 : index
    %c0_21 = arith.constant 0 : index
    %19 = vector.load %arg9[%c0_20, %c0_21] : memref<1x64xf32, #tpu.memory_space<vmem>>, vector<1x64xf32>
    %cst_22 = arith.constant dense<0.000000e+00> : vector<32x64xf32>
    %20 = tpu.matmul %10, %16, %cst_22 {dimension_numbers = #tpu.dot_dimension_numbers<[1], [0], [0], [1], [0, 0, 1, 1], [], []>} : vector<32x128xf32>, vector<128x64xf32>, vector<32x64xf32> -> vector<32x64xf32>
    %21 = vector.broadcast %17 : vector<1x64xf32> to vector<32x64xf32>
    %22 = arith.addf %20, %21 : vector<32x64xf32>
    %cst_23 = arith.constant 0.000000e+00 : f32
    %23 = vector.broadcast %cst_23 : f32 to vector<32x64xf32>
    %24 = arith.maximumf %22, %23 : vector<32x64xf32>
    %cst_24 = arith.constant dense<0.000000e+00> : vector<32x64xf32>
    %25 = tpu.matmul %15, %18, %cst_24 {dimension_numbers = #tpu.dot_dimension_numbers<[1], [0], [0], [1], [0, 0, 1, 1], [], []>} : vector<32x128xf32>, vector<128x64xf32>, vector<32x64xf32> -> vector<32x64xf32>
    %26 = vector.broadcast %19 : vector<1x64xf32> to vector<32x64xf32>
    %27 = arith.addf %25, %26 : vector<32x64xf32>
    %cst_25 = arith.constant 0.000000e+00 : f32
    %28 = vector.broadcast %cst_25 : f32 to vector<32x64xf32>
    %29 = arith.maximumf %27, %28 : vector<32x64xf32>
    %c0_26 = arith.constant 0 : index
    %c0_27 = arith.constant 0 : index
    %30 = vector.load %arg10[%c0_26, %c0_27] : memref<64x32xf32, #tpu.memory_space<vmem>>, vector<64x32xf32>
    %c0_28 = arith.constant 0 : index
    %c0_29 = arith.constant 0 : index
    %31 = vector.load %arg11[%c0_28, %c0_29] : memref<1x32xf32, #tpu.memory_space<vmem>>, vector<1x32xf32>
    %c0_30 = arith.constant 0 : index
    %c0_31 = arith.constant 0 : index
    %32 = vector.load %arg12[%c0_30, %c0_31] : memref<64x32xf32, #tpu.memory_space<vmem>>, vector<64x32xf32>
    %c0_32 = arith.constant 0 : index
    %c0_33 = arith.constant 0 : index
    %33 = vector.load %arg13[%c0_32, %c0_33] : memref<1x32xf32, #tpu.memory_space<vmem>>, vector<1x32xf32>
    %cst_34 = arith.constant dense<0.000000e+00> : vector<32x32xf32>
    %34 = tpu.matmul %24, %30, %cst_34 {dimension_numbers = #tpu.dot_dimension_numbers<[1], [0], [0], [1], [0, 0, 1, 1], [], []>} : vector<32x64xf32>, vector<64x32xf32>, vector<32x32xf32> -> vector<32x32xf32>
    %35 = vector.broadcast %31 : vector<1x32xf32> to vector<32x32xf32>
    %36 = arith.addf %34, %35 : vector<32x32xf32>
    %cst_35 = arith.constant 0.000000e+00 : f32
    %37 = vector.broadcast %cst_35 : f32 to vector<32x32xf32>
    %38 = arith.maximumf %36, %37 : vector<32x32xf32>
    %cst_36 = arith.constant dense<0.000000e+00> : vector<32x32xf32>
    %39 = tpu.matmul %29, %32, %cst_36 {dimension_numbers = #tpu.dot_dimension_numbers<[1], [0], [0], [1], [0, 0, 1, 1], [], []>} : vector<32x64xf32>, vector<64x32xf32>, vector<32x32xf32> -> vector<32x32xf32>
    %40 = vector.broadcast %33 : vector<1x32xf32> to vector<32x32xf32>
    %41 = arith.addf %39, %40 : vector<32x32xf32>
    %cst_37 = arith.constant 0.000000e+00 : f32
    %42 = vector.broadcast %cst_37 : f32 to vector<32x32xf32>
    %43 = arith.maximumf %41, %42 : vector<32x32xf32>
    %c0_38 = arith.constant 0 : index
    %c0_39 = arith.constant 0 : index
    %44 = vector.load %arg14[%c0_38, %c0_39] : memref<32x32xf32, #tpu.memory_space<vmem>>, vector<32x32xf32>
    tpu.vector_store %arg14[%c0_38, %c0_39], %38 {strides = array<i32>} : memref<32x32xf32, #tpu.memory_space<vmem>>, vector<32x32xf32>,
    %c0_40 = arith.constant 0 : index
    %c0_41 = arith.constant 0 : index
    %45 = vector.load %arg15[%c0_40, %c0_41] : memref<32x32xf32, #tpu.memory_space<vmem>>, vector<32x32xf32>
    tpu.vector_store %arg15[%c0_40, %c0_41], %43 {strides = array<i32>} : memref<32x32xf32, #tpu.memory_space<vmem>>, vector<32x32xf32>,
    return
  }
}

module attributes {stable_mosaic.version = 11 : i64} {
  func.func @_gcn_fused_kernel(%arg0: i32, %arg1: memref<256x768xbf16, #tpu.memory_space<vmem>>, %arg2: memref<768x64xf32, #tpu.memory_space<vmem>>, %arg3: memref<64x64xf32, #tpu.memory_space<vmem>>, %arg4: memref<1x64xf32, #tpu.memory_space<vmem>>, %arg5: memref<256x64xf32, #tpu.memory_space<vmem>>) attributes {dimension_semantics = [#tpu.dimension_semantics<parallel>], iteration_bounds = array<i64: 3>, scalar_prefetch = 0 : i64, scratch_operands = 0 : i64, tpu.core_type = #tpu.core_type<tc>, window_params = [{transform_indices = @transform_0, window_bounds = array<i64: 256, 768>}, {pipeline_mode = #tpu.pipeline_mode<synchronous>, transform_indices = @transform_1, window_bounds = array<i64: 768, 64>}, {pipeline_mode = #tpu.pipeline_mode<synchronous>, transform_indices = @transform_2, window_bounds = array<i64: 64, 64>}, {pipeline_mode = #tpu.pipeline_mode<synchronous>, transform_indices = @transform_3, window_bounds = array<i64: 1, 64>}, {transform_indices = @transform_4, window_bounds = array<i64: 256, 64>}]} {
    %c0 = arith.constant 0 : index
    %c0_0 = arith.constant 0 : index
    %0 = vector.load %arg2[%c0, %c0_0] : memref<768x64xf32, #tpu.memory_space<vmem>>, vector<768x64xf32>
    %c0_1 = arith.constant 0 : index
    %c0_2 = arith.constant 0 : index
    %1 = vector.load %arg3[%c0_1, %c0_2] : memref<64x64xf32, #tpu.memory_space<vmem>>, vector<64x64xf32>
    %cst = arith.constant dense<0.000000e+00> : vector<768x64xf32>
    %2 = tpu.matmul %0, %1, %cst {dimension_numbers = #tpu.dot_dimension_numbers<[1], [0], [0], [1], [0, 0, 1, 1], [], []>} : vector<768x64xf32>, vector<64x64xf32>, vector<768x64xf32> -> vector<768x64xf32>
    %c0_3 = arith.constant 0 : index
    %c0_4 = arith.constant 0 : index
    %3 = vector.load %arg1[%c0_3, %c0_4] : memref<256x768xbf16, #tpu.memory_space<vmem>>, vector<256x768xbf16>
    %4 = arith.truncf %2 : vector<768x64xf32> to vector<768x64xbf16>
    %cst_5 = arith.constant dense<0.000000e+00> : vector<256x64xf32>
    %5 = tpu.matmul %3, %4, %cst_5 {dimension_numbers = #tpu.dot_dimension_numbers<[1], [0], [0], [1], [0, 0, 1, 1], [], []>} : vector<256x768xbf16>, vector<768x64xbf16>, vector<256x64xf32> -> vector<256x64xf32>
    %c0_6 = arith.constant 0 : index
    %c0_7 = arith.constant 0 : index
    %6 = vector.load %arg4[%c0_6, %c0_7] : memref<1x64xf32, #tpu.memory_space<vmem>>, vector<1x64xf32>
    %7 = vector.broadcast %6 : vector<1x64xf32> to vector<256x64xf32>
    %8 = arith.addf %5, %7 : vector<256x64xf32>
    %cst_8 = arith.constant 0.000000e+00 : f32
    %9 = vector.broadcast %cst_8 : f32 to vector<256x64xf32>
    %10 = arith.maximumf %8, %9 : vector<256x64xf32>
    %c0_9 = arith.constant 0 : index
    %c0_10 = arith.constant 0 : index
    %11 = vector.load %arg5[%c0_9, %c0_10] : memref<256x64xf32, #tpu.memory_space<vmem>>, vector<256x64xf32>
    tpu.vector_store %arg5[%c0_9, %c0_10], %10 {strides = array<i32>} : memref<256x64xf32, #tpu.memory_space<vmem>>, vector<256x64xf32>,
    return
  }
  func.func @transform_0(%arg0: i32) -> (i32, i32) {
    %c0_i32 = arith.constant 0 : i32
    %c0_i32_0 = arith.constant 0 : i32
    return %arg0, %c0_i32 : i32, i32
  }
  func.func @transform_1(%arg0: i32) -> (i32, i32) {
    %c0_i32 = arith.constant 0 : i32
    %c0_i32_0 = arith.constant 0 : i32
    %c0_i32_1 = arith.constant 0 : i32
    return %c0_i32, %c0_i32_0 : i32, i32
  }
  func.func @transform_2(%arg0: i32) -> (i32, i32) {
    %c0_i32 = arith.constant 0 : i32
    %c0_i32_0 = arith.constant 0 : i32
    %c0_i32_1 = arith.constant 0 : i32
    return %c0_i32, %c0_i32_0 : i32, i32
  }
  func.func @transform_3(%arg0: i32) -> (i32, i32) {
    %c0_i32 = arith.constant 0 : i32
    %c0_i32_0 = arith.constant 0 : i32
    %c0_i32_1 = arith.constant 0 : i32
    return %c0_i32, %c0_i32_0 : i32, i32
  }
  func.func @transform_4(%arg0: i32) -> (i32, i32) {
    %c0_i32 = arith.constant 0 : i32
    %c0_i32_0 = arith.constant 0 : i32
    return %arg0, %c0_i32 : i32, i32
  }
}

</mosaic_0001>

<bundles_post_ra>
// kernel: gnn_forward.5
= control target key start
LH: loop header
LB: loop body
LE: loop exit
PB: predicated region body
PF: predicated region fallthrough
CT: control target
= control target key end

     0   :  { %vm81_vm0 = vcmask 523264   ;;  %vm506_vm1 = vcmask 261120   ;;  %s1127_s2 = inlined_call_operand.vmem [shape: f32[64,32], index: 2, kind: input, shape index: {}]   ;;  %s1128_s4 = inlined_call_operand.vmem [shape: f32[64,32], index: 4, kind: input, shape index: {}]   ;;  %s1129_s0 = inlined_call_operand.vmem [shape: f32[128,64], index: 0, kind: input, shape index: {}]   ;;  %s1130_s1 = inlined_call_operand.vmem [shape: f32[128,64], index: 1, kind: input, shape index: {}]   ;;  %s1131_s3 = inlined_call_operand.vmem [shape: f32[1,32], index: 3, kind: input, shape index: {}]   ;;  %s1132_s5 = inlined_call_operand.vmem [shape: f32[1,32], index: 5, kind: input, shape index: {}]   ;;  %s1133_s6 = inlined_call_operand.vmem [shape: f32[128,32], index: 6, kind: output, shape index: {0}]   ;;  %s1134_s7 = inlined_call_operand.vmem [shape: f32[128,32], index: 7, kind: output, shape index: {1}]  }
   0x1   :  { %v57_v0 = vld [vmem:[%s1127_s2] sm:$0xff]  ;;  %v58_v1 = vld [vmem:[%s1127_s2 + $0x8] sm:$0xff]  ;;  %v59_v5 = vld [vmem:[%s1127_s2 + $0x10] sm:$0xff] }
   0x2   :  { %v66_v2 = vld [vmem:[%s1128_s4] sm:$0xff]  ;;  %v709_v3 = vpack.c.bf16 %v58_v1, %v57_v0  ;;  %v67_v4 = vld [vmem:[%s1128_s4 + $0x8] sm:$0xff]  ;;  %v60_v6 = vld [vmem:[%s1127_s2 + $0x18] sm:$0xff] }
   0x3   :  { %v725_v7 = vpack.c.bf16 %v67_v4, %v66_v2  ;;  %v713_v8 = vpack.c.bf16 %v60_v6, %v59_v5  ;;  %v68_v9 = vld [vmem:[%s1128_s4 + $0x10] sm:$0xff]  ;;  %v69_v10 = vld [vmem:[%s1128_s4 + $0x18] sm:$0xff]  ;;  %v61_v11 = vld [vmem:[%s1127_s2 + $0x20] sm:$0xff] }
   0x4   :  { %710 = vmatprep.subr.bf16.mxu0 %v709_v3  ;;  %v729_v12 = vpack.c.bf16 %v69_v10, %v68_v9  ;;  %v62_v13 = vld [vmem:[%s1127_s2 + $0x28] sm:$0xff]  ;;  %v70_v14 = vld [vmem:[%s1128_s4 + $0x20] sm:$0xff]  ;;  %v63_v20 = vld [vmem:[%s1127_s2 + $0x30] sm:$0xff] }
   0x5   :  { %v71_v15 = vld [vmem:[%s1128_s4 + $0x28] sm:$0xff]  ;;  %726 = vmatprep.subr.bf16.mxu1 %v725_v7  ;;  %712 = vmatpush3.bf16.msra.mxu0 %v709_v3  ;;  %v717_v16 = vpack.c.bf16 %v62_v13, %v61_v11  ;;  %v25_v17 = vld [vmem:[%s1129_s0] sm:$0xff]  ;;  %v64_v21 = vld [vmem:[%s1127_s2 + $0x38] sm:$0xff] }
   0x6   :  { %728 = vmatpush3.bf16.msra.mxu1 %v725_v7  ;;  %714 = vmatprep.subr.bf16.mxu0 %v713_v8  ;;  %v41_v18 = vld [vmem:[%s1130_s1] sm:$0xff]  ;;  %v733_v19 = vpack.c.bf16 %v71_v15, %v70_v14  ;;  %v72_v22 = vld [vmem:[%s1128_s4 + $0x30] sm:$0xff]  ;;  %v73_v23 = vld [vmem:[%s1128_s4 + $0x38] sm:$0xff]  ;;  %v721_v24 = vpack.c.bf16 %v64_v21, %v63_v20 }
   0x7   :  { %730 = vmatprep.subr.bf16.mxu1 %v729_v12  ;;  %645 = vmatprep.mubr.msk.f32.mxu0 %vm81_vm0, %v25_v17  ;;  %v737_v25 = vpack.c.bf16 %v73_v23, %v72_v22  ;;  %v26_v26 = vld [vmem:[%s1129_s0 + $0x8] sm:$0xff]  ;;  %v27_v28 = vld [vmem:[%s1129_s0 + $0x10] sm:$0xff]  ;;  %v28_v30 = vld [vmem:[%s1129_s0 + $0x18] sm:$0xff] }
   0x8   :  { %685 = vmatprep.mubr.msk.f32.mxu1 %vm81_vm0, %v41_v18  ;;  %v42_v27 = vld [vmem:[%s1130_s1 + $0x8] sm:$0xff]  ;;  %v43_v29 = vld [vmem:[%s1130_s1 + $0x10] sm:$0xff]  ;;  %v44_v31 = vld [vmem:[%s1130_s1 + $0x18] sm:$0xff] }
   0x9   :  { %716 = vmatpush3.bf16.msra.mxu0 %v713_v8  ;;  %v29_v32 = vld [vmem:[%s1129_s0 + $0x20] sm:$0xff]  ;;  %v30_v34 = vld [vmem:[%s1129_s0 + $0x28] sm:$0xff]  ;;  %v31_v36 = vld [vmem:[%s1129_s0 + $0x30] sm:$0xff] }
   0xa   :  { %732 = vmatpush3.bf16.msra.mxu1 %v729_v12  ;;  %718 = vmatprep.subr.bf16.mxu0 %v717_v16  ;;  %v45_v33 = vld [vmem:[%s1130_s1 + $0x20] sm:$0xff]  ;;  %v46_v35 = vld [vmem:[%s1130_s1 + $0x28] sm:$0xff]  ;;  %v47_v37 = vld [vmem:[%s1130_s1 + $0x30] sm:$0xff] }
   0xb   :  { %734 = vmatprep.subr.bf16.mxu1 %v733_v19  ;;  %v32_v38 = vld [vmem:[%s1129_s0 + $0x38] sm:$0xff]  ;;  %v33_v40 = vld [vmem:[%s1129_s0 + $0x40] sm:$0xff]  ;;  %v34_v42 = vld [vmem:[%s1129_s0 + $0x48] sm:$0xff] }
   0xc   :  { %v48_v39 = vld [vmem:[%s1130_s1 + $0x38] sm:$0xff]  ;;  %v49_v41 = vld [vmem:[%s1130_s1 + $0x40] sm:$0xff]  ;;  %v50_v43 = vld [vmem:[%s1130_s1 + $0x48] sm:$0xff] }
   0xd   :  { %720 = vmatpush3.bf16.msra.mxu0 %v717_v16  ;;  %v35_v44 = vld [vmem:[%s1129_s0 + $0x50] sm:$0xff]  ;;  %v36_v46 = vld [vmem:[%s1129_s0 + $0x58] sm:$0xff]  ;;  %v37_v48 = vld [vmem:[%s1129_s0 + $0x60] sm:$0xff] }
   0xe   :  { %736 = vmatpush3.bf16.msra.mxu1 %v733_v19  ;;  %722 = vmatprep.subr.bf16.mxu0 %v721_v24  ;;  %v51_v45 = vld [vmem:[%s1130_s1 + $0x50] sm:$0xff]  ;;  %v52_v47 = vld [vmem:[%s1130_s1 + $0x58] sm:$0xff]  ;;  %v53_v49 = vld [vmem:[%s1130_s1 + $0x60] sm:$0xff] }
   0xf   :  { %738 = vmatprep.subr.bf16.mxu1 %v737_v25  ;;  %v38_v50 = vld [vmem:[%s1129_s0 + $0x68] sm:$0xff]  ;;  %v39_v52 = vld [vmem:[%s1129_s0 + $0x70] sm:$0xff]  ;;  %v40_v54 = vld [vmem:[%s1129_s0 + $0x78] sm:$0xff] }
  0x10   :  { %v54_v51 = vld [vmem:[%s1130_s1 + $0x68] sm:$0xff]  ;;  %v55_v53 = vld [vmem:[%s1130_s1 + $0x70] sm:$0xff]  ;;  %v56_v55 = vld [vmem:[%s1130_s1 + $0x78] sm:$0xff] }
  0x11   :  { %724 = vmatpush3.bf16.msra.mxu0 %v721_v24  ;;  %v960_v56 = vld [vmem:[%s1131_s3] ss:$0 sm:$0xff] }
  0x12   :  { %740 = vmatpush3.bf16.msra.mxu1 %v737_v25  ;;  %v965_v57 = vld [vmem:[%s1132_s5] ss:$0 sm:$0xff] }
  0x14   :  { %646 = vmatmul.mubr.msk.f32.vlgmr.msra.gmra.mrb[0].mxu0 %vm81_vm0, %v26_v26 }
  0x15   :  { %686 = vmatmul.mubr.msk.f32.vlgmr.msra.gmra.mrb[0].mxu1 %vm81_vm0, %v42_v27  ;;  %648 = vmatprep.mubr.msk.f32.mxu0 %vm81_vm0, %v27_v28 }
  0x16   :  { %688 = vmatprep.mubr.msk.f32.mxu1 %vm81_vm0, %v43_v29 }
  0x18   :  { %649 = vmatmul.mubr.msk.f32.gmra.mrb[2].mxu0 %vm81_vm0, %v28_v30 }
  0x19   :  { %689 = vmatmul.mubr.msk.f32.gmra.mrb[2].mxu1 %vm81_vm0, %v44_v31  ;;  %651 = vmatprep.mubr.msk.f32.mxu0 %vm81_vm0, %v29_v32 }
  0x1a   :  { %691 = vmatprep.mubr.msk.f32.mxu1 %vm81_vm0, %v45_v33 }
  0x1c   :  { %652 = vmatmul.mubr.msk.f32.gmra.mrb[4].mxu0 %vm81_vm0, %v30_v34 }
  0x1d   :  { %692 = vmatmul.mubr.msk.f32.gmra.mrb[4].mxu1 %vm81_vm0, %v46_v35  ;;  %654 = vmatprep.mubr.msk.f32.mxu0 %vm81_vm0, %v31_v36 }
  0x1e   :  { %694 = vmatprep.mubr.msk.f32.mxu1 %vm81_vm0, %v47_v37 }
  0x20   :  { %655 = vmatmul.mubr.msk.f32.gmra.mrb[6].mxu0 %vm81_vm0, %v32_v38 }
  0x21   :  { %695 = vmatmul.mubr.msk.f32.gmra.mrb[6].mxu1 %vm81_vm0, %v48_v39  ;;  %657 = vmatprep.mubr.msk.f32.mxu0 %vm81_vm0, %v33_v40 }
  0x22   :  { %697 = vmatprep.mubr.msk.f32.mxu1 %vm81_vm0, %v49_v41 }
  0x24   :  { %658 = vmatmul.mubr.msk.f32.gmra.mrb[8].mxu0 %vm81_vm0, %v34_v42 }
  0x25   :  { %698 = vmatmul.mubr.msk.f32.gmra.mrb[8].mxu1 %vm81_vm0, %v50_v43  ;;  %660 = vmatprep.mubr.msk.f32.mxu0 %vm81_vm0, %v35_v44 }
  0x26   :  { %700 = vmatprep.mubr.msk.f32.mxu1 %vm81_vm0, %v51_v45 }
  0x28   :  { %661 = vmatmul.mubr.msk.f32.gmra.mrb[10].mxu0 %vm81_vm0, %v36_v46 }
  0x29   :  { %701 = vmatmul.mubr.msk.f32.gmra.mrb[10].mxu1 %vm81_vm0, %v52_v47  ;;  %663 = vmatprep.mubr.msk.f32.mxu0 %vm81_vm0, %v37_v48 }
  0x2a   :  { %703 = vmatprep.mubr.msk.f32.mxu1 %vm81_vm0, %v53_v49 }
  0x2c   :  { %664 = vmatmul.mubr.msk.f32.gmra.mrb[12].mxu0 %vm81_vm0, %v38_v50 }
  0x2d   :  { %704 = vmatmul.mubr.msk.f32.gmra.mrb[12].mxu1 %vm81_vm0, %v54_v51  ;;  %666 = vmatprep.mubr.msk.f32.mxu0 %vm81_vm0, %v39_v52 }
  0x2e   :  { %706 = vmatprep.mubr.msk.f32.mxu1 %vm81_vm0, %v55_v53 }
  0x30   :  { %667 = vmatmul.mubr.msk.f32.gmra.mrb[14].mxu0 %vm81_vm0, %v40_v54 }
  0x31   :  { %707 = vmatmul.mubr.msk.f32.gmra.mrb[14].mxu1 %vm81_vm0, %v56_v55 }
  0xe7   :  { %v647_v58 = vpop.f32.mrb[0].mxu0 }
  0xe8   :  { %v202_v59 = vadd.f32 %v647_v58, %v960_v56  ;;  %v687_v60 = vpop.f32.mrb[0].mxu1  ;;  %v196_v61 = vpop.f32.mrb[1].mxu0 }
  0xe9   :  { %v417_v62 = vadd.f32 %v687_v60, %v965_v57  ;;  %v197_v63 = vadd.f32 %v960_v56, %v196_v61  ;;  %v411_v0 = vpop.f32.mrb[1].mxu1 }
  0xea   :  { %v276_v1 = vmax.f32 %v202_v59, 0.0  ;;  %v412_v2 = vadd.f32 %v965_v57, %v411_v0 }
  0xeb   :  { %v491_v3 = vmax.f32 %v417_v62, 0.0  ;;  %v275_v4 = vmax.f32 %v197_v63, 0.0  ;;  %v650_v5 = vpop.f32.mrb[2].mxu0 }
  0xec   :  { %508 = vst.msk [vmem:[%s1133_s6 + $0x8] sm:$0xff] %vm506_vm1, %v276_v1  ;;  %v490_v6 = vmax.f32 %v412_v2, 0.0  ;;  %v212_v7 = vadd.f32 %v650_v5, %v960_v56  ;;  %v690_v8 = vpop.f32.mrb[2].mxu1  ;;  %v206_v9 = vpop.f32.mrb[3].mxu0 }
  0xed   :  { %524 = vst.msk [vmem:[%s1134_s7 + $0x8] sm:$0xff] %vm506_vm1, %v491_v3  ;;  %507 = vst.msk [vmem:[%s1133_s6] sm:$0xff] %vm506_vm1, %v275_v4  ;;  %v427_v10 = vadd.f32 %v690_v8, %v965_v57  ;;  %v207_v11 = vadd.f32 %v960_v56, %v206_v9  ;;  %v421_v12 = vpop.f32.mrb[3].mxu1 }
  0xee   :  { %523 = vst.msk [vmem:[%s1134_s7] sm:$0xff] %vm506_vm1, %v490_v6  ;;  %v278_v13 = vmax.f32 %v212_v7, 0.0  ;;  %v422_v14 = vadd.f32 %v965_v57, %v421_v12 }
  0xef   :  { %v493_v15 = vmax.f32 %v427_v10, 0.0  ;;  %v277_v16 = vmax.f32 %v207_v11, 0.0  ;;  %v653_v17 = vpop.f32.mrb[4].mxu0 }
  0xf0   :  { %510 = vst.msk [vmem:[%s1133_s6 + $0x18] sm:$0xff] %vm506_vm1, %v278_v13  ;;  %v492_v18 = vmax.f32 %v422_v14, 0.0  ;;  %v222_v19 = vadd.f32 %v653_v17, %v960_v56  ;;  %v693_v20 = vpop.f32.mrb[4].mxu1  ;;  %v216_v21 = vpop.f32.mrb[5].mxu0 }
  0xf1   :  { %526 = vst.msk [vmem:[%s1134_s7 + $0x18] sm:$0xff] %vm506_vm1, %v493_v15  ;;  %509 = vst.msk [vmem:[%s1133_s6 + $0x10] sm:$0xff] %vm506_vm1, %v277_v16  ;;  %v437_v22 = vadd.f32 %v693_v20, %v965_v57  ;;  %v217_v23 = vadd.f32 %v960_v56, %v216_v21  ;;  %v431_v24 = vpop.f32.mrb[5].mxu1 }
  0xf2   :  { %525 = vst.msk [vmem:[%s1134_s7 + $0x10] sm:$0xff] %vm506_vm1, %v492_v18  ;;  %v280_v25 = vmax.f32 %v222_v19, 0.0  ;;  %v432_v26 = vadd.f32 %v965_v57, %v431_v24 }
  0xf3   :  { %v495_v27 = vmax.f32 %v437_v22, 0.0  ;;  %v279_v28 = vmax.f32 %v217_v23, 0.0  ;;  %v656_v29 = vpop.f32.mrb[6].mxu0 }
  0xf4   :  { %512 = vst.msk [vmem:[%s1133_s6 + $0x28] sm:$0xff] %vm506_vm1, %v280_v25  ;;  %v494_v30 = vmax.f32 %v432_v26, 0.0  ;;  %v232_v31 = vadd.f32 %v656_v29, %v960_v56  ;;  %v696_v32 = vpop.f32.mrb[6].mxu1  ;;  %v226_v33 = vpop.f32.mrb[7].mxu0 }
  0xf5   :  { %528 = vst.msk [vmem:[%s1134_s7 + $0x28] sm:$0xff] %vm506_vm1, %v495_v27  ;;  %511 = vst.msk [vmem:[%s1133_s6 + $0x20] sm:$0xff] %vm506_vm1, %v279_v28  ;;  %v447_v34 = vadd.f32 %v696_v32, %v965_v57  ;;  %v227_v35 = vadd.f32 %v960_v56, %v226_v33  ;;  %v441_v36 = vpop.f32.mrb[7].mxu1 }
  0xf6   :  { %527 = vst.msk [vmem:[%s1134_s7 + $0x20] sm:$0xff] %vm506_vm1, %v494_v30  ;;  %v282_v37 = vmax.f32 %v232_v31, 0.0  ;;  %v442_v38 = vadd.f32 %v965_v57, %v441_v36 }
  0xf7   :  { %v497_v39 = vmax.f32 %v447_v34, 0.0  ;;  %v281_v40 = vmax.f32 %v227_v35, 0.0  ;;  %v659_v41 = vpop.f32.mrb[8].mxu0 }
  0xf8   :  { %514 = vst.msk [vmem:[%s1133_s6 + $0x38] sm:$0xff] %vm506_vm1, %v282_v37  ;;  %v496_v42 = vmax.f32 %v442_v38, 0.0  ;;  %v242_v43 = vadd.f32 %v659_v41, %v960_v56  ;;  %v699_v44 = vpop.f32.mrb[8].mxu1  ;;  %v236_v45 = vpop.f32.mrb[9].mxu0 }
  0xf9   :  { %530 = vst.msk [vmem:[%s1134_s7 + $0x38] sm:$0xff] %vm506_vm1, %v497_v39  ;;  %513 = vst.msk [vmem:[%s1133_s6 + $0x30] sm:$0xff] %vm506_vm1, %v281_v40  ;;  %v457_v46 = vadd.f32 %v699_v44, %v965_v57  ;;  %v237_v47 = vadd.f32 %v960_v56, %v236_v45  ;;  %v451_v48 = vpop.f32.mrb[9].mxu1 }
  0xfa   :  { %529 = vst.msk [vmem:[%s1134_s7 + $0x30] sm:$0xff] %vm506_vm1, %v496_v42  ;;  %v284_v49 = vmax.f32 %v242_v43, 0.0  ;;  %v452_v50 = vadd.f32 %v965_v57, %v451_v48 }
  0xfb   :  { %v499_v51 = vmax.f32 %v457_v46, 0.0  ;;  %v283_v52 = vmax.f32 %v237_v47, 0.0  ;;  %v662_v53 = vpop.f32.mrb[10].mxu0 }
  0xfc   :  { %516 = vst.msk [vmem:[%s1133_s6 + $0x48] sm:$0xff] %vm506_vm1, %v284_v49  ;;  %v498_v54 = vmax.f32 %v452_v50, 0.0  ;;  %v252_v55 = vadd.f32 %v662_v53, %v960_v56  ;;  %v702_v58 = vpop.f32.mrb[10].mxu1  ;;  %v246_v59 = vpop.f32.mrb[11].mxu0 }
  0xfd   :  { %532 = vst.msk [vmem:[%s1134_s7 + $0x48] sm:$0xff] %vm506_vm1, %v499_v51  ;;  %515 = vst.msk [vmem:[%s1133_s6 + $0x40] sm:$0xff] %vm506_vm1, %v283_v52  ;;  %v467_v60 = vadd.f32 %v702_v58, %v965_v57  ;;  %v247_v61 = vadd.f32 %v960_v56, %v246_v59  ;;  %v461_v62 = vpop.f32.mrb[11].mxu1 }
  0xfe   :  { %531 = vst.msk [vmem:[%s1134_s7 + $0x40] sm:$0xff] %vm506_vm1, %v498_v54  ;;  %v286_v63 = vmax.f32 %v252_v55, 0.0  ;;  %v462_v0 = vadd.f32 %v965_v57, %v461_v62 }
  0xff   :  { %v501_v1 = vmax.f32 %v467_v60, 0.0  ;;  %v285_v2 = vmax.f32 %v247_v61, 0.0  ;;  %v665_v3 = vpop.f32.mrb[12].mxu0 }
 0x100   :  { %518 = vst.msk [vmem:[%s1133_s6 + $0x58] sm:$0xff] %vm506_vm1, %v286_v63  ;;  %v500_v4 = vmax.f32 %v462_v0, 0.0  ;;  %v262_v5 = vadd.f32 %v665_v3, %v960_v56  ;;  %v705_v6 = vpop.f32.mrb[12].mxu1  ;;  %v256_v7 = vpop.f32.mrb[13].mxu0 }
 0x101   :  { %534 = vst.msk [vmem:[%s1134_s7 + $0x58] sm:$0xff] %vm506_vm1, %v501_v1  ;;  %517 = vst.msk [vmem:[%s1133_s6 + $0x50] sm:$0xff] %vm506_vm1, %v285_v2  ;;  %v477_v8 = vadd.f32 %v705_v6, %v965_v57  ;;  %v257_v9 = vadd.f32 %v960_v56, %v256_v7  ;;  %v471_v10 = vpop.f32.mrb[13].mxu1 }
 0x102   :  { %533 = vst.msk [vmem:[%s1134_s7 + $0x50] sm:$0xff] %vm506_vm1, %v500_v4  ;;  %v288_v11 = vmax.f32 %v262_v5, 0.0  ;;  %v472_v12 = vadd.f32 %v965_v57, %v471_v10 }
 0x103   :  { %v503_v13 = vmax.f32 %v477_v8, 0.0  ;;  %v287_v14 = vmax.f32 %v257_v9, 0.0  ;;  %v668_v15 = vpop.f32.mrb[14].mxu0 }
 0x104   :  { %520 = vst.msk [vmem:[%s1133_s6 + $0x68] sm:$0xff] %vm506_vm1, %v288_v11  ;;  %v502_v16 = vmax.f32 %v472_v12, 0.0  ;;  %v272_v17 = vadd.f32 %v668_v15, %v960_v56  ;;  %v708_v18 = vpop.f32.mrb[14].mxu1  ;;  %v266_v19 = vpop.f32.mrb[15].mxu0 }
 0x105   :  { %536 = vst.msk [vmem:[%s1134_s7 + $0x68] sm:$0xff] %vm506_vm1, %v503_v13  ;;  %519 = vst.msk [vmem:[%s1133_s6 + $0x60] sm:$0xff] %vm506_vm1, %v287_v14  ;;  %v487_v20 = vadd.f32 %v708_v18, %v965_v57  ;;  %v267_v21 = vadd.f32 %v960_v56, %v266_v19  ;;  %v481_v22 = vpop.f32.mrb[15].mxu1 }
 0x106   :  { %535 = vst.msk [vmem:[%s1134_s7 + $0x60] sm:$0xff] %vm506_vm1, %v502_v16  ;;  %v290_v23 = vmax.f32 %v272_v17, 0.0  ;;  %v482_v24 = vadd.f32 %v965_v57, %v481_v22 }
 0x107   :  { %v505_v25 = vmax.f32 %v487_v20, 0.0  ;;  %v289_v26 = vmax.f32 %v267_v21, 0.0 }
 0x108   :  { %522 = vst.msk [vmem:[%s1133_s6 + $0x78] sm:$0xff] %vm506_vm1, %v290_v23  ;;  %v504_v27 = vmax.f32 %v482_v24, 0.0 }
 0x109   :  { %538 = vst.msk [vmem:[%s1134_s7 + $0x78] sm:$0xff] %vm506_vm1, %v505_v25  ;;  %521 = vst.msk [vmem:[%s1133_s6 + $0x70] sm:$0xff] %vm506_vm1, %v289_v26 }
 0x10a   :  { %537 = vst.msk [vmem:[%s1134_s7 + $0x70] sm:$0xff] %vm506_vm1, %v504_v27 }

// kernel: gnn_forward.4
= control target key start
LH: loop header
LB: loop body
LE: loop exit
PB: predicated region body
PF: predicated region fallthrough
CT: control target
= control target key end

     0   :  { %vm569_vm0 = vcmask 523264   ;;  %vm778_vm1 = vcmask 261120   ;;  %s1763_s2 = inlined_call_operand.vmem [shape: f32[256,128], index: 2, kind: input, shape index: {}]   ;;  %s1764_s4 = inlined_call_operand.vmem [shape: f32[256,128], index: 4, kind: input, shape index: {}]   ;;  %s1765_s0 = inlined_call_operand.vmem [shape: f32[32,256], index: 0, kind: input, shape index: {}]   ;;  %s1766_s1 = inlined_call_operand.vmem [shape: f32[32,256], index: 1, kind: input, shape index: {}]   ;;  %s1767_s6 = inlined_call_operand.vmem [shape: f32[128,64], index: 6, kind: input, shape index: {}]   ;;  %s1768_s8 = inlined_call_operand.vmem [shape: f32[128,64], index: 8, kind: input, shape index: {}]   ;;  %s1769_s10 = inlined_call_operand.vmem [shape: f32[64,32], index: 10, kind: input, shape index: {}]   ;;  %s1770_s12 = inlined_call_operand.vmem [shape: f32[64,32], index: 12, kind: input, shape index: {}]   ;;  %s1771_s3 = inlined_call_operand.vmem [shape: f32[1,128], index: 3, kind: input, shape index: {}]   ;;  %s1772_s5 = inlined_call_operand.vmem [shape: f32[1,128], index: 5, kind: input, shape index: {}]   ;;  %s1773_s7 = inlined_call_operand.vmem [shape: f32[1,64], index: 7, kind: input, shape index: {}]   ;;  %s1774_s9 = inlined_call_operand.vmem [shape: f32[1,64], index: 9, kind: input, shape index: {}]   ;;  %s1775_s11 = inlined_call_operand.vmem [shape: f32[1,32], index: 11, kind: input, shape index: {}]   ;;  %s1776_s13 = inlined_call_operand.vmem [shape: f32[1,32], index: 13, kind: input, shape index: {}]   ;;  %s1777_s14 = inlined_call_operand.vmem [shape: f32[32,32], index: 14, kind: output, shape index: {0}]   ;;  %s1778_s15 = inlined_call_operand.vmem [shape: f32[32,32], index: 15, kind: output, shape index: {1}]  }
   0x1   :  { %v81_v0 = vld [vmem:[%s1763_s2 + $0x80] sm:$0xff]  ;;  %v82_v1 = vld [vmem:[%s1763_s2 + $0x88] sm:$0xff]  ;;  %v83_v11 = vld [vmem:[%s1763_s2 + $0x90] sm:$0xff] }
   0x2   :  { %v114_v2 = vld [vmem:[%s1764_s4 + $0x80] sm:$0xff]  ;;  %v1081_v3 = vpack.c.bf16 %v82_v1, %v81_v0  ;;  %v115_v4 = vld [vmem:[%s1764_s4 + $0x88] sm:$0xff]  ;;  %v84_v13 = vld [vmem:[%s1763_s2 + $0x98] sm:$0xff] }
   0x3   :  { %v65_v5 = vld [vmem:[%s1763_s2] sm:$0xff]  ;;  %v66_v6 = vld [vmem:[%s1763_s2 + $0x8] sm:$0xff]  ;;  %v1113_v7 = vpack.c.bf16 %v115_v4, %v114_v2  ;;  %v116_v14 = vld [vmem:[%s1764_s4 + $0x90] sm:$0xff]  ;;  %v1085_v16 = vpack.c.bf16 %v84_v13, %v83_v11 }
   0x4   :  { %v1083_v8 = vpack.c.bf16 %v66_v6, %v65_v5  ;;  %v98_v9 = vld [vmem:[%s1764_s4] sm:$0xff]  ;;  %v99_v10 = vld [vmem:[%s1764_s4 + $0x8] sm:$0xff]  ;;  %1082 = vmatprep.subr.bf16.mxu0 %v1081_v3  ;;  %v117_v15 = vld [vmem:[%s1764_s4 + $0x98] sm:$0xff] }
   0x5   :  { %v1115_v12 = vpack.c.bf16 %v99_v10, %v98_v9  ;;  %1114 = vmatprep.subr.bf16.mxu1 %v1113_v7  ;;  %v1117_v17 = vpack.c.bf16 %v117_v15, %v116_v14  ;;  %v67_v18 = vld [vmem:[%s1763_s2 + $0x10] sm:$0xff]  ;;  %v68_v19 = vld [vmem:[%s1763_s2 + $0x18] sm:$0xff]  ;;  %v85_v23 = vld [vmem:[%s1763_s2 + $0xa0] sm:$0xff] }
   0x6   :  { %1084 = vmatpush3.bf16.msra.mxu0 %v1083_v8  ;;  %v100_v20 = vld [vmem:[%s1764_s4 + $0x10] sm:$0xff]  ;;  %v1087_v21 = vpack.c.bf16 %v68_v19, %v67_v18  ;;  %v101_v22 = vld [vmem:[%s1764_s4 + $0x18] sm:$0xff]  ;;  %v86_v24 = vld [vmem:[%s1763_s2 + $0xa8] sm:$0xff] }
   0x7   :  { %1116 = vmatpush3.bf16.msra.mxu1 %v1115_v12  ;;  %1086 = vmatprep.subr.bf16.mxu0 %v1085_v16  ;;  %v1119_v25 = vpack.c.bf16 %v101_v22, %v100_v20  ;;  %v1089_v26 = vpack.c.bf16 %v86_v24, %v85_v23  ;;  %v118_v27 = vld [vmem:[%s1764_s4 + $0xa0] sm:$0xff]  ;;  %v119_v28 = vld [vmem:[%s1764_s4 + $0xa8] sm:$0xff]  ;;  %v87_v35 = vld [vmem:[%s1763_s2 + $0xb0] sm:$0xff] }
   0x8   :  { %1118 = vmatprep.subr.bf16.mxu1 %v1117_v17  ;;  %v69_v29 = vld [vmem:[%s1763_s2 + $0x20] sm:$0xff]  ;;  %v1121_v30 = vpack.c.bf16 %v119_v28, %v118_v27  ;;  %v70_v31 = vld [vmem:[%s1763_s2 + $0x28] sm:$0xff]  ;;  %v88_v36 = vld [vmem:[%s1763_s2 + $0xb8] sm:$0xff] }
   0x9   :  { %v102_v32 = vld [vmem:[%s1764_s4 + $0x20] sm:$0xff]  ;;  %v103_v33 = vld [vmem:[%s1764_s4 + $0x28] sm:$0xff]  ;;  %v1091_v34 = vpack.c.bf16 %v70_v31, %v69_v29  ;;  %v120_v37 = vld [vmem:[%s1764_s4 + $0xb0] sm:$0xff]  ;;  %v1093_v39 = vpack.c.bf16 %v88_v36, %v87_v35 }
   0xa   :  { %1088 = vmatpush3.bf16.msra.mxu0 %v1087_v21  ;;  %v1123_v38 = vpack.c.bf16 %v103_v33, %v102_v32  ;;  %v121_v40 = vld [vmem:[%s1764_s4 + $0xb8] sm:$0xff]  ;;  %v71_v41 = vld [vmem:[%s1763_s2 + $0x30] sm:$0xff]  ;;  %v89_v46 = vld [vmem:[%s1763_s2 + $0xc0] sm:$0xff] }
   0xb   :  { %1120 = vmatpush3.bf16.msra.mxu1 %v1119_v25  ;;  %1090 = vmatprep.subr.bf16.mxu0 %v1089_v26  ;;  %v72_v42 = vld [vmem:[%s1763_s2 + $0x38] sm:$0xff]  ;;  %v1125_v43 = vpack.c.bf16 %v121_v40, %v120_v37  ;;  %v104_v44 = vld [vmem:[%s1764_s4 + $0x30] sm:$0xff]  ;;  %v90_v47 = vld [vmem:[%s1763_s2 + $0xc8] sm:$0xff] }
   0xc   :  { %1122 = vmatprep.subr.bf16.mxu1 %v1121_v30  ;;  %v105_v45 = vld [vmem:[%s1764_s4 + $0x38] sm:$0xff]  ;;  %v122_v48 = vld [vmem:[%s1764_s4 + $0xc0] sm:$0xff]  ;;  %v123_v49 = vld [vmem:[%s1764_s4 + $0xc8] sm:$0xff]  ;;  %v1095_v50 = vpack.c.bf16 %v72_v42, %v71_v41  ;;  %v1097_v52 = vpack.c.bf16 %v90_v47, %v89_v46 }
   0xd   :  { %v1127_v51 = vpack.c.bf16 %v105_v45, %v104_v44  ;;  %v73_v53 = vld [vmem:[%s1763_s2 + $0x40] sm:$0xff]  ;;  %v74_v54 = vld [vmem:[%s1763_s2 + $0x48] sm:$0xff]  ;;  %v1129_v56 = vpack.c.bf16 %v123_v49, %v122_v48  ;;  %v91_v58 = vld [vmem:[%s1763_s2 + $0xd0] sm:$0xff] }
   0xe   :  { %1092 = vmatpush3.bf16.msra.mxu0 %v1091_v34  ;;  %v106_v55 = vld [vmem:[%s1764_s4 + $0x40] sm:$0xff]  ;;  %v107_v57 = vld [vmem:[%s1764_s4 + $0x48] sm:$0xff]  ;;  %v92_v59 = vld [vmem:[%s1763_s2 + $0xd8] sm:$0xff]  ;;  %v1099_v62 = vpack.c.bf16 %v74_v54, %v73_v53 }
   0xf   :  { %1124 = vmatpush3.bf16.msra.mxu1 %v1123_v38  ;;  %1094 = vmatprep.subr.bf16.mxu0 %v1093_v39  ;;  %v124_v60 = vld [vmem:[%s1764_s4 + $0xd0] sm:$0xff]  ;;  %v125_v61 = vld [vmem:[%s1764_s4 + $0xd8] sm:$0xff]  ;;  %v1131_v63 = vpack.c.bf16 %v107_v57, %v106_v55  ;;  %v1101_v0 = vpack.c.bf16 %v92_v59, %v91_v58  ;;  %v93_v6 = vld [vmem:[%s1763_s2 + $0xe0] sm:$0xff] }
  0x10   :  { %1126 = vmatprep.subr.bf16.mxu1 %v1125_v43  ;;  %v75_v1 = vld [vmem:[%s1763_s2 + $0x50] sm:$0xff]  ;;  %v76_v2 = vld [vmem:[%s1763_s2 + $0x58] sm:$0xff]  ;;  %v1133_v4 = vpack.c.bf16 %v125_v61, %v124_v60  ;;  %v94_v7 = vld [vmem:[%s1763_s2 + $0xe8] sm:$0xff] }
  0x11   :  { %v108_v3 = vld [vmem:[%s1764_s4 + $0x50] sm:$0xff]  ;;  %v109_v5 = vld [vmem:[%s1764_s4 + $0x58] sm:$0xff]  ;;  %v126_v8 = vld [vmem:[%s1764_s4 + $0xe0] sm:$0xff]  ;;  %v1103_v10 = vpack.c.bf16 %v76_v2, %v75_v1  ;;  %v1105_v14 = vpack.c.bf16 %v94_v7, %v93_v6 }
  0x12   :  { %1096 = vmatpush3.bf16.msra.mxu0 %v1095_v50  ;;  %v127_v9 = vld [vmem:[%s1764_s4 + $0xe8] sm:$0xff]  ;;  %v77_v11 = vld [vmem:[%s1763_s2 + $0x60] sm:$0xff]  ;;  %v1135_v13 = vpack.c.bf16 %v109_v5, %v108_v3  ;;  %v95_v20 = vld [vmem:[%s1763_s2 + $0xf0] sm:$0xff] }
  0x13   :  { %1128 = vmatpush3.bf16.msra.mxu1 %v1127_v51  ;;  %1098 = vmatprep.subr.bf16.mxu0 %v1097_v52  ;;  %v78_v12 = vld [vmem:[%s1763_s2 + $0x68] sm:$0xff]  ;;  %v110_v15 = vld [vmem:[%s1764_s4 + $0x60] sm:$0xff]  ;;  %v1137_v18 = vpack.c.bf16 %v127_v9, %v126_v8  ;;  %v96_v21 = vld [vmem:[%s1763_s2 + $0xf8] sm:$0xff] }
  0x14   :  { %1130 = vmatprep.subr.bf16.mxu1 %v1129_v56  ;;  %v50_v16 = vld [vmem:[%s1765_s0 + $0x8] sm:$0xff]  ;;  %v128_v22 = vld [vmem:[%s1764_s4 + $0xf0] sm:$0xff]  ;;  %v129_v23 = vld [vmem:[%s1764_s4 + $0xf8] sm:$0xff]  ;;  %v1107_v24 = vpack.c.bf16 %v78_v12, %v77_v11  ;;  %v1109_v26 = vpack.c.bf16 %v96_v21, %v95_v20 }
  0x15   :  { %v58_v17 = vld [vmem:[%s1766_s1 + $0x8] sm:$0xff]  ;;  %201 = vmatprep.mubr.f32.mxu0 %v50_v16  ;;  %v79_v27 = vld [vmem:[%s1763_s2 + $0x70] sm:$0xff]  ;;  %v80_v28 = vld [vmem:[%s1763_s2 + $0x78] sm:$0xff]  ;;  %v1141_v29 = vpack.c.bf16 %v129_v23, %v128_v22 }
  0x16   :  { %1100 = vmatpush3.bf16.msra.mxu0 %v1099_v62  ;;  %v111_v19 = vld [vmem:[%s1764_s4 + $0x68] sm:$0xff]  ;;  %296 = vmatprep.mubr.f32.mxu1 %v58_v17  ;;  %v112_v30 = vld [vmem:[%s1764_s4 + $0x70] sm:$0xff]  ;;  %v113_v31 = vld [vmem:[%s1764_s4 + $0x78] sm:$0xff]  ;;  %v1111_v36 = vpack.c.bf16 %v80_v28, %v79_v27 }
  0x17   :  { %1132 = vmatpush3.bf16.msra.mxu1 %v1131_v63  ;;  %1102 = vmatprep.subr.bf16.mxu0 %v1101_v0  ;;  %v1139_v25 = vpack.c.bf16 %v111_v19, %v110_v15  ;;  %v321_v32 = vld [vmem:[%s1767_s6] sm:$0xff]  ;;  %v322_v33 = vld [vmem:[%s1767_s6 + $0x8] sm:$0xff]  ;;  %v1143_v37 = vpack.c.bf16 %v113_v31, %v112_v30  ;;  %v323_v40 = vld [vmem:[%s1767_s6 + $0x10] sm:$0xff] }
  0x18   :  { %1134 = vmatprep.subr.bf16.mxu1 %v1133_v4  ;;  %v338_v34 = vld [vmem:[%s1768_s8] sm:$0xff]  ;;  %v339_v35 = vld [vmem:[%s1768_s8 + $0x8] sm:$0xff]  ;;  %v1145_v38 = vpack.c.bf16 %v322_v33, %v321_v32  ;;  %v324_v41 = vld [vmem:[%s1767_s6 + $0x18] sm:$0xff] }
  0x19   :  { %v1177_v39 = vpack.c.bf16 %v339_v35, %v338_v34  ;;  %v49_v42 = vld [vmem:[%s1765_s0] sm:$0xff]  ;;  %v340_v43 = vld [vmem:[%s1768_s8 + $0x10] sm:$0xff]  ;;  %v341_v44 = vld [vmem:[%s1768_s8 + $0x18] sm:$0xff]  ;;  %v1149_v48 = vpack.c.bf16 %v324_v41, %v323_v40 }
  0x1a   :  { %1104 = vmatpush3.bf16.msra.mxu0 %v1103_v10  ;;  %v57_v45 = vld [vmem:[%s1766_s1] sm:$0xff]  ;;  %v52_v46 = vld [vmem:[%s1765_s0 + $0x18] sm:$0xff]  ;;  %v1181_v49 = vpack.c.bf16 %v341_v44, %v340_v43  ;;  %v326_v51 = vld [vmem:[%s1767_s6 + $0x28] sm:$0xff] }
  0x1b   :  { %1136 = vmatpush3.bf16.msra.mxu1 %v1135_v13  ;;  %1106 = vmatprep.subr.bf16.mxu0 %v1105_v14  ;;  %v60_v47 = vld [vmem:[%s1766_s1 + $0x18] sm:$0xff]  ;;  %v325_v50 = vld [vmem:[%s1767_s6 + $0x20] sm:$0xff]  ;;  %v51_v52 = vld [vmem:[%s1765_s0 + $0x10] sm:$0xff] }
  0x1c   :  { %1138 = vmatprep.subr.bf16.mxu1 %v1137_v18  ;;  %v342_v53 = vld [vmem:[%s1768_s8 + $0x20] sm:$0xff]  ;;  %v343_v54 = vld [vmem:[%s1768_s8 + $0x28] sm:$0xff]  ;;  %v59_v55 = vld [vmem:[%s1766_s1 + $0x10] sm:$0xff]  ;;  %v1153_v58 = vpack.c.bf16 %v326_v51, %v325_v50 }
  0x1d   :  { %v54_v56 = vld [vmem:[%s1765_s0 + $0x28] sm:$0xff]  ;;  %v1185_v59 = vpack.c.bf16 %v343_v54, %v342_v53  ;;  %v327_v60 = vld [vmem:[%s1767_s6 + $0x30] sm:$0xff]  ;;  %v328_v61 = vld [vmem:[%s1767_s6 + $0x38] sm:$0xff] }
  0x1e   :  { %1108 = vmatpush3.bf16.msra.mxu0 %v1107_v24  ;;  %v62_v57 = vld [vmem:[%s1766_s1 + $0x28] sm:$0xff]  ;;  %v53_v62 = vld [vmem:[%s1765_s0 + $0x20] sm:$0xff]  ;;  %v344_v63 = vld [vmem:[%s1768_s8 + $0x30] sm:$0xff]  ;;  %v1157_v4 = vpack.c.bf16 %v328_v61, %v327_v60 }
  0x1f   :  { %1140 = vmatpush3.bf16.msra.mxu1 %v1139_v25  ;;  %1110 = vmatprep.subr.bf16.mxu0 %v1109_v26  ;;  %v345_v0 = vld [vmem:[%s1768_s8 + $0x38] sm:$0xff]  ;;  %v61_v1 = vld [vmem:[%s1766_s1 + $0x20] sm:$0xff]  ;;  %v330_v7 = vld [vmem:[%s1767_s6 + $0x48] sm:$0xff] }
  0x20   :  { %1142 = vmatprep.subr.bf16.mxu1 %v1141_v29  ;;  %v56_v2 = vld [vmem:[%s1765_s0 + $0x38] sm:$0xff]  ;;  %v1189_v5 = vpack.c.bf16 %v345_v0, %v344_v63  ;;  %v329_v6 = vld [vmem:[%s1767_s6 + $0x40] sm:$0xff]  ;;  %v55_v8 = vld [vmem:[%s1765_s0 + $0x30] sm:$0xff] }
  0x21   :  { %v64_v3 = vld [vmem:[%s1766_s1 + $0x38] sm:$0xff]  ;;  %v346_v9 = vld [vmem:[%s1768_s8 + $0x40] sm:$0xff]  ;;  %v347_v10 = vld [vmem:[%s1768_s8 + $0x48] sm:$0xff]  ;;  %v1161_v12 = vpack.c.bf16 %v330_v7, %v329_v6 }
  0x22   :  { %1112 = vmatpush3.bf16.msra.mxu0 %v1111_v36  ;;  %v63_v11 = vld [vmem:[%s1766_s1 + $0x30] sm:$0xff]  ;;  %v1193_v13 = vpack.c.bf16 %v347_v10, %v346_v9  ;;  %v332_v15 = vld [vmem:[%s1767_s6 + $0x58] sm:$0xff]  ;;  %v333_v20 = vld [vmem:[%s1767_s6 + $0x60] sm:$0xff] }
  0x23   :  { %1144 = vmatpush3.bf16.msra.mxu1 %v1143_v37  ;;  %1146 = vmatprep.subr.bf16.mxu0 %v1145_v38  ;;  %v331_v14 = vld [vmem:[%s1767_s6 + $0x50] sm:$0xff]  ;;  %v349_v18 = vld [vmem:[%s1768_s8 + $0x58] sm:$0xff]  ;;  %v334_v21 = vld [vmem:[%s1767_s6 + $0x68] sm:$0xff] }
  0x24   :  { %1178 = vmatprep.subr.bf16.mxu1 %v1177_v39  ;;  %v348_v16 = vld [vmem:[%s1768_s8 + $0x50] sm:$0xff]  ;;  %v1165_v17 = vpack.c.bf16 %v332_v15, %v331_v14  ;;  %v1169_v22 = vpack.c.bf16 %v334_v21, %v333_v20  ;;  %v350_v23 = vld [vmem:[%s1768_s8 + $0x60] sm:$0xff]  ;;  %v351_v24 = vld [vmem:[%s1768_s8 + $0x68] sm:$0xff] }
  0x25   :  { %202 = vmatmul.mubr.f32.vlgmr.msra.gmra.mrb[0].mxu0 %v49_v42  ;;  %v1197_v19 = vpack.c.bf16 %v349_v18, %v348_v16  ;;  %v1201_v25 = vpack.c.bf16 %v351_v24, %v350_v23  ;;  %v335_v26 = vld [vmem:[%s1767_s6 + $0x70] sm:$0xff]  ;;  %v336_v27 = vld [vmem:[%s1767_s6 + $0x78] sm:$0xff]  ;;  %v545_v32 = vld [vmem:[%s1769_s10] sm:$0xff] }
  0x26   :  { %297 = vmatmul.mubr.f32.vlgmr.msra.gmra.mrb[0].mxu1 %v57_v45  ;;  %206 = vmatprep.mubr.f32.mxu0 %v52_v46  ;;  %v352_v28 = vld [vmem:[%s1768_s8 + $0x70] sm:$0xff]  ;;  %v1173_v29 = vpack.c.bf16 %v336_v27, %v335_v26  ;;  %v353_v30 = vld [vmem:[%s1768_s8 + $0x78] sm:$0xff]  ;;  %v546_v33 = vld [vmem:[%s1769_s10 + $0x8] sm:$0xff] }
  0x27   :  { %301 = vmatprep.mubr.f32.mxu1 %v60_v47  ;;  %1148 = vmatpush3.bf16.msra.mxu0 %v1145_v38  ;;  %v1205_v31 = vpack.c.bf16 %v353_v30, %v352_v28  ;;  %v554_v34 = vld [vmem:[%s1770_s12] sm:$0xff]  ;;  %v1209_v35 = vpack.c.bf16 %v546_v33, %v545_v32  ;;  %v555_v36 = vld [vmem:[%s1770_s12 + $0x8] sm:$0xff]  ;;  %v556_v60 = vld [vmem:[%s1770_s12 + $0x10] sm:$0xff] }
  0x28   :  { %1180 = vmatpush3.bf16.msra.mxu1 %v1177_v39  ;;  %1150 = vmatprep.subr.bf16.mxu0 %v1149_v48  ;;  %v1225_v37 = vpack.c.bf16 %v555_v36, %v554_v34  ;;  %v795_v40 = vld [vmem:[%s1771_s3] ss:$0 sm:$0xff]  ;;  %v557_v61 = vld [vmem:[%s1770_s12 + $0x18] sm:$0xff]  ;;  %v550_v9 = vld [vmem:[%s1769_s10 + $0x28] sm:$0xff] }
  0x29   :  { %207 = vmatmul.mubr.f32.gmra.mrb[2].mxu0 %v51_v52  ;;  %1182 = vmatprep.subr.bf16.mxu1 %v1181_v49  ;;  %v796_v43 = vld [vmem:[%s1772_s5] ss:$0 sm:$0xff]  ;;  %v1229_v7 = vpack.c.bf16 %v557_v61, %v556_v60  ;;  %v551_v28 = vld [vmem:[%s1769_s10 + $0x30] sm:$0xff]  ;;  %v561_v32 = vld [vmem:[%s1770_s12 + $0x38] sm:$0xff] }
  0x2a   :  { %302 = vmatmul.mubr.f32.gmra.mrb[2].mxu1 %v59_v55  ;;  %211 = vmatprep.mubr.f32.mxu0 %v54_v56  ;;  %v547_v56 = vld [vmem:[%s1769_s10 + $0x10] sm:$0xff]  ;;  %v797_v34 = vld [vmem:[%s1773_s7] ss:$0 sm:$0xff] }
  0x2b   :  { %306 = vmatprep.mubr.f32.mxu1 %v62_v57  ;;  %1152 = vmatpush3.bf16.msra.mxu0 %v1149_v48  ;;  %v548_v57 = vld [vmem:[%s1769_s10 + $0x18] sm:$0xff]  ;;  %v799_v60 = vld [vmem:[%s1775_s11] ss:$0 sm:$0xff] }
  0x2c   :  { %1184 = vmatpush3.bf16.msra.mxu1 %v1181_v49  ;;  %1154 = vmatprep.subr.bf16.mxu0 %v1153_v58  ;;  %v804_v61 = vld [vmem:[%s1776_s13] ss:$0 sm:$0xff] }
  0x2d   :  { %212 = vmatmul.mubr.f32.gmra.mrb[4].mxu0 %v53_v62  ;;  %1186 = vmatprep.subr.bf16.mxu1 %v1185_v59 }
  0x2e   :  { %307 = vmatmul.mubr.f32.gmra.mrb[4].mxu1 %v61_v1  ;;  %216 = vmatprep.mubr.f32.mxu0 %v56_v2 }
  0x2f   :  { %311 = vmatprep.mubr.f32.mxu1 %v64_v3  ;;  %1156 = vmatpush3.bf16.msra.mxu0 %v1153_v58 }
  0x30   :  { %1188 = vmatpush3.bf16.msra.mxu1 %v1185_v59  ;;  %1158 = vmatprep.subr.bf16.mxu0 %v1157_v4 }
  0x31   :  { %217 = vmatmul.mubr.f32.gmra.mrb[6].mxu0 %v55_v8  ;;  %1190 = vmatprep.subr.bf16.mxu1 %v1189_v5  ;;  %v549_v8 = vld [vmem:[%s1769_s10 + $0x20] sm:$0xff] }
  0x32   :  { %312 = vmatmul.mubr.f32.gmra.mrb[6].mxu1 %v63_v11  ;;  %v1217_v20 = vpack.c.bf16 %v550_v9, %v549_v8 }
  0x33   :  { %1160 = vmatpush3.bf16.msra.mxu0 %v1157_v4  ;;  %v1213_v4 = vpack.c.bf16 %v548_v57, %v547_v56 }
  0x34   :  { %1192 = vmatpush3.bf16.msra.mxu1 %v1189_v5  ;;  %1162 = vmatprep.subr.bf16.mxu0 %v1161_v12 }
  0x35   :  { %1194 = vmatprep.subr.bf16.mxu1 %v1193_v13 }
  0x37   :  { %1164 = vmatpush3.bf16.msra.mxu0 %v1161_v12  ;;  %v558_v12 = vld [vmem:[%s1770_s12 + $0x20] sm:$0xff] }
  0x38   :  { %1196 = vmatpush3.bf16.msra.mxu1 %v1193_v13  ;;  %1166 = vmatprep.subr.bf16.mxu0 %v1165_v17  ;;  %v559_v13 = vld [vmem:[%s1770_s12 + $0x28] sm:$0xff] }
  0x39   :  { %1198 = vmatprep.subr.bf16.mxu1 %v1197_v19  ;;  %v1233_v23 = vpack.c.bf16 %v559_v13, %v558_v12 }
  0x3b   :  { %1168 = vmatpush3.bf16.msra.mxu0 %v1165_v17 }
  0x3c   :  { %1200 = vmatpush3.bf16.msra.mxu1 %v1197_v19  ;;  %1170 = vmatprep.subr.bf16.mxu0 %v1169_v22 }
  0x3d   :  { %1202 = vmatprep.subr.bf16.mxu1 %v1201_v25 }
  0x3f   :  { %1172 = vmatpush3.bf16.msra.mxu0 %v1169_v22 }
  0x40   :  { %1204 = vmatpush3.bf16.msra.mxu1 %v1201_v25  ;;  %1174 = vmatprep.subr.bf16.mxu0 %v1173_v29 }
  0x41   :  { %1206 = vmatprep.subr.bf16.mxu1 %v1205_v31 }
  0x43   :  { %1176 = vmatpush3.bf16.msra.mxu0 %v1173_v29  ;;  %v552_v29 = vld [vmem:[%s1769_s10 + $0x38] sm:$0xff] }
  0x44   :  { %1208 = vmatpush3.bf16.msra.mxu1 %v1205_v31  ;;  %1210 = vmatprep.subr.bf16.mxu0 %v1209_v35  ;;  %v1221_v30 = vpack.c.bf16 %v552_v29, %v551_v28  ;;  %v560_v31 = vld [vmem:[%s1770_s12 + $0x30] sm:$0xff] }
  0x45   :  { %1226 = vmatprep.subr.bf16.mxu1 %v1225_v37  ;;  %v1237_v33 = vpack.c.bf16 %v561_v32, %v560_v31 }
  0xf8   :  { %v841_v38 = vpop.f32.mrb[0].mxu0 }
  0xf9   :  { %v885_v39 = vpop.f32.mrb[0].mxu1  ;;  %v842_v41 = vpop.f32.mrb[1].mxu0 }
  0xfa   :  { %v843_v42 = vadd.f32 %v842_v41, %v841_v38  ;;  %v886_v44 = vpop.f32.mrb[1].mxu1 }
  0xfb   :  { %v887_v45 = vadd.f32 %v886_v44, %v885_v39 }
  0xfc   :  { %v204_v46 = vadd.f32 %v843_v42, %v795_v40  ;;  %v844_v47 = vpop.f32.mrb[2].mxu0 }
  0xfd   :  { %v299_v48 = vadd.f32 %v887_v45, %v796_v43  ;;  %v888_v49 = vpop.f32.mrb[2].mxu1  ;;  %v845_v50 = vpop.f32.mrb[3].mxu0 }
  0xfe   :  { %v222_v51 = vmax.f32 %v204_v46, 0.0  ;;  %v846_v52 = vadd.f32 %v845_v50, %v844_v47  ;;  %v889_v53 = vpop.f32.mrb[3].mxu1 }
  0xff   :  { %v317_v54 = vmax.f32 %v299_v48, 0.0  ;;  %v890_v55 = vadd.f32 %v889_v53, %v888_v49 }
 0x100   :  { %v209_v58 = vadd.f32 %v846_v52, %v795_v40  ;;  %v847_v59 = vpop.f32.mrb[4].mxu0  ;;  %993 = vmatprep.mubr.f32.mxu0 %v222_v51 }
 0x101   :  { %v304_v62 = vadd.f32 %v890_v55, %v796_v43  ;;  %v891_v63 = vpop.f32.mrb[4].mxu1  ;;  %1031 = vmatprep.mubr.f32.mxu1 %v317_v54  ;;  %v848_v0 = vpop.f32.mrb[5].mxu0 }
 0x102   :  { %v223_v1 = vmax.f32 %v209_v58, 0.0  ;;  %v849_v2 = vadd.f32 %v848_v0, %v847_v59  ;;  %v892_v3 = vpop.f32.mrb[5].mxu1 }
 0x103   :  { %v318_v5 = vmax.f32 %v304_v62, 0.0  ;;  %v893_v6 = vadd.f32 %v892_v3, %v891_v63 }
 0x104   :  { %v214_v10 = vadd.f32 %v849_v2, %v795_v40  ;;  %v850_v11 = vpop.f32.mrb[6].mxu0  ;;  %994 = vmatmul.mubr.f32.vlgmr.msra.gmra.mrb[8].mxu0 %v223_v1 }
 0x105   :  { %v309_v14 = vadd.f32 %v893_v6, %v796_v43  ;;  %v894_v15 = vpop.f32.mrb[6].mxu1  ;;  %1032 = vmatmul.mubr.f32.vlgmr.msra.gmra.mrb[8].mxu1 %v318_v5  ;;  %v851_v16 = vpop.f32.mrb[7].mxu0  ;;  %1212 = vmatpush3.bf16.msra.mxu0 %v1209_v35  ;;  %v798_v35 = vld [vmem:[%s1774_s9] ss:$0 sm:$0xff] }
 0x106   :  { %v224_v17 = vmax.f32 %v214_v10, 0.0  ;;  %v852_v18 = vadd.f32 %v851_v16, %v850_v11  ;;  %v895_v19 = vpop.f32.mrb[7].mxu1  ;;  %1228 = vmatpush3.bf16.msra.mxu1 %v1225_v37  ;;  %1214 = vmatprep.subr.bf16.mxu0 %v1213_v4 }
 0x107   :  { %v319_v21 = vmax.f32 %v309_v14, 0.0  ;;  %v896_v22 = vadd.f32 %v895_v19, %v894_v15  ;;  %1230 = vmatprep.subr.bf16.mxu1 %v1229_v7 }
 0x108   :  { %v219_v24 = vadd.f32 %v852_v18, %v795_v40  ;;  %996 = vmatprep.mubr.f32.mxu0 %v224_v17 }
 0x109   :  { %v314_v25 = vadd.f32 %v896_v22, %v796_v43  ;;  %1034 = vmatprep.mubr.f32.mxu1 %v319_v21  ;;  %1216 = vmatpush3.bf16.msra.mxu0 %v1213_v4 }
 0x10a   :  { %v225_v26 = vmax.f32 %v219_v24, 0.0  ;;  %1232 = vmatpush3.bf16.msra.mxu1 %v1229_v7  ;;  %1218 = vmatprep.subr.bf16.mxu0 %v1217_v20 }
 0x10b   :  { %v320_v27 = vmax.f32 %v314_v25, 0.0  ;;  %1234 = vmatprep.subr.bf16.mxu1 %v1233_v23 }
 0x10c   :  { %997 = vmatmul.mubr.f32.gmra.mrb[10].mxu0 %v225_v26 }
 0x10d   :  { %1035 = vmatmul.mubr.f32.gmra.mrb[10].mxu1 %v320_v27  ;;  %1220 = vmatpush3.bf16.msra.mxu0 %v1217_v20 }
 0x10e   :  { %1236 = vmatpush3.bf16.msra.mxu1 %v1233_v23  ;;  %1222 = vmatprep.subr.bf16.mxu0 %v1221_v30 }
 0x10f   :  { %1238 = vmatprep.subr.bf16.mxu1 %v1237_v33 }
 0x111   :  { %1224 = vmatpush3.bf16.msra.mxu0 %v1221_v30 }
 0x112   :  { %1240 = vmatpush3.bf16.msra.mxu1 %v1237_v33 }
 0x1d7   :  { %v995_v36 = vpop.f32.mrb[8].mxu0 }
 0x1d8   :  { %v433_v37 = vadd.f32 %v995_v36, %v797_v34  ;;  %v1033_v38 = vpop.f32.mrb[8].mxu1  ;;  %v427_v39 = vpop.f32.mrb[9].mxu0 }
 0x1d9   :  { %v528_v40 = vadd.f32 %v1033_v38, %v798_v35  ;;  %v428_v41 = vadd.f32 %v797_v34, %v427_v39  ;;  %v522_v42 = vpop.f32.mrb[9].mxu1 }
 0x1da   :  { %v523_v43 = vadd.f32 %v798_v35, %v522_v42  ;;  %v447_v45 = vmax.f32 %v433_v37, 0.0 }
 0x1db   :  { %v446_v44 = vmax.f32 %v428_v41, 0.0  ;;  %v542_v47 = vmax.f32 %v528_v40, 0.0 }
 0x1dc   :  { %v541_v46 = vmax.f32 %v523_v43, 0.0 }
 0x1dd   :  { %1053 = vmatprep.mubr.msk.f32.mxu0 %vm569_vm0, %v446_v44 }
 0x1de   :  { %1075 = vmatprep.mubr.msk.f32.mxu1 %vm569_vm0, %v541_v46  ;;  %1054 = vmatmul.mubr.msk.f32.vlgmr.msra.gmra.mrb[12].mxu0 %vm569_vm0, %v447_v45 }
 0x1df   :  { %1076 = vmatmul.mubr.msk.f32.vlgmr.msra.gmra.mrb[12].mxu1 %vm569_vm0, %v542_v47  ;;  %v998_v48 = vpop.f32.mrb[10].mxu0 }
 0x1e0   :  { %v443_v49 = vadd.f32 %v998_v48, %v797_v34  ;;  %v1036_v50 = vpop.f32.mrb[10].mxu1  ;;  %v437_v51 = vpop.f32.mrb[11].mxu0 }
 0x1e1   :  { %v538_v52 = vadd.f32 %v1036_v50, %v798_v35  ;;  %v438_v53 = vadd.f32 %v797_v34, %v437_v51  ;;  %v532_v54 = vpop.f32.mrb[11].mxu1 }
 0x1e2   :  { %v533_v55 = vadd.f32 %v798_v35, %v532_v54  ;;  %v449_v57 = vmax.f32 %v443_v49, 0.0 }
 0x1e3   :  { %v448_v56 = vmax.f32 %v438_v53, 0.0  ;;  %v544_v59 = vmax.f32 %v538_v52, 0.0 }
 0x1e4   :  { %v543_v58 = vmax.f32 %v533_v55, 0.0 }
 0x1e5   :  { %1056 = vmatprep.mubr.msk.f32.mxu0 %vm569_vm0, %v448_v56 }
 0x1e6   :  { %1078 = vmatprep.mubr.msk.f32.mxu1 %vm569_vm0, %v543_v58  ;;  %1057 = vmatmul.mubr.msk.f32.gmra.mrb[14].mxu0 %vm569_vm0, %v449_v57 }
 0x1e7   :  { %1079 = vmatmul.mubr.msk.f32.gmra.mrb[14].mxu1 %vm569_vm0, %v544_v59 }
 0x2b1   :  { %v1055_v62 = vpop.f32.mrb[12].mxu0 }
 0x2b2   :  { %v654_v63 = vadd.f32 %v1055_v62, %v799_v60  ;;  %v1077_v0 = vpop.f32.mrb[12].mxu1  ;;  %v648_v1 = vpop.f32.mrb[13].mxu0 }
 0x2b3   :  { %v761_v2 = vadd.f32 %v1077_v0, %v804_v61  ;;  %v649_v3 = vadd.f32 %v799_v60, %v648_v1  ;;  %v755_v4 = vpop.f32.mrb[13].mxu1 }
 0x2b4   :  { %v668_v5 = vmax.f32 %v654_v63, 0.0  ;;  %v756_v6 = vadd.f32 %v804_v61, %v755_v4 }
 0x2b5   :  { %v775_v7 = vmax.f32 %v761_v2, 0.0  ;;  %v667_v8 = vmax.f32 %v649_v3, 0.0 }
 0x2b6   :  { %780 = vst.msk [vmem:[%s1777_s14 + $0x8] sm:$0xff] %vm778_vm1, %v668_v5  ;;  %v774_v9 = vmax.f32 %v756_v6, 0.0 }
 0x2b7   :  { %784 = vst.msk [vmem:[%s1778_s15 + $0x8] sm:$0xff] %vm778_vm1, %v775_v7  ;;  %779 = vst.msk [vmem:[%s1777_s14] sm:$0xff] %vm778_vm1, %v667_v8 }
 0x2b8   :  { %783 = vst.msk [vmem:[%s1778_s15] sm:$0xff] %vm778_vm1, %v774_v9 }
 0x2b9   :  { %v1058_v10 = vpop.f32.mrb[14].mxu0 }
 0x2ba   :  { %v664_v11 = vadd.f32 %v1058_v10, %v799_v60  ;;  %v1080_v12 = vpop.f32.mrb[14].mxu1  ;;  %v658_v13 = vpop.f32.mrb[15].mxu0 }
 0x2bb   :  { %v771_v14 = vadd.f32 %v1080_v12, %v804_v61  ;;  %v659_v15 = vadd.f32 %v799_v60, %v658_v13  ;;  %v765_v16 = vpop.f32.mrb[15].mxu1 }
 0x2bc   :  { %v670_v17 = vmax.f32 %v664_v11, 0.0  ;;  %v766_v18 = vadd.f32 %v804_v61, %v765_v16 }
 0x2bd   :  { %v777_v19 = vmax.f32 %v771_v14, 0.0  ;;  %v669_v20 = vmax.f32 %v659_v15, 0.0 }
 0x2be   :  { %782 = vst.msk [vmem:[%s1777_s14 + $0x18] sm:$0xff] %vm778_vm1, %v670_v17  ;;  %v776_v21 = vmax.f32 %v766_v18, 0.0 }
 0x2bf   :  { %786 = vst.msk [vmem:[%s1778_s15 + $0x18] sm:$0xff] %vm778_vm1, %v777_v19  ;;  %781 = vst.msk [vmem:[%s1777_s14 + $0x10] sm:$0xff] %vm778_vm1, %v669_v20 }
 0x2c0   :  { %785 = vst.msk [vmem:[%s1778_s15 + $0x10] sm:$0xff] %vm778_vm1, %v776_v21 }

// kernel: gnn_forward.6
= control target key start
LH: loop header
LB: loop body
LE: loop exit
PB: predicated region body
PF: predicated region fallthrough
CT: control target
= control target key end

     0   :  { %13 = vsyncpa [#allocation3], 0  ;;  %s3472_s0 = inlined_call_operand.vmem [shape: f32[512,16], index: 0, kind: input, shape index: {}]   ;;  %s3473_s1 = inlined_call_operand.vmem [shape: f32[512,16], index: 1, kind: input, shape index: {}]   ;;  %s3474_s2 = inlined_call_operand.hbm [shape: f32[16,32], index: 2, kind: input, shape index: {}]   ;;  %s3475_s3 = inlined_call_operand.hbm [shape: f32[1,32], index: 3, kind: input, shape index: {}]   ;;  %s3476_s4 = inlined_call_operand.hbm [shape: f32[16,32], index: 4, kind: input, shape index: {}]   ;;  %s3477_s5 = inlined_call_operand.hbm [shape: f32[1,32], index: 5, kind: input, shape index: {}]   ;;  %s3478_s6 = inlined_call_operand.vmem [shape: f32[512,32], index: 6, kind: output, shape index: {0}]   ;;  %s3479_s7 = inlined_call_operand.vmem [shape: f32[512,32], index: 7, kind: output, shape index: {1}]  }
   0x1   :  { %14 = vsyncpa [#allocation5], 0 }
   0x2   :  { %15 = vsyncpa [#allocation8], 0  ;;  %s2215_s24 = smov [#allocation4]   ;;  %s2216_s26 = smov [#allocation2]  }
   0x3   :  { %s38_s25 = sshll.u32 %s2215_s24, 4  ;;  %s25_s27 = sshll.u32 %s2216_s26, 4  ;;  %s39_s25 = int_to_ptr.vmem [resolvable:$true] %s38_s25  ;;  %s2261_s27 = int_to_ptr.vmem [resolvable:$true] %s25_s27 }
   0x4   :  { %s2121_s30 = scalar_lea.hbm %s3475_s3, 16 }
   0x5   :  { %p2122_p0 = scmp.ne.s32.totalorder %s3475_s3, %s2121_s30  ;;  %p2125_p1 = scmp.lt.u32.totalorder %s2121_s30, %s3475_s3 }
   0x7   :  { %p2127_p2 = pnand %p2125_p1, %p2122_p0 }
   0x9   :  { %2130 = shalt.err (!%p2127_p2)
}
   0xa   :  { %s2131_s12 = scalar_lea.vmem %s39_s25, 16  ;;  %s2135_s13 = scalar_lea.vmem %s39_s25, 32 }
   0xb   :  { %p2132_p3 = scmp.ne.s32.totalorder %s39_s25, %s2131_s12  ;;  %p2136_p4 = scmp.lt.s32.totalorder %s39_s25, %s39_s25 }
   0xc   :  { %p2137_p5 = scmp.lt.s32.totalorder %s2135_s13, %s2131_s12 }
   0xe   :  { %p2138_p6 = por %p2137_p5, %p2136_p4 }
  0x10   :  { %p2139_p7 = pnand %p2138_p6, %p2132_p3 }
  0x12   :  { %2142 = shalt.err (!%p2139_p7)
}
  0x13   :  { %41 = dma.hbm_to_vmem [thread:$0]  %s3475_s3, 16, %s39_s25, [#allocation5]  }
  0x14   :  { %s2143_s18 = scalar_lea.hbm %s3474_s2, 256 }
  0x15   :  { %p2144_p8 = scmp.ne.s32.totalorder %s3474_s2, %s2143_s18  ;;  %p2147_p9 = scmp.lt.u32.totalorder %s2143_s18, %s3474_s2 }
  0x17   :  { %p2149_p10 = pnand %p2147_p9, %p2144_p8 }
  0x19   :  { %2152 = shalt.err (!%p2149_p10)
}
  0x1a   :  { %s2153_s23 = scalar_lea.vmem %s2261_s27, 256  ;;  %p2158_p12 = scmp.lt.s32.totalorder %s2261_s27, %s2261_s27 }
  0x1b   :  { %p2154_p11 = scmp.ne.s32.totalorder %s2261_s27, %s2153_s23  ;;  %p2159_p13 = scmp.lt.s32.totalorder %s2153_s23, %s2153_s23 }
  0x1d   :  { %p2160_p0 = por %p2159_p13, %p2158_p12 }
  0x1f   :  { %p2161_p1 = pnand %p2160_p0, %p2154_p11 }
  0x21   :  { %2164 = shalt.err (!%p2161_p1)
}
  0x22   :  { %s2217_s3 = smov 128   ;;  %s2218_s24 = smov 8  }
  0x23   :  { %31 = dma.hbm_to_vmem [thread:$0]  %s3474_s2, 256, %s2261_s27, [#allocation3], %s2217_s3, %s2217_s3, %s2218_s24  }
  0x24   :  { %s2219_s28 = smov [#allocation6]   ;;  %s2220_s30 = smov [#allocation7]  }
  0x25   :  { %s47_s29 = sshll.u32 %s2219_s28, 4  ;;  %s60_s8 = sshll.u32 %s2220_s30, 4  ;;  %s48_s29 = int_to_ptr.vmem [resolvable:$true] %s47_s29  ;;  %s61_s8 = int_to_ptr.vmem [resolvable:$true] %s60_s8 }
  0x26   :  { %s2165_s11 = scalar_lea.hbm %s3476_s4, 256 }
  0x27   :  { %p2166_p2 = scmp.ne.s32.totalorder %s3476_s4, %s2165_s11  ;;  %p2169_p3 = scmp.lt.u32.totalorder %s2165_s11, %s3476_s4 }
  0x29   :  { %p2171_p4 = pnand %p2169_p3, %p2166_p2 }
  0x2b   :  { %2174 = shalt.err (!%p2171_p4)
}
  0x2c   :  { %s2175_s2 = scalar_lea.vmem %s48_s29, 256  ;;  %p2180_p6 = scmp.lt.s32.totalorder %s48_s29, %s48_s29 }
  0x2d   :  { %p2176_p5 = scmp.ne.s32.totalorder %s48_s29, %s2175_s2  ;;  %p2181_p7 = scmp.lt.s32.totalorder %s2175_s2, %s2175_s2 }
  0x2f   :  { %p2182_p8 = por %p2181_p7, %p2180_p6 }
  0x31   :  { %p2183_p9 = pnand %p2182_p8, %p2176_p5 }
  0x33   :  { %2186 = shalt.err (!%p2183_p9)
}
  0x34   :  { %53 = dma.hbm_to_vmem [thread:$0]  %s3476_s4, 256, %s48_s29, [#allocation5], %s2217_s3, %s2217_s3, %s2218_s24  }
  0x35   :  { %s2187_s19 = scalar_lea.hbm %s3477_s5, 16 }
  0x36   :  { %p2188_p10 = scmp.ne.s32.totalorder %s3477_s5, %s2187_s19  ;;  %p2191_p11 = scmp.lt.u32.totalorder %s2187_s19, %s3477_s5 }
  0x38   :  { %p2193_p12 = pnand %p2191_p11, %p2188_p10 }
  0x3a   :  { %2196 = shalt.err (!%p2193_p12)
}
  0x3b   :  { %s2197_s25 = scalar_lea.vmem %s61_s8, 16  ;;  %s2201_s26 = scalar_lea.vmem %s61_s8, 32 }
  0x3c   :  { %p2198_p13 = scmp.ne.s32.totalorder %s61_s8, %s2197_s25  ;;  %p2202_p0 = scmp.lt.s32.totalorder %s61_s8, %s61_s8 }
  0x3d   :  { %p2203_p1 = scmp.lt.s32.totalorder %s2201_s26, %s2197_s25 }
  0x3f   :  { %p2204_p2 = por %p2203_p1, %p2202_p0 }
  0x41   :  { %p2205_p3 = pnand %p2204_p2, %p2198_p13 }
  0x43   :  { %2208 = shalt.err (!%p2205_p3)
}
  0x44   :  { %63 = dma.hbm_to_vmem [thread:$0]  %s3477_s5, 16, %s61_s8, [#allocation8]  }
  0x45   :  { %2209 = dma.done.wait [#allocation3], 256  }
  0x46   :  { %2210 = vsyncadd [#allocation3], 4294967040 }
  0x47   :  { %2211 = dma.done.wait [#allocation5], 272  }
  0x48   :  { %2212 = vsyncadd [#allocation5], 4294967024 }
  0x49   :  { %2213 = dma.done.wait [#allocation8], 16  }
  0x4a   :  { %2214 = vsyncadd [#allocation8], 4294967280  ;;  %vm216_vm0 = vcmask 130048   ;;  %v204_v0 = vld [vmem:[#allocation2] sm:$0xff]  ;;  %v205_v1 = vld [vmem:[#allocation2 + $0x8] sm:$0xff]  ;;  %vm1505_vm1 = vcmask 261120  }
  0x4b   :  { %v207_v2 = vld [vmem:[#allocation6] sm:$0xff]  ;;  %v2107_v3 = vpack.c.bf16 %v205_v1, %v204_v0  ;;  %v208_v4 = vld [vmem:[#allocation6 + $0x8] sm:$0xff]  ;;  %v77_v8 = vld [vmem:[%s3472_s0 + $0x8] sm:$0xff] }
  0x4c   :  { %v76_v5 = vld [vmem:[%s3472_s0] sm:$0xff]  ;;  %v2111_v7 = vpack.c.bf16 %v208_v4, %v207_v2  ;;  %v141_v9 = vld [vmem:[%s3473_s1 + $0x8] sm:$0xff]  ;;  %v78_v10 = vld [vmem:[%s3472_s0 + $0x10] sm:$0xff] }
  0x4d   :  { %v140_v6 = vld [vmem:[%s3473_s1] sm:$0xff]  ;;  %1911 = vmatprep.mubr.msk.f32.mxu0 %vm216_vm0, %v76_v5  ;;  %2108 = vmatprep.subr.bf16.mxu0 %v2107_v3  ;;  %v142_v11 = vld [vmem:[%s3473_s1 + $0x10] sm:$0xff]  ;;  %v79_v12 = vld [vmem:[%s3472_s0 + $0x18] sm:$0xff] }
  0x4e   :  { %2011 = vmatprep.mubr.msk.f32.mxu1 %vm216_vm0, %v140_v6  ;;  %2112 = vmatprep.subr.bf16.mxu1 %v2111_v7  ;;  %v143_v13 = vld [vmem:[%s3473_s1 + $0x18] sm:$0xff]  ;;  %v80_v14 = vld [vmem:[%s3472_s0 + $0x20] sm:$0xff]  ;;  %v81_v16 = vld [vmem:[%s3472_s0 + $0x28] sm:$0xff] }
  0x4f   :  { %2110 = vmatpush3.bf16.msra.mxu0 %v2107_v3  ;;  %2114 = vmatpush3.bf16.msra.mxu1 %v2111_v7  ;;  %v144_v15 = vld [vmem:[%s3473_s1 + $0x20] sm:$0xff]  ;;  %v145_v17 = vld [vmem:[%s3473_s1 + $0x28] sm:$0xff]  ;;  %v82_v18 = vld [vmem:[%s3472_s0 + $0x30] sm:$0xff] }
  0x50   :  { %v146_v19 = vld [vmem:[%s3473_s1 + $0x30] sm:$0xff]  ;;  %v83_v20 = vld [vmem:[%s3472_s0 + $0x38] sm:$0xff]  ;;  %v84_v22 = vld [vmem:[%s3472_s0 + $0x40] sm:$0xff] }
  0x51   :  { %v147_v21 = vld [vmem:[%s3473_s1 + $0x38] sm:$0xff]  ;;  %v148_v23 = vld [vmem:[%s3473_s1 + $0x40] sm:$0xff]  ;;  %v85_v24 = vld [vmem:[%s3472_s0 + $0x48] sm:$0xff] }
  0x52   :  { %1912 = vmatmul.mubr.msk.f32.vlgmr.msra.gmra.mrb[0].mxu0 %vm216_vm0, %v77_v8  ;;  %2012 = vmatmul.mubr.msk.f32.vlgmr.msra.gmra.mrb[0].mxu1 %vm216_vm0, %v141_v9  ;;  %v149_v25 = vld [vmem:[%s3473_s1 + $0x48] sm:$0xff]  ;;  %v86_v26 = vld [vmem:[%s3472_s0 + $0x50] sm:$0xff]  ;;  %v87_v28 = vld [vmem:[%s3472_s0 + $0x58] sm:$0xff] }
  0x53   :  { %1914 = vmatprep.mubr.msk.f32.mxu0 %vm216_vm0, %v78_v10  ;;  %2014 = vmatprep.mubr.msk.f32.mxu1 %vm216_vm0, %v142_v11  ;;  %v150_v27 = vld [vmem:[%s3473_s1 + $0x50] sm:$0xff]  ;;  %v151_v29 = vld [vmem:[%s3473_s1 + $0x58] sm:$0xff]  ;;  %v88_v30 = vld [vmem:[%s3472_s0 + $0x60] sm:$0xff] }
  0x54   :  { %v152_v31 = vld [vmem:[%s3473_s1 + $0x60] sm:$0xff]  ;;  %v89_v32 = vld [vmem:[%s3472_s0 + $0x68] sm:$0xff]  ;;  %v90_v34 = vld [vmem:[%s3472_s0 + $0x70] sm:$0xff] }
  0x55   :  { %v153_v33 = vld [vmem:[%s3473_s1 + $0x68] sm:$0xff]  ;;  %v154_v35 = vld [vmem:[%s3473_s1 + $0x70] sm:$0xff]  ;;  %v91_v36 = vld [vmem:[%s3472_s0 + $0x78] sm:$0xff] }
  0x56   :  { %1915 = vmatmul.mubr.msk.f32.gmra.mrb[2].mxu0 %vm216_vm0, %v79_v12  ;;  %2015 = vmatmul.mubr.msk.f32.gmra.mrb[2].mxu1 %vm216_vm0, %v143_v13  ;;  %v155_v37 = vld [vmem:[%s3473_s1 + $0x78] sm:$0xff]  ;;  %v92_v38 = vld [vmem:[%s3472_s0 + $0x80] sm:$0xff]  ;;  %v93_v40 = vld [vmem:[%s3472_s0 + $0x88] sm:$0xff] }
  0x57   :  { %1917 = vmatprep.mubr.msk.f32.mxu0 %vm216_vm0, %v80_v14  ;;  %2017 = vmatprep.mubr.msk.f32.mxu1 %vm216_vm0, %v144_v15  ;;  %v156_v39 = vld [vmem:[%s3473_s1 + $0x80] sm:$0xff]  ;;  %v157_v41 = vld [vmem:[%s3473_s1 + $0x88] sm:$0xff]  ;;  %v94_v42 = vld [vmem:[%s3472_s0 + $0x90] sm:$0xff] }
  0x58   :  { %v158_v43 = vld [vmem:[%s3473_s1 + $0x90] sm:$0xff]  ;;  %v95_v44 = vld [vmem:[%s3472_s0 + $0x98] sm:$0xff]  ;;  %v96_v46 = vld [vmem:[%s3472_s0 + $0xa0] sm:$0xff] }
  0x59   :  { %v159_v45 = vld [vmem:[%s3473_s1 + $0x98] sm:$0xff]  ;;  %v160_v47 = vld [vmem:[%s3473_s1 + $0xa0] sm:$0xff]  ;;  %v97_v48 = vld [vmem:[%s3472_s0 + $0xa8] sm:$0xff] }
  0x5a   :  { %1918 = vmatmul.mubr.msk.f32.gmra.mrb[4].mxu0 %vm216_vm0, %v81_v16  ;;  %2018 = vmatmul.mubr.msk.f32.gmra.mrb[4].mxu1 %vm216_vm0, %v145_v17  ;;  %v161_v49 = vld [vmem:[%s3473_s1 + $0xa8] sm:$0xff]  ;;  %v98_v50 = vld [vmem:[%s3472_s0 + $0xb0] sm:$0xff]  ;;  %v99_v52 = vld [vmem:[%s3472_s0 + $0xb8] sm:$0xff] }
  0x5b   :  { %1920 = vmatprep.mubr.msk.f32.mxu0 %vm216_vm0, %v82_v18  ;;  %2020 = vmatprep.mubr.msk.f32.mxu1 %vm216_vm0, %v146_v19  ;;  %v162_v51 = vld [vmem:[%s3473_s1 + $0xb0] sm:$0xff]  ;;  %v163_v53 = vld [vmem:[%s3473_s1 + $0xb8] sm:$0xff]  ;;  %v100_v54 = vld [vmem:[%s3472_s0 + $0xc0] sm:$0xff] }
  0x5c   :  { %v164_v55 = vld [vmem:[%s3473_s1 + $0xc0] sm:$0xff]  ;;  %v101_v56 = vld [vmem:[%s3472_s0 + $0xc8] sm:$0xff]  ;;  %v102_v58 = vld [vmem:[%s3472_s0 + $0xd0] sm:$0xff] }
  0x5d   :  { %v165_v57 = vld [vmem:[%s3473_s1 + $0xc8] sm:$0xff]  ;;  %v166_v59 = vld [vmem:[%s3473_s1 + $0xd0] sm:$0xff]  ;;  %v103_v60 = vld [vmem:[%s3472_s0 + $0xd8] sm:$0xff] }
  0x5e   :  { %1921 = vmatmul.mubr.msk.f32.gmra.mrb[6].mxu0 %vm216_vm0, %v83_v20  ;;  %2021 = vmatmul.mubr.msk.f32.gmra.mrb[6].mxu1 %vm216_vm0, %v147_v21  ;;  %v167_v61 = vld [vmem:[%s3473_s1 + $0xd8] sm:$0xff]  ;;  %v104_v62 = vld [vmem:[%s3472_s0 + $0xe0] sm:$0xff]  ;;  %v105_v0 = vld [vmem:[%s3472_s0 + $0xe8] sm:$0xff] }
  0x5f   :  { %1923 = vmatprep.mubr.msk.f32.mxu0 %vm216_vm0, %v84_v22  ;;  %2023 = vmatprep.mubr.msk.f32.mxu1 %vm216_vm0, %v148_v23  ;;  %v168_v63 = vld [vmem:[%s3473_s1 + $0xe0] sm:$0xff]  ;;  %v169_v1 = vld [vmem:[%s3473_s1 + $0xe8] sm:$0xff]  ;;  %v106_v2 = vld [vmem:[%s3472_s0 + $0xf0] sm:$0xff] }
  0x60   :  { %v170_v3 = vld [vmem:[%s3473_s1 + $0xf0] sm:$0xff]  ;;  %v107_v4 = vld [vmem:[%s3472_s0 + $0xf8] sm:$0xff]  ;;  %v108_v6 = vld [vmem:[%s3472_s0 + $0x100] sm:$0xff] }
  0x61   :  { %v171_v5 = vld [vmem:[%s3473_s1 + $0xf8] sm:$0xff]  ;;  %v172_v7 = vld [vmem:[%s3473_s1 + $0x100] sm:$0xff]  ;;  %v109_v8 = vld [vmem:[%s3472_s0 + $0x108] sm:$0xff] }
  0x62   :  { %1924 = vmatmul.mubr.msk.f32.gmra.mrb[8].mxu0 %vm216_vm0, %v85_v24  ;;  %2024 = vmatmul.mubr.msk.f32.gmra.mrb[8].mxu1 %vm216_vm0, %v149_v25  ;;  %v173_v9 = vld [vmem:[%s3473_s1 + $0x108] sm:$0xff]  ;;  %v110_v10 = vld [vmem:[%s3472_s0 + $0x110] sm:$0xff]  ;;  %v111_v12 = vld [vmem:[%s3472_s0 + $0x118] sm:$0xff] }
  0x63   :  { %1926 = vmatprep.mubr.msk.f32.mxu0 %vm216_vm0, %v86_v26  ;;  %2026 = vmatprep.mubr.msk.f32.mxu1 %vm216_vm0, %v150_v27  ;;  %v174_v11 = vld [vmem:[%s3473_s1 + $0x110] sm:$0xff]  ;;  %v175_v13 = vld [vmem:[%s3473_s1 + $0x118] sm:$0xff]  ;;  %v112_v14 = vld [vmem:[%s3472_s0 + $0x120] sm:$0xff] }
  0x64   :  { %v176_v15 = vld [vmem:[%s3473_s1 + $0x120] sm:$0xff]  ;;  %v113_v16 = vld [vmem:[%s3472_s0 + $0x128] sm:$0xff]  ;;  %v114_v18 = vld [vmem:[%s3472_s0 + $0x130] sm:$0xff] }
  0x65   :  { %v177_v17 = vld [vmem:[%s3473_s1 + $0x128] sm:$0xff]  ;;  %v178_v19 = vld [vmem:[%s3473_s1 + $0x130] sm:$0xff]  ;;  %v115_v20 = vld [vmem:[%s3472_s0 + $0x138] sm:$0xff] }
  0x66   :  { %1927 = vmatmul.mubr.msk.f32.gmra.mrb[10].mxu0 %vm216_vm0, %v87_v28  ;;  %2027 = vmatmul.mubr.msk.f32.gmra.mrb[10].mxu1 %vm216_vm0, %v151_v29  ;;  %v179_v21 = vld [vmem:[%s3473_s1 + $0x138] sm:$0xff]  ;;  %v116_v22 = vld [vmem:[%s3472_s0 + $0x140] sm:$0xff]  ;;  %v117_v24 = vld [vmem:[%s3472_s0 + $0x148] sm:$0xff] }
  0x67   :  { %1929 = vmatprep.mubr.msk.f32.mxu0 %vm216_vm0, %v88_v30  ;;  %2029 = vmatprep.mubr.msk.f32.mxu1 %vm216_vm0, %v152_v31  ;;  %v180_v23 = vld [vmem:[%s3473_s1 + $0x140] sm:$0xff]  ;;  %v181_v25 = vld [vmem:[%s3473_s1 + $0x148] sm:$0xff]  ;;  %v118_v26 = vld [vmem:[%s3472_s0 + $0x150] sm:$0xff] }
  0x68   :  { %v182_v27 = vld [vmem:[%s3473_s1 + $0x150] sm:$0xff]  ;;  %v119_v28 = vld [vmem:[%s3472_s0 + $0x158] sm:$0xff]  ;;  %v120_v30 = vld [vmem:[%s3472_s0 + $0x160] sm:$0xff] }
  0x69   :  { %v183_v29 = vld [vmem:[%s3473_s1 + $0x158] sm:$0xff]  ;;  %v184_v31 = vld [vmem:[%s3473_s1 + $0x160] sm:$0xff] }
  0x6a   :  { %1930 = vmatmul.mubr.msk.f32.gmra.mrb[12].mxu0 %vm216_vm0, %v89_v32  ;;  %2030 = vmatmul.mubr.msk.f32.gmra.mrb[12].mxu1 %vm216_vm0, %v153_v33  ;;  %v121_v32 = vld [vmem:[%s3472_s0 + $0x168] sm:$0xff] }
  0x6b   :  { %1932 = vmatprep.mubr.msk.f32.mxu0 %vm216_vm0, %v90_v34  ;;  %2032 = vmatprep.mubr.msk.f32.mxu1 %vm216_vm0, %v154_v35  ;;  %v185_v33 = vld [vmem:[%s3473_s1 + $0x168] sm:$0xff]  ;;  %v122_v34 = vld [vmem:[%s3472_s0 + $0x170] sm:$0xff] }
  0x6c   :  { %v186_v35 = vld [vmem:[%s3473_s1 + $0x170] sm:$0xff] }
  0x6e   :  { %1933 = vmatmul.mubr.msk.f32.gmra.mrb[14].mxu0 %vm216_vm0, %v91_v36  ;;  %2033 = vmatmul.mubr.msk.f32.gmra.mrb[14].mxu1 %vm216_vm0, %v155_v37  ;;  %v123_v36 = vld [vmem:[%s3472_s0 + $0x178] sm:$0xff] }
  0x6f   :  { %1935 = vmatprep.mubr.msk.f32.mxu0 %vm216_vm0, %v92_v38  ;;  %2035 = vmatprep.mubr.msk.f32.mxu1 %vm216_vm0, %v156_v39  ;;  %v187_v37 = vld [vmem:[%s3473_s1 + $0x178] sm:$0xff]  ;;  %v124_v38 = vld [vmem:[%s3472_s0 + $0x180] sm:$0xff] }
  0x70   :  { %v188_v39 = vld [vmem:[%s3473_s1 + $0x180] sm:$0xff] }
  0x72   :  { %1936 = vmatmul.mubr.msk.f32.gmra.mrb[16].mxu0 %vm216_vm0, %v93_v40  ;;  %2036 = vmatmul.mubr.msk.f32.gmra.mrb[16].mxu1 %vm216_vm0, %v157_v41  ;;  %v125_v40 = vld [vmem:[%s3472_s0 + $0x188] sm:$0xff] }
  0x73   :  { %1938 = vmatprep.mubr.msk.f32.mxu0 %vm216_vm0, %v94_v42  ;;  %2038 = vmatprep.mubr.msk.f32.mxu1 %vm216_vm0, %v158_v43  ;;  %v189_v41 = vld [vmem:[%s3473_s1 + $0x188] sm:$0xff]  ;;  %v126_v42 = vld [vmem:[%s3472_s0 + $0x190] sm:$0xff] }
  0x74   :  { %v190_v43 = vld [vmem:[%s3473_s1 + $0x190] sm:$0xff] }
  0x76   :  { %1939 = vmatmul.mubr.msk.f32.gmra.mrb[18].mxu0 %vm216_vm0, %v95_v44  ;;  %2039 = vmatmul.mubr.msk.f32.gmra.mrb[18].mxu1 %vm216_vm0, %v159_v45  ;;  %v127_v44 = vld [vmem:[%s3472_s0 + $0x198] sm:$0xff] }
  0x77   :  { %1941 = vmatprep.mubr.msk.f32.mxu0 %vm216_vm0, %v96_v46  ;;  %2041 = vmatprep.mubr.msk.f32.mxu1 %vm216_vm0, %v160_v47  ;;  %v191_v45 = vld [vmem:[%s3473_s1 + $0x198] sm:$0xff]  ;;  %v128_v46 = vld [vmem:[%s3472_s0 + $0x1a0] sm:$0xff] }
  0x78   :  { %v192_v47 = vld [vmem:[%s3473_s1 + $0x1a0] sm:$0xff] }
  0x7a   :  { %1942 = vmatmul.mubr.msk.f32.gmra.mrb[20].mxu0 %vm216_vm0, %v97_v48  ;;  %2042 = vmatmul.mubr.msk.f32.gmra.mrb[20].mxu1 %vm216_vm0, %v161_v49  ;;  %v129_v48 = vld [vmem:[%s3472_s0 + $0x1a8] sm:$0xff] }
  0x7b   :  { %1944 = vmatprep.mubr.msk.f32.mxu0 %vm216_vm0, %v98_v50  ;;  %2044 = vmatprep.mubr.msk.f32.mxu1 %vm216_vm0, %v162_v51  ;;  %v193_v49 = vld [vmem:[%s3473_s1 + $0x1a8] sm:$0xff]  ;;  %v130_v50 = vld [vmem:[%s3472_s0 + $0x1b0] sm:$0xff] }
  0x7c   :  { %v194_v51 = vld [vmem:[%s3473_s1 + $0x1b0] sm:$0xff] }
  0x7e   :  { %1945 = vmatmul.mubr.msk.f32.gmra.mrb[22].mxu0 %vm216_vm0, %v99_v52  ;;  %2045 = vmatmul.mubr.msk.f32.gmra.mrb[22].mxu1 %vm216_vm0, %v163_v53  ;;  %v131_v52 = vld [vmem:[%s3472_s0 + $0x1b8] sm:$0xff] }
  0x7f   :  { %1947 = vmatprep.mubr.msk.f32.mxu0 %vm216_vm0, %v100_v54  ;;  %2047 = vmatprep.mubr.msk.f32.mxu1 %vm216_vm0, %v164_v55  ;;  %v195_v53 = vld [vmem:[%s3473_s1 + $0x1b8] sm:$0xff]  ;;  %v132_v54 = vld [vmem:[%s3472_s0 + $0x1c0] sm:$0xff] }
  0x80   :  { %v196_v55 = vld [vmem:[%s3473_s1 + $0x1c0] sm:$0xff] }
  0x82   :  { %1948 = vmatmul.mubr.msk.f32.gmra.mrb[24].mxu0 %vm216_vm0, %v101_v56  ;;  %2048 = vmatmul.mubr.msk.f32.gmra.mrb[24].mxu1 %vm216_vm0, %v165_v57  ;;  %v133_v56 = vld [vmem:[%s3472_s0 + $0x1c8] sm:$0xff] }
  0x83   :  { %1950 = vmatprep.mubr.msk.f32.mxu0 %vm216_vm0, %v102_v58  ;;  %2050 = vmatprep.mubr.msk.f32.mxu1 %vm216_vm0, %v166_v59  ;;  %v197_v57 = vld [vmem:[%s3473_s1 + $0x1c8] sm:$0xff]  ;;  %v134_v58 = vld [vmem:[%s3472_s0 + $0x1d0] sm:$0xff] }
  0x84   :  { %v198_v59 = vld [vmem:[%s3473_s1 + $0x1d0] sm:$0xff] }
  0x86   :  { %1951 = vmatmul.mubr.msk.f32.gmra.mrb[26].mxu0 %vm216_vm0, %v103_v60  ;;  %2051 = vmatmul.mubr.msk.f32.gmra.mrb[26].mxu1 %vm216_vm0, %v167_v61  ;;  %v135_v60 = vld [vmem:[%s3472_s0 + $0x1d8] sm:$0xff] }
  0x87   :  { %1953 = vmatprep.mubr.msk.f32.mxu0 %vm216_vm0, %v104_v62  ;;  %2053 = vmatprep.mubr.msk.f32.mxu1 %vm216_vm0, %v168_v63  ;;  %v199_v61 = vld [vmem:[%s3473_s1 + $0x1d8] sm:$0xff]  ;;  %v136_v62 = vld [vmem:[%s3472_s0 + $0x1e0] sm:$0xff] }
  0x88   :  { %v200_v63 = vld [vmem:[%s3473_s1 + $0x1e0] sm:$0xff] }
  0x8a   :  { %1954 = vmatmul.mubr.msk.f32.gmra.mrb[28].mxu0 %vm216_vm0, %v105_v0  ;;  %2054 = vmatmul.mubr.msk.f32.gmra.mrb[28].mxu1 %vm216_vm0, %v169_v1  ;;  %v137_v0 = vld [vmem:[%s3472_s0 + $0x1e8] sm:$0xff] }
  0x8b   :  { %1956 = vmatprep.mubr.msk.f32.mxu0 %vm216_vm0, %v106_v2  ;;  %2056 = vmatprep.mubr.msk.f32.mxu1 %vm216_vm0, %v170_v3  ;;  %v201_v1 = vld [vmem:[%s3473_s1 + $0x1e8] sm:$0xff]  ;;  %v138_v2 = vld [vmem:[%s3472_s0 + $0x1f0] sm:$0xff] }
  0x8c   :  { %v202_v3 = vld [vmem:[%s3473_s1 + $0x1f0] sm:$0xff] }
  0x8e   :  { %1957 = vmatmul.mubr.msk.f32.gmra.mrb[30].mxu0 %vm216_vm0, %v107_v4  ;;  %2057 = vmatmul.mubr.msk.f32.gmra.mrb[30].mxu1 %vm216_vm0, %v171_v5  ;;  %v139_v4 = vld [vmem:[%s3472_s0 + $0x1f8] sm:$0xff] }
  0x8f   :  { %1959 = vmatprep.mubr.msk.f32.mxu0 %vm216_vm0, %v108_v6  ;;  %2059 = vmatprep.mubr.msk.f32.mxu1 %vm216_vm0, %v172_v7  ;;  %v203_v5 = vld [vmem:[%s3473_s1 + $0x1f8] sm:$0xff]  ;;  %v2828_v6 = vld [vmem:[#allocation4] ss:$0 sm:$0xff]  ;;  %v2830_v7 = vld [vmem:[#allocation7] ss:$0 sm:$0xff] }
  0x92   :  { %1960 = vmatmul.mubr.msk.f32.gmra.mrb[32].mxu0 %vm216_vm0, %v109_v8  ;;  %2060 = vmatmul.mubr.msk.f32.gmra.mrb[32].mxu1 %vm216_vm0, %v173_v9 }
  0x93   :  { %1962 = vmatprep.mubr.msk.f32.mxu0 %vm216_vm0, %v110_v10  ;;  %2062 = vmatprep.mubr.msk.f32.mxu1 %vm216_vm0, %v174_v11 }
  0x96   :  { %1963 = vmatmul.mubr.msk.f32.gmra.mrb[34].mxu0 %vm216_vm0, %v111_v12  ;;  %2063 = vmatmul.mubr.msk.f32.gmra.mrb[34].mxu1 %vm216_vm0, %v175_v13 }
  0x97   :  { %1965 = vmatprep.mubr.msk.f32.mxu0 %vm216_vm0, %v112_v14  ;;  %2065 = vmatprep.mubr.msk.f32.mxu1 %vm216_vm0, %v176_v15 }
  0x9a   :  { %1966 = vmatmul.mubr.msk.f32.gmra.mrb[36].mxu0 %vm216_vm0, %v113_v16  ;;  %2066 = vmatmul.mubr.msk.f32.gmra.mrb[36].mxu1 %vm216_vm0, %v177_v17 }
  0x9b   :  { %1968 = vmatprep.mubr.msk.f32.mxu0 %vm216_vm0, %v114_v18  ;;  %2068 = vmatprep.mubr.msk.f32.mxu1 %vm216_vm0, %v178_v19 }
  0x9e   :  { %1969 = vmatmul.mubr.msk.f32.gmra.mrb[38].mxu0 %vm216_vm0, %v115_v20  ;;  %2069 = vmatmul.mubr.msk.f32.gmra.mrb[38].mxu1 %vm216_vm0, %v179_v21 }
  0x9f   :  { %1971 = vmatprep.mubr.msk.f32.mxu0 %vm216_vm0, %v116_v22  ;;  %2071 = vmatprep.mubr.msk.f32.mxu1 %vm216_vm0, %v180_v23 }
  0xa2   :  { %1972 = vmatmul.mubr.msk.f32.gmra.mrb[40].mxu0 %vm216_vm0, %v117_v24  ;;  %2072 = vmatmul.mubr.msk.f32.gmra.mrb[40].mxu1 %vm216_vm0, %v181_v25 }
  0xa3   :  { %1974 = vmatprep.mubr.msk.f32.mxu0 %vm216_vm0, %v118_v26  ;;  %2074 = vmatprep.mubr.msk.f32.mxu1 %vm216_vm0, %v182_v27 }
  0xa6   :  { %1975 = vmatmul.mubr.msk.f32.gmra.mrb[42].mxu0 %vm216_vm0, %v119_v28  ;;  %2075 = vmatmul.mubr.msk.f32.gmra.mrb[42].mxu1 %vm216_vm0, %v183_v29 }
  0xa7   :  { %1977 = vmatprep.mubr.msk.f32.mxu0 %vm216_vm0, %v120_v30  ;;  %2077 = vmatprep.mubr.msk.f32.mxu1 %vm216_vm0, %v184_v31 }
  0xaa   :  { %1978 = vmatmul.mubr.msk.f32.gmra.mrb[44].mxu0 %vm216_vm0, %v121_v32  ;;  %2078 = vmatmul.mubr.msk.f32.gmra.mrb[44].mxu1 %vm216_vm0, %v185_v33 }
  0xab   :  { %1980 = vmatprep.mubr.msk.f32.mxu0 %vm216_vm0, %v122_v34  ;;  %2080 = vmatprep.mubr.msk.f32.mxu1 %vm216_vm0, %v186_v35 }
  0xae   :  { %1981 = vmatmul.mubr.msk.f32.gmra.mrb[46].mxu0 %vm216_vm0, %v123_v36  ;;  %2081 = vmatmul.mubr.msk.f32.gmra.mrb[46].mxu1 %vm216_vm0, %v187_v37 }
  0xaf   :  { %1983 = vmatprep.mubr.msk.f32.mxu0 %vm216_vm0, %v124_v38  ;;  %2083 = vmatprep.mubr.msk.f32.mxu1 %vm216_vm0, %v188_v39 }
  0xb2   :  { %1984 = vmatmul.mubr.msk.f32.gmra.mrb[48].mxu0 %vm216_vm0, %v125_v40  ;;  %2084 = vmatmul.mubr.msk.f32.gmra.mrb[48].mxu1 %vm216_vm0, %v189_v41 }
  0xb3   :  { %1986 = vmatprep.mubr.msk.f32.mxu0 %vm216_vm0, %v126_v42  ;;  %2086 = vmatprep.mubr.msk.f32.mxu1 %vm216_vm0, %v190_v43 }
  0xb6   :  { %1987 = vmatmul.mubr.msk.f32.gmra.mrb[50].mxu0 %vm216_vm0, %v127_v44  ;;  %2087 = vmatmul.mubr.msk.f32.gmra.mrb[50].mxu1 %vm216_vm0, %v191_v45 }
  0xb7   :  { %1989 = vmatprep.mubr.msk.f32.mxu0 %vm216_vm0, %v128_v46  ;;  %2089 = vmatprep.mubr.msk.f32.mxu1 %vm216_vm0, %v192_v47 }
  0xba   :  { %1990 = vmatmul.mubr.msk.f32.gmra.mrb[52].mxu0 %vm216_vm0, %v129_v48  ;;  %2090 = vmatmul.mubr.msk.f32.gmra.mrb[52].mxu1 %vm216_vm0, %v193_v49 }
  0xbb   :  { %1992 = vmatprep.mubr.msk.f32.mxu0 %vm216_vm0, %v130_v50  ;;  %2092 = vmatprep.mubr.msk.f32.mxu1 %vm216_vm0, %v194_v51 }
  0xbe   :  { %1993 = vmatmul.mubr.msk.f32.gmra.mrb[54].mxu0 %vm216_vm0, %v131_v52  ;;  %2093 = vmatmul.mubr.msk.f32.gmra.mrb[54].mxu1 %vm216_vm0, %v195_v53 }
  0xbf   :  { %1995 = vmatprep.mubr.msk.f32.mxu0 %vm216_vm0, %v132_v54  ;;  %2095 = vmatprep.mubr.msk.f32.mxu1 %vm216_vm0, %v196_v55 }
  0xc2   :  { %1996 = vmatmul.mubr.msk.f32.gmra.mrb[56].mxu0 %vm216_vm0, %v133_v56  ;;  %2096 = vmatmul.mubr.msk.f32.gmra.mrb[56].mxu1 %vm216_vm0, %v197_v57 }
  0xc3   :  { %1998 = vmatprep.mubr.msk.f32.mxu0 %vm216_vm0, %v134_v58  ;;  %2098 = vmatprep.mubr.msk.f32.mxu1 %vm216_vm0, %v198_v59 }
  0xc6   :  { %1999 = vmatmul.mubr.msk.f32.gmra.mrb[58].mxu0 %vm216_vm0, %v135_v60  ;;  %2099 = vmatmul.mubr.msk.f32.gmra.mrb[58].mxu1 %vm216_vm0, %v199_v61 }
  0xc7   :  { %2001 = vmatprep.mubr.msk.f32.mxu0 %vm216_vm0, %v136_v62  ;;  %2101 = vmatprep.mubr.msk.f32.mxu1 %vm216_vm0, %v200_v63 }
  0xca   :  { %2002 = vmatmul.mubr.msk.f32.gmra.mrb[60].mxu0 %vm216_vm0, %v137_v0  ;;  %2102 = vmatmul.mubr.msk.f32.gmra.mrb[60].mxu1 %vm216_vm0, %v201_v1 }
  0xcb   :  { %2004 = vmatprep.mubr.msk.f32.mxu0 %vm216_vm0, %v138_v2  ;;  %2104 = vmatprep.mubr.msk.f32.mxu1 %vm216_vm0, %v202_v3 }
  0xce   :  { %2005 = vmatmul.mubr.msk.f32.gmra.mrb[62].mxu0 %vm216_vm0, %v139_v4  ;;  %2105 = vmatmul.mubr.msk.f32.gmra.mrb[62].mxu1 %vm216_vm0, %v203_v5 }
 0x125   :  { %v1913_v8 = vpop.f32.mrb[0].mxu0  ;;  %v2013_v10 = vpop.f32.mrb[0].mxu1 }
 0x126   :  { %v481_v9 = vadd.f32 %v1913_v8, %v2828_v6  ;;  %v475_v11 = vpop.f32.mrb[1].mxu0  ;;  %v1128_v12 = vadd.f32 %v2013_v10, %v2830_v7  ;;  %v1122_v14 = vpop.f32.mrb[1].mxu1 }
 0x127   :  { %v476_v13 = vadd.f32 %v2828_v6, %v475_v11  ;;  %v1123_v16 = vadd.f32 %v2830_v7, %v1122_v14 }
 0x128   :  { %v795_v15 = vmax.f32 %v481_v9, 0.0  ;;  %v1442_v17 = vmax.f32 %v1128_v12, 0.0 }
 0x129   :  { %v794_v18 = vmax.f32 %v476_v13, 0.0  ;;  %v1916_v19 = vpop.f32.mrb[2].mxu0  ;;  %v1441_v20 = vmax.f32 %v1123_v16, 0.0  ;;  %v2016_v22 = vpop.f32.mrb[2].mxu1 }
 0x12a   :  { %1507 = vst.msk [vmem:[%s3478_s6 + $0x8] sm:$0xff] %vm1505_vm1, %v795_v15  ;;  %v491_v21 = vadd.f32 %v1916_v19, %v2828_v6  ;;  %v485_v23 = vpop.f32.mrb[3].mxu0  ;;  %1571 = vst.msk [vmem:[%s3479_s7 + $0x8] sm:$0xff] %vm1505_vm1, %v1442_v17  ;;  %v1138_v24 = vadd.f32 %v2016_v22, %v2830_v7  ;;  %v1132_v26 = vpop.f32.mrb[3].mxu1 }
 0x12b   :  { %1506 = vst.msk [vmem:[%s3478_s6] sm:$0xff] %vm1505_vm1, %v794_v18  ;;  %v486_v25 = vadd.f32 %v2828_v6, %v485_v23  ;;  %1570 = vst.msk [vmem:[%s3479_s7] sm:$0xff] %vm1505_vm1, %v1441_v20  ;;  %v1133_v28 = vadd.f32 %v2830_v7, %v1132_v26 }
 0x12c   :  { %v797_v27 = vmax.f32 %v491_v21, 0.0  ;;  %v1444_v29 = vmax.f32 %v1138_v24, 0.0 }
 0x12d   :  { %v796_v30 = vmax.f32 %v486_v25, 0.0  ;;  %v1919_v31 = vpop.f32.mrb[4].mxu0  ;;  %v1443_v32 = vmax.f32 %v1133_v28, 0.0  ;;  %v2019_v34 = vpop.f32.mrb[4].mxu1 }
 0x12e   :  { %1509 = vst.msk [vmem:[%s3478_s6 + $0x18] sm:$0xff] %vm1505_vm1, %v797_v27  ;;  %v501_v33 = vadd.f32 %v1919_v31, %v2828_v6  ;;  %v495_v35 = vpop.f32.mrb[5].mxu0  ;;  %1573 = vst.msk [vmem:[%s3479_s7 + $0x18] sm:$0xff] %vm1505_vm1, %v1444_v29  ;;  %v1148_v36 = vadd.f32 %v2019_v34, %v2830_v7  ;;  %v1142_v38 = vpop.f32.mrb[5].mxu1 }
 0x12f   :  { %1508 = vst.msk [vmem:[%s3478_s6 + $0x10] sm:$0xff] %vm1505_vm1, %v796_v30  ;;  %v496_v37 = vadd.f32 %v2828_v6, %v495_v35  ;;  %1572 = vst.msk [vmem:[%s3479_s7 + $0x10] sm:$0xff] %vm1505_vm1, %v1443_v32  ;;  %v1143_v40 = vadd.f32 %v2830_v7, %v1142_v38 }
 0x130   :  { %v799_v39 = vmax.f32 %v501_v33, 0.0  ;;  %v1446_v41 = vmax.f32 %v1148_v36, 0.0 }
 0x131   :  { %v798_v42 = vmax.f32 %v496_v37, 0.0  ;;  %v1922_v43 = vpop.f32.mrb[6].mxu0  ;;  %v1445_v44 = vmax.f32 %v1143_v40, 0.0  ;;  %v2022_v46 = vpop.f32.mrb[6].mxu1 }
 0x132   :  { %1511 = vst.msk [vmem:[%s3478_s6 + $0x28] sm:$0xff] %vm1505_vm1, %v799_v39  ;;  %v511_v45 = vadd.f32 %v1922_v43, %v2828_v6  ;;  %v505_v47 = vpop.f32.mrb[7].mxu0  ;;  %1575 = vst.msk [vmem:[%s3479_s7 + $0x28] sm:$0xff] %vm1505_vm1, %v1446_v41  ;;  %v1158_v48 = vadd.f32 %v2022_v46, %v2830_v7  ;;  %v1152_v50 = vpop.f32.mrb[7].mxu1 }
 0x133   :  { %1510 = vst.msk [vmem:[%s3478_s6 + $0x20] sm:$0xff] %vm1505_vm1, %v798_v42  ;;  %v506_v49 = vadd.f32 %v2828_v6, %v505_v47  ;;  %1574 = vst.msk [vmem:[%s3479_s7 + $0x20] sm:$0xff] %vm1505_vm1, %v1445_v44  ;;  %v1153_v52 = vadd.f32 %v2830_v7, %v1152_v50 }
 0x134   :  { %v801_v51 = vmax.f32 %v511_v45, 0.0  ;;  %v1448_v53 = vmax.f32 %v1158_v48, 0.0 }
 0x135   :  { %v800_v54 = vmax.f32 %v506_v49, 0.0  ;;  %v1925_v55 = vpop.f32.mrb[8].mxu0  ;;  %v1447_v56 = vmax.f32 %v1153_v52, 0.0  ;;  %v2025_v58 = vpop.f32.mrb[8].mxu1 }
 0x136   :  { %1513 = vst.msk [vmem:[%s3478_s6 + $0x38] sm:$0xff] %vm1505_vm1, %v801_v51  ;;  %v521_v57 = vadd.f32 %v1925_v55, %v2828_v6  ;;  %v515_v59 = vpop.f32.mrb[9].mxu0  ;;  %1577 = vst.msk [vmem:[%s3479_s7 + $0x38] sm:$0xff] %vm1505_vm1, %v1448_v53  ;;  %v1168_v60 = vadd.f32 %v2025_v58, %v2830_v7  ;;  %v1162_v62 = vpop.f32.mrb[9].mxu1 }
 0x137   :  { %1512 = vst.msk [vmem:[%s3478_s6 + $0x30] sm:$0xff] %vm1505_vm1, %v800_v54  ;;  %v516_v61 = vadd.f32 %v2828_v6, %v515_v59  ;;  %1576 = vst.msk [vmem:[%s3479_s7 + $0x30] sm:$0xff] %vm1505_vm1, %v1447_v56  ;;  %v1163_v0 = vadd.f32 %v2830_v7, %v1162_v62 }
 0x138   :  { %v803_v63 = vmax.f32 %v521_v57, 0.0  ;;  %v1450_v1 = vmax.f32 %v1168_v60, 0.0 }
 0x139   :  { %v802_v2 = vmax.f32 %v516_v61, 0.0  ;;  %v1928_v3 = vpop.f32.mrb[10].mxu0  ;;  %v1449_v4 = vmax.f32 %v1163_v0, 0.0  ;;  %v2028_v8 = vpop.f32.mrb[10].mxu1 }
 0x13a   :  { %1515 = vst.msk [vmem:[%s3478_s6 + $0x48] sm:$0xff] %vm1505_vm1, %v803_v63  ;;  %v531_v5 = vadd.f32 %v1928_v3, %v2828_v6  ;;  %v525_v9 = vpop.f32.mrb[11].mxu0  ;;  %1579 = vst.msk [vmem:[%s3479_s7 + $0x48] sm:$0xff] %vm1505_vm1, %v1450_v1  ;;  %v1178_v10 = vadd.f32 %v2028_v8, %v2830_v7  ;;  %v1172_v12 = vpop.f32.mrb[11].mxu1 }
 0x13b   :  { %1514 = vst.msk [vmem:[%s3478_s6 + $0x40] sm:$0xff] %vm1505_vm1, %v802_v2  ;;  %v526_v11 = vadd.f32 %v2828_v6, %v525_v9  ;;  %1578 = vst.msk [vmem:[%s3479_s7 + $0x40] sm:$0xff] %vm1505_vm1, %v1449_v4  ;;  %v1173_v14 = vadd.f32 %v2830_v7, %v1172_v12 }
 0x13c   :  { %v805_v13 = vmax.f32 %v531_v5, 0.0  ;;  %v1452_v15 = vmax.f32 %v1178_v10, 0.0 }
 0x13d   :  { %v804_v16 = vmax.f32 %v526_v11, 0.0  ;;  %v1931_v17 = vpop.f32.mrb[12].mxu0  ;;  %v1451_v18 = vmax.f32 %v1173_v14, 0.0  ;;  %v2031_v20 = vpop.f32.mrb[12].mxu1 }
 0x13e   :  { %1517 = vst.msk [vmem:[%s3478_s6 + $0x58] sm:$0xff] %vm1505_vm1, %v805_v13  ;;  %v541_v19 = vadd.f32 %v1931_v17, %v2828_v6  ;;  %v535_v21 = vpop.f32.mrb[13].mxu0  ;;  %1581 = vst.msk [vmem:[%s3479_s7 + $0x58] sm:$0xff] %vm1505_vm1, %v1452_v15  ;;  %v1188_v22 = vadd.f32 %v2031_v20, %v2830_v7  ;;  %v1182_v24 = vpop.f32.mrb[13].mxu1 }
 0x13f   :  { %1516 = vst.msk [vmem:[%s3478_s6 + $0x50] sm:$0xff] %vm1505_vm1, %v804_v16  ;;  %v536_v23 = vadd.f32 %v2828_v6, %v535_v21  ;;  %1580 = vst.msk [vmem:[%s3479_s7 + $0x50] sm:$0xff] %vm1505_vm1, %v1451_v18  ;;  %v1183_v26 = vadd.f32 %v2830_v7, %v1182_v24 }
 0x140   :  { %v807_v25 = vmax.f32 %v541_v19, 0.0  ;;  %v1454_v27 = vmax.f32 %v1188_v22, 0.0 }
 0x141   :  { %v806_v28 = vmax.f32 %v536_v23, 0.0  ;;  %v1934_v29 = vpop.f32.mrb[14].mxu0  ;;  %v1453_v30 = vmax.f32 %v1183_v26, 0.0  ;;  %v2034_v32 = vpop.f32.mrb[14].mxu1 }
 0x142   :  { %1519 = vst.msk [vmem:[%s3478_s6 + $0x68] sm:$0xff] %vm1505_vm1, %v807_v25  ;;  %v551_v31 = vadd.f32 %v1934_v29, %v2828_v6  ;;  %v545_v33 = vpop.f32.mrb[15].mxu0  ;;  %1583 = vst.msk [vmem:[%s3479_s7 + $0x68] sm:$0xff] %vm1505_vm1, %v1454_v27  ;;  %v1198_v34 = vadd.f32 %v2034_v32, %v2830_v7  ;;  %v1192_v36 = vpop.f32.mrb[15].mxu1 }
 0x143   :  { %1518 = vst.msk [vmem:[%s3478_s6 + $0x60] sm:$0xff] %vm1505_vm1, %v806_v28  ;;  %v546_v35 = vadd.f32 %v2828_v6, %v545_v33  ;;  %1582 = vst.msk [vmem:[%s3479_s7 + $0x60] sm:$0xff] %vm1505_vm1, %v1453_v30  ;;  %v1193_v38 = vadd.f32 %v2830_v7, %v1192_v36 }
 0x144   :  { %v809_v37 = vmax.f32 %v551_v31, 0.0  ;;  %v1456_v39 = vmax.f32 %v1198_v34, 0.0 }
 0x145   :  { %v808_v40 = vmax.f32 %v546_v35, 0.0  ;;  %v1937_v41 = vpop.f32.mrb[16].mxu0  ;;  %v1455_v42 = vmax.f32 %v1193_v38, 0.0  ;;  %v2037_v44 = vpop.f32.mrb[16].mxu1 }
 0x146   :  { %1521 = vst.msk [vmem:[%s3478_s6 + $0x78] sm:$0xff] %vm1505_vm1, %v809_v37  ;;  %v561_v43 = vadd.f32 %v1937_v41, %v2828_v6  ;;  %v555_v45 = vpop.f32.mrb[17].mxu0  ;;  %1585 = vst.msk [vmem:[%s3479_s7 + $0x78] sm:$0xff] %vm1505_vm1, %v1456_v39  ;;  %v1208_v46 = vadd.f32 %v2037_v44, %v2830_v7  ;;  %v1202_v48 = vpop.f32.mrb[17].mxu1 }
 0x147   :  { %1520 = vst.msk [vmem:[%s3478_s6 + $0x70] sm:$0xff] %vm1505_vm1, %v808_v40  ;;  %v556_v47 = vadd.f32 %v2828_v6, %v555_v45  ;;  %1584 = vst.msk [vmem:[%s3479_s7 + $0x70] sm:$0xff] %vm1505_vm1, %v1455_v42  ;;  %v1203_v50 = vadd.f32 %v2830_v7, %v1202_v48 }
 0x148   :  { %v811_v49 = vmax.f32 %v561_v43, 0.0  ;;  %v1458_v51 = vmax.f32 %v1208_v46, 0.0 }
 0x149   :  { %v810_v52 = vmax.f32 %v556_v47, 0.0  ;;  %v1940_v53 = vpop.f32.mrb[18].mxu0  ;;  %v1457_v54 = vmax.f32 %v1203_v50, 0.0  ;;  %v2040_v56 = vpop.f32.mrb[18].mxu1 }
 0x14a   :  { %1523 = vst.msk [vmem:[%s3478_s6 + $0x88] sm:$0xff] %vm1505_vm1, %v811_v49  ;;  %v571_v55 = vadd.f32 %v1940_v53, %v2828_v6  ;;  %v565_v57 = vpop.f32.mrb[19].mxu0  ;;  %1587 = vst.msk [vmem:[%s3479_s7 + $0x88] sm:$0xff] %vm1505_vm1, %v1458_v51  ;;  %v1218_v58 = vadd.f32 %v2040_v56, %v2830_v7  ;;  %v1212_v60 = vpop.f32.mrb[19].mxu1 }
 0x14b   :  { %1522 = vst.msk [vmem:[%s3478_s6 + $0x80] sm:$0xff] %vm1505_vm1, %v810_v52  ;;  %v566_v59 = vadd.f32 %v2828_v6, %v565_v57  ;;  %1586 = vst.msk [vmem:[%s3479_s7 + $0x80] sm:$0xff] %vm1505_vm1, %v1457_v54  ;;  %v1213_v62 = vadd.f32 %v2830_v7, %v1212_v60 }
 0x14c   :  { %v813_v61 = vmax.f32 %v571_v55, 0.0  ;;  %v1460_v63 = vmax.f32 %v1218_v58, 0.0 }
 0x14d   :  { %v812_v0 = vmax.f32 %v566_v59, 0.0  ;;  %v1943_v1 = vpop.f32.mrb[20].mxu0  ;;  %v1459_v2 = vmax.f32 %v1213_v62, 0.0  ;;  %v2043_v4 = vpop.f32.mrb[20].mxu1 }
 0x14e   :  { %1525 = vst.msk [vmem:[%s3478_s6 + $0x98] sm:$0xff] %vm1505_vm1, %v813_v61  ;;  %v581_v3 = vadd.f32 %v1943_v1, %v2828_v6  ;;  %v575_v5 = vpop.f32.mrb[21].mxu0  ;;  %1589 = vst.msk [vmem:[%s3479_s7 + $0x98] sm:$0xff] %vm1505_vm1, %v1460_v63  ;;  %v1228_v8 = vadd.f32 %v2043_v4, %v2830_v7  ;;  %v1222_v10 = vpop.f32.mrb[21].mxu1 }
 0x14f   :  { %1524 = vst.msk [vmem:[%s3478_s6 + $0x90] sm:$0xff] %vm1505_vm1, %v812_v0  ;;  %v576_v9 = vadd.f32 %v2828_v6, %v575_v5  ;;  %1588 = vst.msk [vmem:[%s3479_s7 + $0x90] sm:$0xff] %vm1505_vm1, %v1459_v2  ;;  %v1223_v12 = vadd.f32 %v2830_v7, %v1222_v10 }
 0x150   :  { %v815_v11 = vmax.f32 %v581_v3, 0.0  ;;  %v1462_v13 = vmax.f32 %v1228_v8, 0.0 }
 0x151   :  { %v814_v14 = vmax.f32 %v576_v9, 0.0  ;;  %v1946_v15 = vpop.f32.mrb[22].mxu0  ;;  %v1461_v16 = vmax.f32 %v1223_v12, 0.0  ;;  %v2046_v18 = vpop.f32.mrb[22].mxu1 }
 0x152   :  { %1527 = vst.msk [vmem:[%s3478_s6 + $0xa8] sm:$0xff] %vm1505_vm1, %v815_v11  ;;  %v591_v17 = vadd.f32 %v1946_v15, %v2828_v6  ;;  %v585_v19 = vpop.f32.mrb[23].mxu0  ;;  %1591 = vst.msk [vmem:[%s3479_s7 + $0xa8] sm:$0xff] %vm1505_vm1, %v1462_v13  ;;  %v1238_v20 = vadd.f32 %v2046_v18, %v2830_v7  ;;  %v1232_v22 = vpop.f32.mrb[23].mxu1 }
 0x153   :  { %1526 = vst.msk [vmem:[%s3478_s6 + $0xa0] sm:$0xff] %vm1505_vm1, %v814_v14  ;;  %v586_v21 = vadd.f32 %v2828_v6, %v585_v19  ;;  %1590 = vst.msk [vmem:[%s3479_s7 + $0xa0] sm:$0xff] %vm1505_vm1, %v1461_v16  ;;  %v1233_v24 = vadd.f32 %v2830_v7, %v1232_v22 }
 0x154   :  { %v817_v23 = vmax.f32 %v591_v17, 0.0  ;;  %v1464_v25 = vmax.f32 %v1238_v20, 0.0 }
 0x155   :  { %v816_v26 = vmax.f32 %v586_v21, 0.0  ;;  %v1949_v27 = vpop.f32.mrb[24].mxu0  ;;  %v1463_v28 = vmax.f32 %v1233_v24, 0.0  ;;  %v2049_v30 = vpop.f32.mrb[24].mxu1 }
 0x156   :  { %1529 = vst.msk [vmem:[%s3478_s6 + $0xb8] sm:$0xff] %vm1505_vm1, %v817_v23  ;;  %v601_v29 = vadd.f32 %v1949_v27, %v2828_v6  ;;  %v595_v31 = vpop.f32.mrb[25].mxu0  ;;  %1593 = vst.msk [vmem:[%s3479_s7 + $0xb8] sm:$0xff] %vm1505_vm1, %v1464_v25  ;;  %v1248_v32 = vadd.f32 %v2049_v30, %v2830_v7  ;;  %v1242_v34 = vpop.f32.mrb[25].mxu1 }
 0x157   :  { %1528 = vst.msk [vmem:[%s3478_s6 + $0xb0] sm:$0xff] %vm1505_vm1, %v816_v26  ;;  %v596_v33 = vadd.f32 %v2828_v6, %v595_v31  ;;  %1592 = vst.msk [vmem:[%s3479_s7 + $0xb0] sm:$0xff] %vm1505_vm1, %v1463_v28  ;;  %v1243_v36 = vadd.f32 %v2830_v7, %v1242_v34 }
 0x158   :  { %v819_v35 = vmax.f32 %v601_v29, 0.0  ;;  %v1466_v37 = vmax.f32 %v1248_v32, 0.0 }
 0x159   :  { %v818_v38 = vmax.f32 %v596_v33, 0.0  ;;  %v1952_v39 = vpop.f32.mrb[26].mxu0  ;;  %v1465_v40 = vmax.f32 %v1243_v36, 0.0  ;;  %v2052_v42 = vpop.f32.mrb[26].mxu1 }
 0x15a   :  { %1531 = vst.msk [vmem:[%s3478_s6 + $0xc8] sm:$0xff] %vm1505_vm1, %v819_v35  ;;  %v611_v41 = vadd.f32 %v1952_v39, %v2828_v6  ;;  %v605_v43 = vpop.f32.mrb[27].mxu0  ;;  %1595 = vst.msk [vmem:[%s3479_s7 + $0xc8] sm:$0xff] %vm1505_vm1, %v1466_v37  ;;  %v1258_v44 = vadd.f32 %v2052_v42, %v2830_v7  ;;  %v1252_v46 = vpop.f32.mrb[27].mxu1 }
 0x15b   :  { %1530 = vst.msk [vmem:[%s3478_s6 + $0xc0] sm:$0xff] %vm1505_vm1, %v818_v38  ;;  %v606_v45 = vadd.f32 %v2828_v6, %v605_v43  ;;  %1594 = vst.msk [vmem:[%s3479_s7 + $0xc0] sm:$0xff] %vm1505_vm1, %v1465_v40  ;;  %v1253_v48 = vadd.f32 %v2830_v7, %v1252_v46 }
 0x15c   :  { %v821_v47 = vmax.f32 %v611_v41, 0.0  ;;  %v1468_v49 = vmax.f32 %v1258_v44, 0.0 }
 0x15d   :  { %v820_v50 = vmax.f32 %v606_v45, 0.0  ;;  %v1955_v51 = vpop.f32.mrb[28].mxu0  ;;  %v1467_v52 = vmax.f32 %v1253_v48, 0.0  ;;  %v2055_v54 = vpop.f32.mrb[28].mxu1 }
 0x15e   :  { %1533 = vst.msk [vmem:[%s3478_s6 + $0xd8] sm:$0xff] %vm1505_vm1, %v821_v47  ;;  %v621_v53 = vadd.f32 %v1955_v51, %v2828_v6  ;;  %v615_v55 = vpop.f32.mrb[29].mxu0  ;;  %1597 = vst.msk [vmem:[%s3479_s7 + $0xd8] sm:$0xff] %vm1505_vm1, %v1468_v49  ;;  %v1268_v56 = vadd.f32 %v2055_v54, %v2830_v7  ;;  %v1262_v58 = vpop.f32.mrb[29].mxu1 }
 0x15f   :  { %1532 = vst.msk [vmem:[%s3478_s6 + $0xd0] sm:$0xff] %vm1505_vm1, %v820_v50  ;;  %v616_v57 = vadd.f32 %v2828_v6, %v615_v55  ;;  %1596 = vst.msk [vmem:[%s3479_s7 + $0xd0] sm:$0xff] %vm1505_vm1, %v1467_v52  ;;  %v1263_v60 = vadd.f32 %v2830_v7, %v1262_v58 }
 0x160   :  { %v823_v59 = vmax.f32 %v621_v53, 0.0  ;;  %v1470_v61 = vmax.f32 %v1268_v56, 0.0 }
 0x161   :  { %v822_v62 = vmax.f32 %v616_v57, 0.0  ;;  %v1958_v63 = vpop.f32.mrb[30].mxu0  ;;  %v1469_v0 = vmax.f32 %v1263_v60, 0.0  ;;  %v2058_v2 = vpop.f32.mrb[30].mxu1 }
 0x162   :  { %1535 = vst.msk [vmem:[%s3478_s6 + $0xe8] sm:$0xff] %vm1505_vm1, %v823_v59  ;;  %v631_v1 = vadd.f32 %v1958_v63, %v2828_v6  ;;  %v625_v3 = vpop.f32.mrb[31].mxu0  ;;  %1599 = vst.msk [vmem:[%s3479_s7 + $0xe8] sm:$0xff] %vm1505_vm1, %v1470_v61  ;;  %v1278_v4 = vadd.f32 %v2058_v2, %v2830_v7  ;;  %v1272_v8 = vpop.f32.mrb[31].mxu1 }
 0x163   :  { %1534 = vst.msk [vmem:[%s3478_s6 + $0xe0] sm:$0xff] %vm1505_vm1, %v822_v62  ;;  %v626_v5 = vadd.f32 %v2828_v6, %v625_v3  ;;  %1598 = vst.msk [vmem:[%s3479_s7 + $0xe0] sm:$0xff] %vm1505_vm1, %v1469_v0  ;;  %v1273_v10 = vadd.f32 %v2830_v7, %v1272_v8 }
 0x164   :  { %v825_v9 = vmax.f32 %v631_v1, 0.0  ;;  %v1472_v11 = vmax.f32 %v1278_v4, 0.0 }
 0x165   :  { %v824_v12 = vmax.f32 %v626_v5, 0.0  ;;  %v1961_v13 = vpop.f32.mrb[32].mxu0  ;;  %v1471_v14 = vmax.f32 %v1273_v10, 0.0  ;;  %v2061_v16 = vpop.f32.mrb[32].mxu1 }
 0x166   :  { %1537 = vst.msk [vmem:[%s3478_s6 + $0xf8] sm:$0xff] %vm1505_vm1, %v825_v9  ;;  %v641_v15 = vadd.f32 %v1961_v13, %v2828_v6  ;;  %v635_v17 = vpop.f32.mrb[33].mxu0  ;;  %1601 = vst.msk [vmem:[%s3479_s7 + $0xf8] sm:$0xff] %vm1505_vm1, %v1472_v11  ;;  %v1288_v18 = vadd.f32 %v2061_v16, %v2830_v7  ;;  %v1282_v20 = vpop.f32.mrb[33].mxu1 }
 0x167   :  { %1536 = vst.msk [vmem:[%s3478_s6 + $0xf0] sm:$0xff] %vm1505_vm1, %v824_v12  ;;  %v636_v19 = vadd.f32 %v2828_v6, %v635_v17  ;;  %1600 = vst.msk [vmem:[%s3479_s7 + $0xf0] sm:$0xff] %vm1505_vm1, %v1471_v14  ;;  %v1283_v22 = vadd.f32 %v2830_v7, %v1282_v20 }
 0x168   :  { %v827_v21 = vmax.f32 %v641_v15, 0.0  ;;  %v1474_v23 = vmax.f32 %v1288_v18, 0.0 }
 0x169   :  { %v826_v24 = vmax.f32 %v636_v19, 0.0  ;;  %v1964_v25 = vpop.f32.mrb[34].mxu0  ;;  %v1473_v26 = vmax.f32 %v1283_v22, 0.0  ;;  %v2064_v28 = vpop.f32.mrb[34].mxu1 }
 0x16a   :  { %1539 = vst.msk [vmem:[%s3478_s6 + $0x108] sm:$0xff] %vm1505_vm1, %v827_v21  ;;  %v651_v27 = vadd.f32 %v1964_v25, %v2828_v6  ;;  %v645_v29 = vpop.f32.mrb[35].mxu0  ;;  %1603 = vst.msk [vmem:[%s3479_s7 + $0x108] sm:$0xff] %vm1505_vm1, %v1474_v23  ;;  %v1298_v30 = vadd.f32 %v2064_v28, %v2830_v7  ;;  %v1292_v32 = vpop.f32.mrb[35].mxu1 }
 0x16b   :  { %1538 = vst.msk [vmem:[%s3478_s6 + $0x100] sm:$0xff] %vm1505_vm1, %v826_v24  ;;  %v646_v31 = vadd.f32 %v2828_v6, %v645_v29  ;;  %1602 = vst.msk [vmem:[%s3479_s7 + $0x100] sm:$0xff] %vm1505_vm1, %v1473_v26  ;;  %v1293_v34 = vadd.f32 %v2830_v7, %v1292_v32 }
 0x16c   :  { %v829_v33 = vmax.f32 %v651_v27, 0.0  ;;  %v1476_v35 = vmax.f32 %v1298_v30, 0.0 }
 0x16d   :  { %v828_v36 = vmax.f32 %v646_v31, 0.0  ;;  %v1967_v37 = vpop.f32.mrb[36].mxu0  ;;  %v1475_v38 = vmax.f32 %v1293_v34, 0.0  ;;  %v2067_v40 = vpop.f32.mrb[36].mxu1 }
 0x16e   :  { %1541 = vst.msk [vmem:[%s3478_s6 + $0x118] sm:$0xff] %vm1505_vm1, %v829_v33  ;;  %v661_v39 = vadd.f32 %v1967_v37, %v2828_v6  ;;  %v655_v41 = vpop.f32.mrb[37].mxu0  ;;  %1605 = vst.msk [vmem:[%s3479_s7 + $0x118] sm:$0xff] %vm1505_vm1, %v1476_v35  ;;  %v1308_v42 = vadd.f32 %v2067_v40, %v2830_v7  ;;  %v1302_v44 = vpop.f32.mrb[37].mxu1 }
 0x16f   :  { %1540 = vst.msk [vmem:[%s3478_s6 + $0x110] sm:$0xff] %vm1505_vm1, %v828_v36  ;;  %v656_v43 = vadd.f32 %v2828_v6, %v655_v41  ;;  %1604 = vst.msk [vmem:[%s3479_s7 + $0x110] sm:$0xff] %vm1505_vm1, %v1475_v38  ;;  %v1303_v46 = vadd.f32 %v2830_v7, %v1302_v44 }
 0x170   :  { %v831_v45 = vmax.f32 %v661_v39, 0.0  ;;  %v1478_v47 = vmax.f32 %v1308_v42, 0.0 }
 0x171   :  { %v830_v48 = vmax.f32 %v656_v43, 0.0  ;;  %v1970_v49 = vpop.f32.mrb[38].mxu0  ;;  %v1477_v50 = vmax.f32 %v1303_v46, 0.0  ;;  %v2070_v52 = vpop.f32.mrb[38].mxu1 }
 0x172   :  { %1543 = vst.msk [vmem:[%s3478_s6 + $0x128] sm:$0xff] %vm1505_vm1, %v831_v45  ;;  %v671_v51 = vadd.f32 %v1970_v49, %v2828_v6  ;;  %v665_v53 = vpop.f32.mrb[39].mxu0  ;;  %1607 = vst.msk [vmem:[%s3479_s7 + $0x128] sm:$0xff] %vm1505_vm1, %v1478_v47  ;;  %v1318_v54 = vadd.f32 %v2070_v52, %v2830_v7  ;;  %v1312_v56 = vpop.f32.mrb[39].mxu1 }
 0x173   :  { %1542 = vst.msk [vmem:[%s3478_s6 + $0x120] sm:$0xff] %vm1505_vm1, %v830_v48  ;;  %v666_v55 = vadd.f32 %v2828_v6, %v665_v53  ;;  %1606 = vst.msk [vmem:[%s3479_s7 + $0x120] sm:$0xff] %vm1505_vm1, %v1477_v50  ;;  %v1313_v58 = vadd.f32 %v2830_v7, %v1312_v56 }
 0x174   :  { %v833_v57 = vmax.f32 %v671_v51, 0.0  ;;  %v1480_v59 = vmax.f32 %v1318_v54, 0.0 }
 0x175   :  { %v832_v60 = vmax.f32 %v666_v55, 0.0  ;;  %v1973_v61 = vpop.f32.mrb[40].mxu0  ;;  %v1479_v62 = vmax.f32 %v1313_v58, 0.0  ;;  %v2073_v0 = vpop.f32.mrb[40].mxu1 }
 0x176   :  { %1545 = vst.msk [vmem:[%s3478_s6 + $0x138] sm:$0xff] %vm1505_vm1, %v833_v57  ;;  %v681_v63 = vadd.f32 %v1973_v61, %v2828_v6  ;;  %v675_v1 = vpop.f32.mrb[41].mxu0  ;;  %1609 = vst.msk [vmem:[%s3479_s7 + $0x138] sm:$0xff] %vm1505_vm1, %v1480_v59  ;;  %v1328_v2 = vadd.f32 %v2073_v0, %v2830_v7  ;;  %v1322_v4 = vpop.f32.mrb[41].mxu1 }
 0x177   :  { %1544 = vst.msk [vmem:[%s3478_s6 + $0x130] sm:$0xff] %vm1505_vm1, %v832_v60  ;;  %v676_v3 = vadd.f32 %v2828_v6, %v675_v1  ;;  %1608 = vst.msk [vmem:[%s3479_s7 + $0x130] sm:$0xff] %vm1505_vm1, %v1479_v62  ;;  %v1323_v8 = vadd.f32 %v2830_v7, %v1322_v4 }
 0x178   :  { %v835_v5 = vmax.f32 %v681_v63, 0.0  ;;  %v1482_v9 = vmax.f32 %v1328_v2, 0.0 }
 0x179   :  { %v834_v10 = vmax.f32 %v676_v3, 0.0  ;;  %v1976_v11 = vpop.f32.mrb[42].mxu0  ;;  %v1481_v12 = vmax.f32 %v1323_v8, 0.0  ;;  %v2076_v14 = vpop.f32.mrb[42].mxu1 }
 0x17a   :  { %1547 = vst.msk [vmem:[%s3478_s6 + $0x148] sm:$0xff] %vm1505_vm1, %v835_v5  ;;  %v691_v13 = vadd.f32 %v1976_v11, %v2828_v6  ;;  %v685_v15 = vpop.f32.mrb[43].mxu0  ;;  %1611 = vst.msk [vmem:[%s3479_s7 + $0x148] sm:$0xff] %vm1505_vm1, %v1482_v9  ;;  %v1338_v16 = vadd.f32 %v2076_v14, %v2830_v7  ;;  %v1332_v18 = vpop.f32.mrb[43].mxu1 }
 0x17b   :  { %1546 = vst.msk [vmem:[%s3478_s6 + $0x140] sm:$0xff] %vm1505_vm1, %v834_v10  ;;  %v686_v17 = vadd.f32 %v2828_v6, %v685_v15  ;;  %1610 = vst.msk [vmem:[%s3479_s7 + $0x140] sm:$0xff] %vm1505_vm1, %v1481_v12  ;;  %v1333_v20 = vadd.f32 %v2830_v7, %v1332_v18 }
 0x17c   :  { %v837_v19 = vmax.f32 %v691_v13, 0.0  ;;  %v1484_v21 = vmax.f32 %v1338_v16, 0.0 }
 0x17d   :  { %v836_v22 = vmax.f32 %v686_v17, 0.0  ;;  %v1979_v23 = vpop.f32.mrb[44].mxu0  ;;  %v1483_v24 = vmax.f32 %v1333_v20, 0.0  ;;  %v2079_v26 = vpop.f32.mrb[44].mxu1 }
 0x17e   :  { %1549 = vst.msk [vmem:[%s3478_s6 + $0x158] sm:$0xff] %vm1505_vm1, %v837_v19  ;;  %v701_v25 = vadd.f32 %v1979_v23, %v2828_v6  ;;  %v695_v27 = vpop.f32.mrb[45].mxu0  ;;  %1613 = vst.msk [vmem:[%s3479_s7 + $0x158] sm:$0xff] %vm1505_vm1, %v1484_v21  ;;  %v1348_v28 = vadd.f32 %v2079_v26, %v2830_v7  ;;  %v1342_v30 = vpop.f32.mrb[45].mxu1 }
 0x17f   :  { %1548 = vst.msk [vmem:[%s3478_s6 + $0x150] sm:$0xff] %vm1505_vm1, %v836_v22  ;;  %v696_v29 = vadd.f32 %v2828_v6, %v695_v27  ;;  %1612 = vst.msk [vmem:[%s3479_s7 + $0x150] sm:$0xff] %vm1505_vm1, %v1483_v24  ;;  %v1343_v32 = vadd.f32 %v2830_v7, %v1342_v30 }
 0x180   :  { %v839_v31 = vmax.f32 %v701_v25, 0.0  ;;  %v1486_v33 = vmax.f32 %v1348_v28, 0.0 }
 0x181   :  { %v838_v34 = vmax.f32 %v696_v29, 0.0  ;;  %v1982_v35 = vpop.f32.mrb[46].mxu0  ;;  %v1485_v36 = vmax.f32 %v1343_v32, 0.0  ;;  %v2082_v38 = vpop.f32.mrb[46].mxu1 }
 0x182   :  { %1551 = vst.msk [vmem:[%s3478_s6 + $0x168] sm:$0xff] %vm1505_vm1, %v839_v31  ;;  %v711_v37 = vadd.f32 %v1982_v35, %v2828_v6  ;;  %v705_v39 = vpop.f32.mrb[47].mxu0  ;;  %1615 = vst.msk [vmem:[%s3479_s7 + $0x168] sm:$0xff] %vm1505_vm1, %v1486_v33  ;;  %v1358_v40 = vadd.f32 %v2082_v38, %v2830_v7  ;;  %v1352_v42 = vpop.f32.mrb[47].mxu1 }
 0x183   :  { %1550 = vst.msk [vmem:[%s3478_s6 + $0x160] sm:$0xff] %vm1505_vm1, %v838_v34  ;;  %v706_v41 = vadd.f32 %v2828_v6, %v705_v39  ;;  %1614 = vst.msk [vmem:[%s3479_s7 + $0x160] sm:$0xff] %vm1505_vm1, %v1485_v36  ;;  %v1353_v44 = vadd.f32 %v2830_v7, %v1352_v42 }
 0x184   :  { %v841_v43 = vmax.f32 %v711_v37, 0.0  ;;  %v1488_v45 = vmax.f32 %v1358_v40, 0.0 }
 0x185   :  { %v840_v46 = vmax.f32 %v706_v41, 0.0  ;;  %v1985_v47 = vpop.f32.mrb[48].mxu0  ;;  %v1487_v48 = vmax.f32 %v1353_v44, 0.0  ;;  %v2085_v50 = vpop.f32.mrb[48].mxu1 }
 0x186   :  { %1553 = vst.msk [vmem:[%s3478_s6 + $0x178] sm:$0xff] %vm1505_vm1, %v841_v43  ;;  %v721_v49 = vadd.f32 %v1985_v47, %v2828_v6  ;;  %v715_v51 = vpop.f32.mrb[49].mxu0  ;;  %1617 = vst.msk [vmem:[%s3479_s7 + $0x178] sm:$0xff] %vm1505_vm1, %v1488_v45  ;;  %v1368_v52 = vadd.f32 %v2085_v50, %v2830_v7  ;;  %v1362_v54 = vpop.f32.mrb[49].mxu1 }
 0x187   :  { %1552 = vst.msk [vmem:[%s3478_s6 + $0x170] sm:$0xff] %vm1505_vm1, %v840_v46  ;;  %v716_v53 = vadd.f32 %v2828_v6, %v715_v51  ;;  %1616 = vst.msk [vmem:[%s3479_s7 + $0x170] sm:$0xff] %vm1505_vm1, %v1487_v48  ;;  %v1363_v56 = vadd.f32 %v2830_v7, %v1362_v54 }
 0x188   :  { %v843_v55 = vmax.f32 %v721_v49, 0.0  ;;  %v1490_v57 = vmax.f32 %v1368_v52, 0.0 }
 0x189   :  { %v842_v58 = vmax.f32 %v716_v53, 0.0  ;;  %v1988_v59 = vpop.f32.mrb[50].mxu0  ;;  %v1489_v60 = vmax.f32 %v1363_v56, 0.0  ;;  %v2088_v62 = vpop.f32.mrb[50].mxu1 }
 0x18a   :  { %1555 = vst.msk [vmem:[%s3478_s6 + $0x188] sm:$0xff] %vm1505_vm1, %v843_v55  ;;  %v731_v61 = vadd.f32 %v1988_v59, %v2828_v6  ;;  %v725_v63 = vpop.f32.mrb[51].mxu0  ;;  %1619 = vst.msk [vmem:[%s3479_s7 + $0x188] sm:$0xff] %vm1505_vm1, %v1490_v57  ;;  %v1378_v0 = vadd.f32 %v2088_v62, %v2830_v7  ;;  %v1372_v2 = vpop.f32.mrb[51].mxu1 }
 0x18b   :  { %1554 = vst.msk [vmem:[%s3478_s6 + $0x180] sm:$0xff] %vm1505_vm1, %v842_v58  ;;  %v726_v1 = vadd.f32 %v2828_v6, %v725_v63  ;;  %1618 = vst.msk [vmem:[%s3479_s7 + $0x180] sm:$0xff] %vm1505_vm1, %v1489_v60  ;;  %v1373_v4 = vadd.f32 %v2830_v7, %v1372_v2 }
 0x18c   :  { %v845_v3 = vmax.f32 %v731_v61, 0.0  ;;  %v1492_v5 = vmax.f32 %v1378_v0, 0.0 }
 0x18d   :  { %v844_v8 = vmax.f32 %v726_v1, 0.0  ;;  %v1991_v9 = vpop.f32.mrb[52].mxu0  ;;  %v1491_v10 = vmax.f32 %v1373_v4, 0.0  ;;  %v2091_v12 = vpop.f32.mrb[52].mxu1 }
 0x18e   :  { %1557 = vst.msk [vmem:[%s3478_s6 + $0x198] sm:$0xff] %vm1505_vm1, %v845_v3  ;;  %v741_v11 = vadd.f32 %v1991_v9, %v2828_v6  ;;  %v735_v13 = vpop.f32.mrb[53].mxu0  ;;  %1621 = vst.msk [vmem:[%s3479_s7 + $0x198] sm:$0xff] %vm1505_vm1, %v1492_v5  ;;  %v1388_v14 = vadd.f32 %v2091_v12, %v2830_v7  ;;  %v1382_v16 = vpop.f32.mrb[53].mxu1 }
 0x18f   :  { %1556 = vst.msk [vmem:[%s3478_s6 + $0x190] sm:$0xff] %vm1505_vm1, %v844_v8  ;;  %v736_v15 = vadd.f32 %v2828_v6, %v735_v13  ;;  %1620 = vst.msk [vmem:[%s3479_s7 + $0x190] sm:$0xff] %vm1505_vm1, %v1491_v10  ;;  %v1383_v18 = vadd.f32 %v2830_v7, %v1382_v16 }
 0x190   :  { %v847_v17 = vmax.f32 %v741_v11, 0.0  ;;  %v1494_v19 = vmax.f32 %v1388_v14, 0.0 }
 0x191   :  { %v846_v20 = vmax.f32 %v736_v15, 0.0  ;;  %v1994_v21 = vpop.f32.mrb[54].mxu0  ;;  %v1493_v22 = vmax.f32 %v1383_v18, 0.0  ;;  %v2094_v24 = vpop.f32.mrb[54].mxu1 }
 0x192   :  { %1559 = vst.msk [vmem:[%s3478_s6 + $0x1a8] sm:$0xff] %vm1505_vm1, %v847_v17  ;;  %v751_v23 = vadd.f32 %v1994_v21, %v2828_v6  ;;  %v745_v25 = vpop.f32.mrb[55].mxu0  ;;  %1623 = vst.msk [vmem:[%s3479_s7 + $0x1a8] sm:$0xff] %vm1505_vm1, %v1494_v19  ;;  %v1398_v26 = vadd.f32 %v2094_v24, %v2830_v7  ;;  %v1392_v28 = vpop.f32.mrb[55].mxu1 }
 0x193   :  { %1558 = vst.msk [vmem:[%s3478_s6 + $0x1a0] sm:$0xff] %vm1505_vm1, %v846_v20  ;;  %v746_v27 = vadd.f32 %v2828_v6, %v745_v25  ;;  %1622 = vst.msk [vmem:[%s3479_s7 + $0x1a0] sm:$0xff] %vm1505_vm1, %v1493_v22  ;;  %v1393_v30 = vadd.f32 %v2830_v7, %v1392_v28 }
 0x194   :  { %v849_v29 = vmax.f32 %v751_v23, 0.0  ;;  %v1496_v31 = vmax.f32 %v1398_v26, 0.0 }
 0x195   :  { %v848_v32 = vmax.f32 %v746_v27, 0.0  ;;  %v1997_v33 = vpop.f32.mrb[56].mxu0  ;;  %v1495_v34 = vmax.f32 %v1393_v30, 0.0  ;;  %v2097_v36 = vpop.f32.mrb[56].mxu1 }
 0x196   :  { %1561 = vst.msk [vmem:[%s3478_s6 + $0x1b8] sm:$0xff] %vm1505_vm1, %v849_v29  ;;  %v761_v35 = vadd.f32 %v1997_v33, %v2828_v6  ;;  %v755_v37 = vpop.f32.mrb[57].mxu0  ;;  %1625 = vst.msk [vmem:[%s3479_s7 + $0x1b8] sm:$0xff] %vm1505_vm1, %v1496_v31  ;;  %v1408_v38 = vadd.f32 %v2097_v36, %v2830_v7  ;;  %v1402_v40 = vpop.f32.mrb[57].mxu1 }
 0x197   :  { %1560 = vst.msk [vmem:[%s3478_s6 + $0x1b0] sm:$0xff] %vm1505_vm1, %v848_v32  ;;  %v756_v39 = vadd.f32 %v2828_v6, %v755_v37  ;;  %1624 = vst.msk [vmem:[%s3479_s7 + $0x1b0] sm:$0xff] %vm1505_vm1, %v1495_v34  ;;  %v1403_v42 = vadd.f32 %v2830_v7, %v1402_v40 }
 0x198   :  { %v851_v41 = vmax.f32 %v761_v35, 0.0  ;;  %v1498_v43 = vmax.f32 %v1408_v38, 0.0 }
 0x199   :  { %v850_v44 = vmax.f32 %v756_v39, 0.0  ;;  %v2000_v45 = vpop.f32.mrb[58].mxu0  ;;  %v1497_v46 = vmax.f32 %v1403_v42, 0.0  ;;  %v2100_v48 = vpop.f32.mrb[58].mxu1 }
 0x19a   :  { %1563 = vst.msk [vmem:[%s3478_s6 + $0x1c8] sm:$0xff] %vm1505_vm1, %v851_v41  ;;  %v771_v47 = vadd.f32 %v2000_v45, %v2828_v6  ;;  %v765_v49 = vpop.f32.mrb[59].mxu0  ;;  %1627 = vst.msk [vmem:[%s3479_s7 + $0x1c8] sm:$0xff] %vm1505_vm1, %v1498_v43  ;;  %v1418_v50 = vadd.f32 %v2100_v48, %v2830_v7  ;;  %v1412_v52 = vpop.f32.mrb[59].mxu1 }
 0x19b   :  { %1562 = vst.msk [vmem:[%s3478_s6 + $0x1c0] sm:$0xff] %vm1505_vm1, %v850_v44  ;;  %v766_v51 = vadd.f32 %v2828_v6, %v765_v49  ;;  %1626 = vst.msk [vmem:[%s3479_s7 + $0x1c0] sm:$0xff] %vm1505_vm1, %v1497_v46  ;;  %v1413_v54 = vadd.f32 %v2830_v7, %v1412_v52 }
 0x19c   :  { %v853_v53 = vmax.f32 %v771_v47, 0.0  ;;  %v1500_v55 = vmax.f32 %v1418_v50, 0.0 }
 0x19d   :  { %v852_v56 = vmax.f32 %v766_v51, 0.0  ;;  %v2003_v57 = vpop.f32.mrb[60].mxu0  ;;  %v1499_v58 = vmax.f32 %v1413_v54, 0.0  ;;  %v2103_v60 = vpop.f32.mrb[60].mxu1 }
 0x19e   :  { %1565 = vst.msk [vmem:[%s3478_s6 + $0x1d8] sm:$0xff] %vm1505_vm1, %v853_v53  ;;  %v781_v59 = vadd.f32 %v2003_v57, %v2828_v6  ;;  %v775_v61 = vpop.f32.mrb[61].mxu0  ;;  %1629 = vst.msk [vmem:[%s3479_s7 + $0x1d8] sm:$0xff] %vm1505_vm1, %v1500_v55  ;;  %v1428_v62 = vadd.f32 %v2103_v60, %v2830_v7  ;;  %v1422_v0 = vpop.f32.mrb[61].mxu1 }
 0x19f   :  { %1564 = vst.msk [vmem:[%s3478_s6 + $0x1d0] sm:$0xff] %vm1505_vm1, %v852_v56  ;;  %v776_v63 = vadd.f32 %v2828_v6, %v775_v61  ;;  %1628 = vst.msk [vmem:[%s3479_s7 + $0x1d0] sm:$0xff] %vm1505_vm1, %v1499_v58  ;;  %v1423_v2 = vadd.f32 %v2830_v7, %v1422_v0 }
 0x1a0   :  { %v855_v1 = vmax.f32 %v781_v59, 0.0  ;;  %v1502_v3 = vmax.f32 %v1428_v62, 0.0 }
 0x1a1   :  { %v854_v4 = vmax.f32 %v776_v63, 0.0  ;;  %v2006_v5 = vpop.f32.mrb[62].mxu0  ;;  %v1501_v8 = vmax.f32 %v1423_v2, 0.0  ;;  %v2106_v10 = vpop.f32.mrb[62].mxu1 }
 0x1a2   :  { %1567 = vst.msk [vmem:[%s3478_s6 + $0x1e8] sm:$0xff] %vm1505_vm1, %v855_v1  ;;  %v791_v9 = vadd.f32 %v2006_v5, %v2828_v6  ;;  %v785_v11 = vpop.f32.mrb[63].mxu0  ;;  %1631 = vst.msk [vmem:[%s3479_s7 + $0x1e8] sm:$0xff] %vm1505_vm1, %v1502_v3  ;;  %v1438_v12 = vadd.f32 %v2106_v10, %v2830_v7  ;;  %v1432_v14 = vpop.f32.mrb[63].mxu1 }
 0x1a3   :  { %1566 = vst.msk [vmem:[%s3478_s6 + $0x1e0] sm:$0xff] %vm1505_vm1, %v854_v4  ;;  %v786_v13 = vadd.f32 %v2828_v6, %v785_v11  ;;  %1630 = vst.msk [vmem:[%s3479_s7 + $0x1e0] sm:$0xff] %vm1505_vm1, %v1501_v8  ;;  %v1433_v16 = vadd.f32 %v2830_v7, %v1432_v14 }
 0x1a4   :  { %v857_v15 = vmax.f32 %v791_v9, 0.0  ;;  %v1504_v17 = vmax.f32 %v1438_v12, 0.0 }
 0x1a5   :  { %v856_v18 = vmax.f32 %v786_v13, 0.0  ;;  %v1503_v19 = vmax.f32 %v1433_v16, 0.0 }
 0x1a6   :  { %1569 = vst.msk [vmem:[%s3478_s6 + $0x1f8] sm:$0xff] %vm1505_vm1, %v857_v15  ;;  %1633 = vst.msk [vmem:[%s3479_s7 + $0x1f8] sm:$0xff] %vm1505_vm1, %v1504_v17 }
 0x1a7   :  { %1568 = vst.msk [vmem:[%s3478_s6 + $0x1f0] sm:$0xff] %vm1505_vm1, %v856_v18  ;;  %1632 = vst.msk [vmem:[%s3479_s7 + $0x1f0] sm:$0xff] %vm1505_vm1, %v1503_v19 }
 0x1a8   :  { %1642 = vsyncpa [#allocation3], 1 }
 0x1a9   :  { %1643 = vsyncpa [#allocation5], 1 }
 0x1aa   :  { %1644 = vsyncpa [#allocation8], 1 }

// kernel: gnn_forward.7
= control target key start
LH: loop header
LB: loop body
LE: loop exit
PB: predicated region body
PF: predicated region fallthrough
CT: control target
= control target key end

     0   :  { %s3391_s15 = smov 0   ;;  %s4281_s0 = inlined_call_operand.vmem [shape: bf16[768,768], index: 0, kind: input, shape index: {}]   ;;  %s4282_s1 = inlined_call_operand.vmem [shape: f32[768,64], index: 1, kind: input, shape index: {}]   ;;  %s4283_s2 = inlined_call_operand.vmem [shape: f32[64,64], index: 2, kind: input, shape index: {}]   ;;  %s4284_s3 = inlined_call_operand.vmem [shape: f32[1,64], index: 3, kind: input, shape index: {}]   ;;  %s4285_s4 = inlined_call_operand.vmem [shape: f32[768,64], index: 4, kind: output, shape index: {}]  }
   0x1 LB: > { %s2377_s16 = sadd.s32 4294967295, %s3364_s15   ;;  %p2381_p0 = scmp.ge.s32.totalorder %s3364_s15, 1  ;;  %s3364_s15 = sphi %s3391_s15, %s14_s15  }
   0x2   : > { %p164_p1 = scmp.lt.s32.totalorder %s3364_s15, 4 }
   0x4   : > { %p165_p2 = pnand %p2381_p0, %p164_p1 }
   0x5   : > { %v301_v0 = vld [vmem:[%s4283_s2] sm:$0xff] (!%p165_p2)  ;;  %v302_v1 = vld [vmem:[%s4283_s2 + $0x8] sm:$0xff] (!%p165_p2)  ;;  %v303_v2 = vld [vmem:[%s4283_s2 + $0x10] sm:$0xff] (!%p165_p2)  ;;  %vm309_vm0 = vcmask (!%p165_p2), 523264   ;;  %s2382_s19 = sshll.u32 (!%p165_p2), %s2377_s16, 5 }
   0x6   : > { %168 = sbr.rel (%p165_p2) target bundleno = 775 (0x307), region = 36  ;;  %v3181_v3 = vpack.c.bf16 (!%p165_p2), %v302_v1, %v301_v0  ;;  %v304_v4 = vld [vmem:[%s4283_s2 + $0x18] sm:$0xff] (!%p165_p2)  ;;  %v305_v6 = vld [vmem:[%s4283_s2 + $0x20] sm:$0xff] (!%p165_p2)  ;;  %v306_v7 = vld [vmem:[%s4283_s2 + $0x28] sm:$0xff] (!%p165_p2)  ;;  %p192_p3 = scmp.lt.s32.totalorder (!%p165_p2), %s2382_s19, 95 }
   0x7   : > { %v3185_v5 = vpack.c.bf16 (!%p165_p2), %v304_v4, %v303_v2  ;;  %v205_v8 = vld [vmem:[%s4282_s1] sm:$0xff] (!%p165_p2)  ;;  %v3189_v9 = vpack.c.bf16 (!%p165_p2), %v306_v7, %v305_v6  ;;  %v307_v10 = vld [vmem:[%s4283_s2 + $0x30] sm:$0xff] (!%p165_p2)  ;;  %v308_v11 = vld [vmem:[%s4283_s2 + $0x38] sm:$0xff] (!%p165_p2) }
   0x8   : > { %3182 = vmatprep.subr.bf16.mxu0 (!%p165_p2), %v3181_v3  ;;  %3037 = vmatprep.mubr.msk.f32.mxu0 (!%p165_p2), %vm309_vm0, %v205_v8  ;;  %v3193_v12 = vpack.c.bf16 (!%p165_p2), %v308_v11, %v307_v10  ;;  %v206_v13 = vld [vmem:[%s4282_s1 + $0x8] sm:$0xff] (!%p165_p2)  ;;  %v207_v14 = vld [vmem:[%s4282_s1 + $0x10] sm:$0xff] (!%p165_p2)  ;;  %v208_v15 = vld [vmem:[%s4282_s1 + $0x18] sm:$0xff] (!%p165_p2) }
   0x9   : > { %3184 = vmatpush3.bf16.msra.mxu0 (!%p165_p2), %v3181_v3  ;;  %3197 = vmatprep.subr.bf16.mxu1 (!%p165_p2), %v3181_v3  ;;  %v209_v16 = vld [vmem:[%s4282_s1 + $0x20] sm:$0xff] (!%p165_p2)  ;;  %v210_v17 = vld [vmem:[%s4282_s1 + $0x28] sm:$0xff] (!%p165_p2)  ;;  %v211_v20 = vld [vmem:[%s4282_s1 + $0x30] sm:$0xff] (!%p165_p2) }
   0xa   : > { %3186 = vmatprep.subr.bf16.mxu0 (!%p165_p2), %v3185_v5  ;;  %3201 = vmatpush3.bf16.msra.mxu1 (!%p165_p2), %v3181_v3  ;;  %v285_v18 = vld [vmem:[%s4282_s1 + $0x280] sm:$0xff] (!%p165_p2)  ;;  %v286_v19 = vld [vmem:[%s4282_s1 + $0x288] sm:$0xff] (!%p165_p2)  ;;  %v287_v21 = vld [vmem:[%s4282_s1 + $0x290] sm:$0xff] (!%p165_p2) }
   0xb   : > { %3198 = vmatprep.subr.bf16.mxu1 (!%p165_p2), %v3185_v5  ;;  %3157 = vmatprep.mubr.msk.f32.mxu1 (!%p165_p2), %vm309_vm0, %v285_v18  ;;  %v288_v22 = vld [vmem:[%s4282_s1 + $0x298] sm:$0xff] (!%p165_p2)  ;;  %v289_v24 = vld [vmem:[%s4282_s1 + $0x2a0] sm:$0xff] (!%p165_p2)  ;;  %v290_v26 = vld [vmem:[%s4282_s1 + $0x2a8] sm:$0xff] (!%p165_p2) }
   0xc   : > { %v212_v23 = vld [vmem:[%s4282_s1 + $0x38] sm:$0xff] (!%p165_p2)  ;;  %v213_v25 = vld [vmem:[%s4282_s1 + $0x40] sm:$0xff] (!%p165_p2)  ;;  %v214_v27 = vld [vmem:[%s4282_s1 + $0x48] sm:$0xff] (!%p165_p2) }
   0xd   : > { %3188 = vmatpush3.bf16.msra.mxu0 %v3185_v5  ;;  %v291_v28 = vld [vmem:[%s4282_s1 + $0x2b0] sm:$0xff]  ;;  %v292_v30 = vld [vmem:[%s4282_s1 + $0x2b8] sm:$0xff]  ;;  %v293_v32 = vld [vmem:[%s4282_s1 + $0x2c0] sm:$0xff]  ;;  %s4287_s19 = smov (!%p192_p3, %s2382_s19), 95 }
   0xe   : > { %3190 = vmatprep.subr.bf16.mxu0 %v3189_v9  ;;  %3202 = vmatpush3.bf16.msra.mxu1 %v3185_v5  ;;  %v215_v29 = vld [vmem:[%s4282_s1 + $0x50] sm:$0xff]  ;;  %v216_v31 = vld [vmem:[%s4282_s1 + $0x58] sm:$0xff]  ;;  %v217_v33 = vld [vmem:[%s4282_s1 + $0x60] sm:$0xff]  ;;  %s3205_s25 = smul.u32 24, %s4287_s19  ;;  %s2385_s13 = sshll.u32 %s4287_s19, 3 }
   0xf   : > { %3199 = vmatprep.subr.bf16.mxu1 %v3189_v9  ;;  %v294_v34 = vld [vmem:[%s4282_s1 + $0x2c8] sm:$0xff]  ;;  %v295_v36 = vld [vmem:[%s4282_s1 + $0x2d0] sm:$0xff]  ;;  %v296_v38 = vld [vmem:[%s4282_s1 + $0x2d8] sm:$0xff]  ;;  %s4078_s18 = scalar_lea.vmem %s4285_s4, %s2385_s13 }
  0x10   : > { %v218_v35 = vld [vmem:[%s4282_s1 + $0x68] sm:$0xff]  ;;  %v219_v37 = vld [vmem:[%s4282_s1 + $0x70] sm:$0xff]  ;;  %v220_v39 = vld [vmem:[%s4282_s1 + $0x78] sm:$0xff]  ;;  %s3804_s6 = scalar_lea.vmem %s4281_s0, %s3205_s25 }
  0x11   : > { %3192 = vmatpush3.bf16.msra.mxu0 %v3189_v9  ;;  %v297_v40 = vld [vmem:[%s4282_s1 + $0x2e0] sm:$0xff]  ;;  %v298_v42 = vld [vmem:[%s4282_s1 + $0x2e8] sm:$0xff]  ;;  %v299_v44 = vld [vmem:[%s4282_s1 + $0x2f0] sm:$0xff] }
  0x12   : > { %3194 = vmatprep.subr.bf16.mxu0 %v3193_v12  ;;  %3203 = vmatpush3.bf16.msra.mxu1 %v3189_v9  ;;  %v221_v41 = vld [vmem:[%s4282_s1 + $0x80] sm:$0xff]  ;;  %v222_v43 = vld [vmem:[%s4282_s1 + $0x88] sm:$0xff]  ;;  %v223_v45 = vld [vmem:[%s4282_s1 + $0x90] sm:$0xff] }
  0x13   : > { %3200 = vmatprep.subr.bf16.mxu1 %v3193_v12  ;;  %v300_v46 = vld [vmem:[%s4282_s1 + $0x2f8] sm:$0xff]  ;;  %v225_v48 = vld [vmem:[%s4282_s1 + $0xa0] sm:$0xff]  ;;  %v226_v49 = vld [vmem:[%s4282_s1 + $0xa8] sm:$0xff] }
  0x14   : > { %v224_v47 = vld [vmem:[%s4282_s1 + $0x98] sm:$0xff]  ;;  %v227_v50 = vld [vmem:[%s4282_s1 + $0xb0] sm:$0xff]  ;;  %v229_v52 = vld [vmem:[%s4282_s1 + $0xc0] sm:$0xff] }
  0x15   : > { %3196 = vmatpush3.bf16.msra.mxu0 %v3193_v12  ;;  %v228_v51 = vld [vmem:[%s4282_s1 + $0xb8] sm:$0xff]  ;;  %v230_v53 = vld [vmem:[%s4282_s1 + $0xc8] sm:$0xff]  ;;  %v231_v54 = vld [vmem:[%s4282_s1 + $0xd0] sm:$0xff] }
  0x16   : > { %3204 = vmatpush3.bf16.msra.mxu1 %v3193_v12  ;;  %v232_v55 = vld [vmem:[%s4282_s1 + $0xd8] sm:$0xff]  ;;  %v233_v56 = vld [vmem:[%s4282_s1 + $0xe0] sm:$0xff]  ;;  %v234_v57 = vld [vmem:[%s4282_s1 + $0xe8] sm:$0xff] }
  0x17   : > { %v235_v58 = vld [vmem:[%s4282_s1 + $0xf0] sm:$0xff]  ;;  %v236_v59 = vld [vmem:[%s4282_s1 + $0xf8] sm:$0xff]  ;;  %v237_v60 = vld [vmem:[%s4282_s1 + $0x100] sm:$0xff] }
  0x18   : > { %3038 = vmatmul.mubr.msk.f32.vlgmr.msra.gmra.mrb[0].mxu0 %vm309_vm0, %v206_v13  ;;  %v238_v61 = vld [vmem:[%s4282_s1 + $0x108] sm:$0xff]  ;;  %v239_v62 = vld [vmem:[%s4282_s1 + $0x110] sm:$0xff]  ;;  %v240_v63 = vld [vmem:[%s4282_s1 + $0x118] sm:$0xff] }
  0x19   : > { %3040 = vmatprep.mubr.msk.f32.mxu0 %vm309_vm0, %v207_v14  ;;  %3158 = vmatmul.mubr.msk.f32.vlgmr.msra.gmra.mrb[0].mxu1 %vm309_vm0, %v286_v19  ;;  %v241_v0 = vld [vmem:[%s4282_s1 + $0x120] sm:$0xff]  ;;  %v242_v1 = vld [vmem:[%s4282_s1 + $0x128] sm:$0xff]  ;;  %v243_v2 = vld [vmem:[%s4282_s1 + $0x130] sm:$0xff] }
  0x1a   : > { %3160 = vmatprep.mubr.msk.f32.mxu1 %vm309_vm0, %v287_v21  ;;  %v244_v3 = vld [vmem:[%s4282_s1 + $0x138] sm:$0xff]  ;;  %v245_v4 = vld [vmem:[%s4282_s1 + $0x140] sm:$0xff]  ;;  %v246_v5 = vld [vmem:[%s4282_s1 + $0x148] sm:$0xff] }
  0x1b   : > { %v247_v6 = vld [vmem:[%s4282_s1 + $0x150] sm:$0xff]  ;;  %v248_v7 = vld [vmem:[%s4282_s1 + $0x158] sm:$0xff]  ;;  %v249_v8 = vld [vmem:[%s4282_s1 + $0x160] sm:$0xff] }
  0x1c   : > { %3041 = vmatmul.mubr.msk.f32.gmra.mrb[2].mxu0 %vm309_vm0, %v208_v15  ;;  %v250_v9 = vld [vmem:[%s4282_s1 + $0x168] sm:$0xff]  ;;  %v251_v10 = vld [vmem:[%s4282_s1 + $0x170] sm:$0xff]  ;;  %v252_v11 = vld [vmem:[%s4282_s1 + $0x178] sm:$0xff] }
  0x1d   : > { %3043 = vmatprep.mubr.msk.f32.mxu0 %vm309_vm0, %v209_v16  ;;  %3161 = vmatmul.mubr.msk.f32.gmra.mrb[2].mxu1 %vm309_vm0, %v288_v22  ;;  %v253_v12 = vld [vmem:[%s4282_s1 + $0x180] sm:$0xff]  ;;  %v254_v13 = vld [vmem:[%s4282_s1 + $0x188] sm:$0xff]  ;;  %v255_v14 = vld [vmem:[%s4282_s1 + $0x190] sm:$0xff] }
  0x1e   : > { %3163 = vmatprep.mubr.msk.f32.mxu1 %vm309_vm0, %v289_v24  ;;  %v256_v15 = vld [vmem:[%s4282_s1 + $0x198] sm:$0xff]  ;;  %v257_v16 = vld [vmem:[%s4282_s1 + $0x1a0] sm:$0xff]  ;;  %v259_v18 = vld [vmem:[%s4282_s1 + $0x1b0] sm:$0xff] }
  0x1f   : > { %v260_v19 = vld [vmem:[%s4282_s1 + $0x1b8] sm:$0xff]  ;;  %v262_v21 = vld [vmem:[%s4282_s1 + $0x1c8] sm:$0xff]  ;;  %v263_v22 = vld [vmem:[%s4282_s1 + $0x1d0] sm:$0xff] }
  0x20   : > { %3044 = vmatmul.mubr.msk.f32.gmra.mrb[4].mxu0 %vm309_vm0, %v210_v17  ;;  %v258_v17 = vld [vmem:[%s4282_s1 + $0x1a8] sm:$0xff]  ;;  %v265_v24 = vld [vmem:[%s4282_s1 + $0x1e0] sm:$0xff] }
  0x21   : > { %3046 = vmatprep.mubr.msk.f32.mxu0 %vm309_vm0, %v211_v20  ;;  %3164 = vmatmul.mubr.msk.f32.gmra.mrb[4].mxu1 %vm309_vm0, %v290_v26  ;;  %v261_v20 = vld [vmem:[%s4282_s1 + $0x1c0] sm:$0xff]  ;;  %v267_v26 = vld [vmem:[%s4282_s1 + $0x1f0] sm:$0xff] }
  0x22   : > { %3166 = vmatprep.mubr.msk.f32.mxu1 %vm309_vm0, %v291_v28  ;;  %v269_v28 = vld [vmem:[%s4282_s1 + $0x200] sm:$0xff] }
  0x24   : > { %3047 = vmatmul.mubr.msk.f32.gmra.mrb[6].mxu0 %vm309_vm0, %v212_v23  ;;  %v264_v23 = vld [vmem:[%s4282_s1 + $0x1d8] sm:$0xff] }
  0x25   : > { %3049 = vmatprep.mubr.msk.f32.mxu0 %vm309_vm0, %v213_v25  ;;  %3167 = vmatmul.mubr.msk.f32.gmra.mrb[6].mxu1 %vm309_vm0, %v292_v30  ;;  %v266_v25 = vld [vmem:[%s4282_s1 + $0x1e8] sm:$0xff]  ;;  %v271_v30 = vld [vmem:[%s4282_s1 + $0x210] sm:$0xff] }
  0x26   : > { %3169 = vmatprep.mubr.msk.f32.mxu1 %vm309_vm0, %v293_v32  ;;  %v273_v32 = vld [vmem:[%s4282_s1 + $0x220] sm:$0xff] }
  0x28   : > { %3050 = vmatmul.mubr.msk.f32.gmra.mrb[8].mxu0 %vm309_vm0, %v214_v27  ;;  %v268_v27 = vld [vmem:[%s4282_s1 + $0x1f8] sm:$0xff] }
  0x29   : > { %3052 = vmatprep.mubr.msk.f32.mxu0 %vm309_vm0, %v215_v29  ;;  %3170 = vmatmul.mubr.msk.f32.gmra.mrb[8].mxu1 %vm309_vm0, %v294_v34  ;;  %v270_v29 = vld [vmem:[%s4282_s1 + $0x208] sm:$0xff]  ;;  %v275_v34 = vld [vmem:[%s4282_s1 + $0x230] sm:$0xff] }
  0x2a   : > { %3172 = vmatprep.mubr.msk.f32.mxu1 %vm309_vm0, %v295_v36  ;;  %v277_v36 = vld [vmem:[%s4282_s1 + $0x240] sm:$0xff] }
  0x2c   : > { %3053 = vmatmul.mubr.msk.f32.gmra.mrb[10].mxu0 %vm309_vm0, %v216_v31  ;;  %v272_v31 = vld [vmem:[%s4282_s1 + $0x218] sm:$0xff] }
  0x2d   : > { %3055 = vmatprep.mubr.msk.f32.mxu0 %vm309_vm0, %v217_v33  ;;  %3173 = vmatmul.mubr.msk.f32.gmra.mrb[10].mxu1 %vm309_vm0, %v296_v38  ;;  %v274_v33 = vld [vmem:[%s4282_s1 + $0x228] sm:$0xff]  ;;  %v279_v38 = vld [vmem:[%s4282_s1 + $0x250] sm:$0xff] }
  0x2e   : > { %3175 = vmatprep.mubr.msk.f32.mxu1 %vm309_vm0, %v297_v40  ;;  %v281_v40 = vld [vmem:[%s4282_s1 + $0x260] sm:$0xff] }
  0x30   : > { %3056 = vmatmul.mubr.msk.f32.gmra.mrb[12].mxu0 %vm309_vm0, %v218_v35  ;;  %v276_v35 = vld [vmem:[%s4282_s1 + $0x238] sm:$0xff] }
  0x31   : > { %3058 = vmatprep.mubr.msk.f32.mxu0 %vm309_vm0, %v219_v37  ;;  %3176 = vmatmul.mubr.msk.f32.gmra.mrb[12].mxu1 %vm309_vm0, %v298_v42  ;;  %v278_v37 = vld [vmem:[%s4282_s1 + $0x248] sm:$0xff]  ;;  %v3216_v42 = vld [vmem:[%s3804_s6 + $0x4] ss:$24 sps:$4 sm:$0xff]  }
  0x32   : > { %3178 = vmatprep.mubr.msk.f32.mxu1 %vm309_vm0, %v299_v44  ;;  %v284_v44 = vld [vmem:[%s4282_s1 + $0x278] sm:$0xff] }
  0x34   : > { %3059 = vmatmul.mubr.msk.f32.gmra.mrb[14].mxu0 %vm309_vm0, %v220_v39  ;;  %v280_v39 = vld [vmem:[%s4282_s1 + $0x258] sm:$0xff] }
  0x35   : > { %3061 = vmatprep.mubr.msk.f32.mxu0 %vm309_vm0, %v221_v41  ;;  %3179 = vmatmul.mubr.msk.f32.gmra.mrb[14].mxu1 %vm309_vm0, %v300_v46  ;;  %v282_v41 = vld [vmem:[%s4282_s1 + $0x268] sm:$0xff] }
  0x36   : > { %1806 = vmatprep.mubr.bf16.mxu1 %v3216_v42 }
  0x38   : > { %3062 = vmatmul.mubr.msk.f32.gmra.mrb[16].mxu0 %vm309_vm0, %v222_v43  ;;  %v283_v43 = vld [vmem:[%s4282_s1 + $0x270] sm:$0xff] }
  0x39   : > { %3064 = vmatprep.mubr.msk.f32.mxu0 %vm309_vm0, %v223_v45 }
  0x3c   : > { %3065 = vmatmul.mubr.msk.f32.gmra.mrb[18].mxu0 %vm309_vm0, %v224_v47 }
  0x3d   : > { %3067 = vmatprep.mubr.msk.f32.mxu0 %vm309_vm0, %v225_v48 }
  0x40   : > { %3068 = vmatmul.mubr.msk.f32.gmra.mrb[20].mxu0 %vm309_vm0, %v226_v49 }
  0x41   : > { %3070 = vmatprep.mubr.msk.f32.mxu0 %vm309_vm0, %v227_v50 }
  0x44   : > { %3071 = vmatmul.mubr.msk.f32.gmra.mrb[22].mxu0 %vm309_vm0, %v228_v51 }
  0x45   : > { %3073 = vmatprep.mubr.msk.f32.mxu0 %vm309_vm0, %v229_v52 }
  0x48   : > { %3074 = vmatmul.mubr.msk.f32.gmra.mrb[24].mxu0 %vm309_vm0, %v230_v53 }
  0x49   : > { %3076 = vmatprep.mubr.msk.f32.mxu0 %vm309_vm0, %v231_v54 }
  0x4c   : > { %3077 = vmatmul.mubr.msk.f32.gmra.mrb[26].mxu0 %vm309_vm0, %v232_v55 }
  0x4d   : > { %3079 = vmatprep.mubr.msk.f32.mxu0 %vm309_vm0, %v233_v56 }
  0x50   : > { %3080 = vmatmul.mubr.msk.f32.gmra.mrb[28].mxu0 %vm309_vm0, %v234_v57 }
  0x51   : > { %3082 = vmatprep.mubr.msk.f32.mxu0 %vm309_vm0, %v235_v58 }
  0x54   : > { %3083 = vmatmul.mubr.msk.f32.gmra.mrb[30].mxu0 %vm309_vm0, %v236_v59 }
  0x55   : > { %3085 = vmatprep.mubr.msk.f32.mxu0 %vm309_vm0, %v237_v60 }
  0x58   : > { %3086 = vmatmul.mubr.msk.f32.gmra.mrb[32].mxu0 %vm309_vm0, %v238_v61 }
  0x59   : > { %3088 = vmatprep.mubr.msk.f32.mxu0 %vm309_vm0, %v239_v62 }
  0x5c   : > { %3089 = vmatmul.mubr.msk.f32.gmra.mrb[34].mxu0 %vm309_vm0, %v240_v63 }
  0x5d   : > { %3091 = vmatprep.mubr.msk.f32.mxu0 %vm309_vm0, %v241_v0 }
  0x60   : > { %3092 = vmatmul.mubr.msk.f32.gmra.mrb[36].mxu0 %vm309_vm0, %v242_v1 }
  0x61   : > { %3094 = vmatprep.mubr.msk.f32.mxu0 %vm309_vm0, %v243_v2 }
  0x64   : > { %3095 = vmatmul.mubr.msk.f32.gmra.mrb[38].mxu0 %vm309_vm0, %v244_v3 }
  0x65   : > { %3097 = vmatprep.mubr.msk.f32.mxu0 %vm309_vm0, %v245_v4 }
  0x68   : > { %3098 = vmatmul.mubr.msk.f32.gmra.mrb[40].mxu0 %vm309_vm0, %v246_v5 }
  0x69   : > { %3100 = vmatprep.mubr.msk.f32.mxu0 %vm309_vm0, %v247_v6 }
  0x6c   : > { %3101 = vmatmul.mubr.msk.f32.gmra.mrb[42].mxu0 %vm309_vm0, %v248_v7 }
  0x6d   : > { %3103 = vmatprep.mubr.msk.f32.mxu0 %vm309_vm0, %v249_v8 }
  0x70   : > { %3104 = vmatmul.mubr.msk.f32.gmra.mrb[44].mxu0 %vm309_vm0, %v250_v9 }
  0x71   : > { %3106 = vmatprep.mubr.msk.f32.mxu0 %vm309_vm0, %v251_v10 }
  0x74   : > { %3107 = vmatmul.mubr.msk.f32.gmra.mrb[46].mxu0 %vm309_vm0, %v252_v11 }
  0x75   : > { %3109 = vmatprep.mubr.msk.f32.mxu0 %vm309_vm0, %v253_v12 }
  0x78   : > { %3110 = vmatmul.mubr.msk.f32.gmra.mrb[48].mxu0 %vm309_vm0, %v254_v13 }
  0x79   : > { %3112 = vmatprep.mubr.msk.f32.mxu0 %vm309_vm0, %v255_v14 }
  0x7c   : > { %3113 = vmatmul.mubr.msk.f32.gmra.mrb[50].mxu0 %vm309_vm0, %v256_v15 }
  0x7d   : > { %3115 = vmatprep.mubr.msk.f32.mxu0 %vm309_vm0, %v257_v16 }
  0x80   : > { %3116 = vmatmul.mubr.msk.f32.gmra.mrb[52].mxu0 %vm309_vm0, %v258_v17 }
  0x81   : > { %3118 = vmatprep.mubr.msk.f32.mxu0 %vm309_vm0, %v259_v18 }
  0x84   : > { %3119 = vmatmul.mubr.msk.f32.gmra.mrb[54].mxu0 %vm309_vm0, %v260_v19 }
  0x85   : > { %3121 = vmatprep.mubr.msk.f32.mxu0 %vm309_vm0, %v261_v20 }
  0x88   : > { %3122 = vmatmul.mubr.msk.f32.gmra.mrb[56].mxu0 %vm309_vm0, %v262_v21 }
  0x89   : > { %3124 = vmatprep.mubr.msk.f32.mxu0 %vm309_vm0, %v263_v22 }
  0x8c   : > { %3125 = vmatmul.mubr.msk.f32.gmra.mrb[58].mxu0 %vm309_vm0, %v264_v23 }
  0x8d   : > { %3127 = vmatprep.mubr.msk.f32.mxu0 %vm309_vm0, %v265_v24 }
  0x90   : > { %3128 = vmatmul.mubr.msk.f32.gmra.mrb[60].mxu0 %vm309_vm0, %v266_v25 }
  0x91   : > { %3130 = vmatprep.mubr.msk.f32.mxu0 %vm309_vm0, %v267_v26 }
  0x94   : > { %3131 = vmatmul.mubr.msk.f32.gmra.mrb[62].mxu0 %vm309_vm0, %v268_v27 }
  0x95   : > { %3133 = vmatprep.mubr.msk.f32.mxu0 %vm309_vm0, %v269_v28 }
  0x98   : > { %3134 = vmatmul.mubr.msk.f32.gmra.mrb[64].mxu0 %vm309_vm0, %v270_v29 }
  0x99   : > { %3136 = vmatprep.mubr.msk.f32.mxu0 %vm309_vm0, %v271_v30 }
  0x9c   : > { %3137 = vmatmul.mubr.msk.f32.gmra.mrb[66].mxu0 %vm309_vm0, %v272_v31 }
  0x9d   : > { %3139 = vmatprep.mubr.msk.f32.mxu0 %vm309_vm0, %v273_v32 }
  0xa0   : > { %3140 = vmatmul.mubr.msk.f32.gmra.mrb[68].mxu0 %vm309_vm0, %v274_v33 }
  0xa1   : > { %3142 = vmatprep.mubr.msk.f32.mxu0 %vm309_vm0, %v275_v34 }
  0xa4   : > { %3143 = vmatmul.mubr.msk.f32.gmra.mrb[70].mxu0 %vm309_vm0, %v276_v35 }
  0xa5   : > { %3145 = vmatprep.mubr.msk.f32.mxu0 %vm309_vm0, %v277_v36 }
  0xa8   : > { %3146 = vmatmul.mubr.msk.f32.gmra.mrb[72].mxu0 %vm309_vm0, %v278_v37 }
  0xa9   : > { %3148 = vmatprep.mubr.msk.f32.mxu0 %vm309_vm0, %v279_v38 }
  0xac   : > { %3149 = vmatmul.mubr.msk.f32.gmra.mrb[74].mxu0 %vm309_vm0, %v280_v39 }
  0xad   : > { %3151 = vmatprep.mubr.msk.f32.mxu0 %vm309_vm0, %v281_v40 }
  0xb0   : > { %3152 = vmatmul.mubr.msk.f32.gmra.mrb[76].mxu0 %vm309_vm0, %v282_v41 }
  0xb1   : > { %3154 = vmatprep.mubr.msk.f32.mxu0 %vm309_vm0, %v283_v43 }
  0xb4   : > { %3155 = vmatmul.mubr.msk.f32.gmra.mrb[78].mxu0 %vm309_vm0, %v284_v44 }
  0xeb   : > { %v3039_v45 = vpop.f32.mrb[0].mxu0 }
  0xec   : > { %v664_v46 = vpop.f32.mrb[1].mxu0  ;;  %v3159_v51 = vpop.f32.mrb[0].mxu1 }
  0xed   : > { %v1239_v47 = vpack.c.bf16 %v3039_v45, %v664_v46  ;;  %v1064_v53 = vpop.f32.mrb[1].mxu1 }
  0xee   : > { %v1279_v55 = vpack.c.bf16 %v3159_v51, %v1064_v53 }
  0xef   : > { %v3042_v48 = vpop.f32.mrb[2].mxu0 }
  0xf0   : > { %v674_v49 = vpop.f32.mrb[3].mxu0  ;;  %2909 = vmatprep.subr.bf16.mxu0 %v1279_v55  ;;  %v3818_v58 = vpop.f32.mrb[2].mxu1  ;;  %v3267_v55 = vld [vmem:[%s3804_s6 + $0x14] ss:$24 sps:$4 sm:$0xff]  }
  0xf1   : > { %v1240_v50 = vpack.c.bf16 %v3042_v48, %v674_v49  ;;  %v3820_v60 = vpop.f32.mrb[3].mxu1  ;;  %2128 = vmatprep.mubr.bf16.mxu0 %v3267_v55 }
  0xf2   : > { %v1280_v62 = vpack.c.bf16 %v3818_v58, %v3820_v60  ;;  %v3246_v60 = vld [vmem:[%s3804_s6 + $0x1e0] ss:$24 sps:$4 sm:$0xff]  }
  0xf3   : > { %v3045_v52 = vpop.f32.mrb[4].mxu0 }
  0xf4   : > { %v684_v54 = vpop.f32.mrb[5].mxu0  ;;  %v3830_v15 = vpop.f32.mrb[4].mxu1 }
  0xf5   : > { %v1241_v56 = vpack.c.bf16 %v3045_v52, %v684_v54  ;;  %v3832_v17 = vpop.f32.mrb[5].mxu1  ;;  %v3214_v54 = vld [vmem:[%s3804_s6] ss:$24 sps:$4 sm:$0xff]  }
  0xf6   : > { %v1281_v19 = vpack.c.bf16 %v3830_v15, %v3832_v17 }
  0xf7   : > { %v3048_v57 = vpop.f32.mrb[6].mxu0 }
  0xf8   : > { %v694_v59 = vpop.f32.mrb[7].mxu0  ;;  %v3836_v23 = vpop.f32.mrb[6].mxu1 }
  0xf9   : > { %v1242_v61 = vpack.c.bf16 %v3048_v57, %v694_v59  ;;  %v3838_v25 = vpop.f32.mrb[7].mxu1  ;;  %v3217_v57 = vld [vmem:[%s3804_s6 + $0x34] ss:$24 sps:$4 sm:$0xff]  }
  0xfa   : > { %v1282_v27 = vpack.c.bf16 %v3836_v23, %v3838_v25  ;;  %v3249_v25 = vld [vmem:[%s3804_s6 + $0x210] ss:$24 sps:$4 sm:$0xff]  }
  0xfb   : > { %v3051_v63 = vpop.f32.mrb[8].mxu0 }
  0xfc   : > { %v704_v0 = vpop.f32.mrb[9].mxu0  ;;  %v3842_v28 = vpop.f32.mrb[8].mxu1 }
  0xfd   : > { %v1243_v1 = vpack.c.bf16 %v3051_v63, %v704_v0  ;;  %v3844_v30 = vpop.f32.mrb[9].mxu1 }
  0xfe   : > { %v1283_v31 = vpack.c.bf16 %v3842_v28, %v3844_v30  ;;  %v3250_v28 = vld [vmem:[%s3804_s6 + $0x244] ss:$24 sps:$4 sm:$0xff]  }
  0xff   : > { %v3054_v2 = vpop.f32.mrb[10].mxu0 }
 0x100   : > { %v714_v3 = vpop.f32.mrb[11].mxu0  ;;  %v3848_v35 = vpop.f32.mrb[10].mxu1 }
 0x101   : > { %v1244_v4 = vpack.c.bf16 %v3054_v2, %v714_v3  ;;  %v3850_v37 = vpop.f32.mrb[11].mxu1  ;;  %v3219_v2 = vld [vmem:[%s3804_s6 + $0x30] ss:$24 sps:$4 sm:$0xff]  }
 0x102   : > { %v1284_v39 = vpack.c.bf16 %v3848_v35, %v3850_v37 }
 0x103   : > { %v3057_v5 = vpop.f32.mrb[12].mxu0 }
 0x104   : > { %v724_v6 = vpop.f32.mrb[13].mxu0  ;;  %v3854_v40 = vpop.f32.mrb[12].mxu1 }
 0x105   : > { %v1245_v7 = vpack.c.bf16 %v3057_v5, %v724_v6  ;;  %v3856_v42 = vpop.f32.mrb[13].mxu1 }
 0x106   : > { %v1285_v43 = vpack.c.bf16 %v3854_v40, %v3856_v42  ;;  %v3271_v40 = vld [vmem:[%s3804_s6 + $0x44] ss:$24 sps:$4 sm:$0xff]   ;;  %v3253_v42 = vld [vmem:[%s3804_s6 + $0x274] ss:$24 sps:$4 sm:$0xff]  }
 0x107   : > { %v3824_v8 = vpop.f32.mrb[14].mxu0 }
 0x108   : > { %v3826_v9 = vpop.f32.mrb[15].mxu0 }
 0x109   : > { %v1246_v10 = vpack.c.bf16 %v3824_v8, %v3826_v9 }
 0x10b   : > { %v3063_v11 = vpop.f32.mrb[16].mxu0 }
 0x10c   : > { %v744_v12 = vpop.f32.mrb[17].mxu0 }
 0x10d   : > { %v1247_v13 = vpack.c.bf16 %v3063_v11, %v744_v12  ;;  %v3223_v12 = vld [vmem:[%s3804_s6 + $0x94] ss:$24 sps:$4 sm:$0xff]  }
 0x10f   : > { %v3066_v14 = vpop.f32.mrb[18].mxu0  ;;  %2685 = vmatprep.subr.bf16.mxu1 %v1247_v13 }
 0x110   : > { %v754_v16 = vpop.f32.mrb[19].mxu0  ;;  %2686 = vmatpush3.bf16.msra.mxu1 %v1239_v47  ;;  %v3860_v47 = vpop.f32.mrb[14].mxu1 }
 0x111   : > { %v1248_v18 = vpack.c.bf16 %v3066_v14, %v754_v16  ;;  %v3862_v49 = vpop.f32.mrb[15].mxu1 }
 0x112   : > { %v1286_v51 = vpack.c.bf16 %v3860_v47, %v3862_v49  ;;  %v3277_v47 = vld [vmem:[%s3804_s6 + $0x74] ss:$24 sps:$4 sm:$0xff]   ;;  %v3256_v49 = vld [vmem:[%s3804_s6 + $0x2a4] ss:$24 sps:$4 sm:$0xff]  }
 0x113   : > { %v3069_v20 = vpop.f32.mrb[20].mxu0  ;;  %2687 = vmatprep.subr.bf16.mxu1 %v1248_v18 }
 0x114   : > { %v764_v21 = vpop.f32.mrb[21].mxu0  ;;  %2688 = vmatpush3.bf16.msra.mxu1 %v1240_v50 }
 0x115   : > { %v1249_v22 = vpack.c.bf16 %v3069_v20, %v764_v21  ;;  %v3225_v21 = vld [vmem:[%s3804_s6 + $0x90] ss:$24 sps:$4 sm:$0xff]  }
 0x117   : > { %v3072_v24 = vpop.f32.mrb[22].mxu0  ;;  %2689 = vmatprep.subr.bf16.mxu1 %v1249_v22 }
 0x118   : > { %v774_v26 = vpop.f32.mrb[23].mxu0  ;;  %2690 = vmatpush3.bf16.msra.mxu1 %v1241_v56 }
 0x119   : > { %v1250_v29 = vpack.c.bf16 %v3072_v24, %v774_v26  ;;  %v3226_v24 = vld [vmem:[%s3804_s6 + $0xc4] ss:$24 sps:$4 sm:$0xff]  }
 0x11b   : > { %v3075_v32 = vpop.f32.mrb[24].mxu0  ;;  %2691 = vmatprep.subr.bf16.mxu1 %v1250_v29 }
 0x11c   : > { %v784_v33 = vpop.f32.mrb[25].mxu0  ;;  %2692 = vmatpush3.bf16.msra.mxu1 %v1242_v61 }
 0x11d   : > { %v1251_v34 = vpack.c.bf16 %v3075_v32, %v784_v33 }
 0x11f   : > { %v3078_v36 = vpop.f32.mrb[26].mxu0  ;;  %2693 = vmatprep.subr.bf16.mxu1 %v1251_v34 }
 0x120   : > { %v794_v38 = vpop.f32.mrb[27].mxu0  ;;  %2694 = vmatpush3.bf16.msra.mxu1 %v1243_v1 }
 0x121   : > { %v1252_v41 = vpack.c.bf16 %v3078_v36, %v794_v38  ;;  %v3228_v36 = vld [vmem:[%s3804_s6 + $0xc0] ss:$24 sps:$4 sm:$0xff]  }
 0x123   : > { %v3081_v44 = vpop.f32.mrb[28].mxu0  ;;  %2695 = vmatprep.subr.bf16.mxu1 %v1252_v41  ;;  %v3229_v41 = vld [vmem:[%s3804_s6 + $0xf4] ss:$24 sps:$4 sm:$0xff]  }
 0x124   : > { %v804_v45 = vpop.f32.mrb[29].mxu0  ;;  %2696 = vmatpush3.bf16.msra.mxu1 %v1244_v4  ;;  %v3220_v4 = vld [vmem:[%s3804_s6 + $0x64] ss:$24 sps:$4 sm:$0xff]  }
 0x125   : > { %v1253_v46 = vpack.c.bf16 %v3081_v44, %v804_v45 }
 0x127   : > { %v3084_v48 = vpop.f32.mrb[30].mxu0  ;;  %2697 = vmatprep.subr.bf16.mxu1 %v1253_v46 }
 0x128   : > { %v814_v50 = vpop.f32.mrb[31].mxu0  ;;  %2698 = vmatpush3.bf16.msra.mxu1 %v1245_v7 }
 0x129   : > { %v1254_v52 = vpack.c.bf16 %v3084_v48, %v814_v50 }
 0x12b   : > { %v3087_v53 = vpop.f32.mrb[32].mxu0  ;;  %2699 = vmatprep.subr.bf16.mxu1 %v1254_v52  ;;  %v3231_v52 = vld [vmem:[%s3804_s6 + $0xf0] ss:$24 sps:$4 sm:$0xff]  }
 0x12c   : > { %v824_v56 = vpop.f32.mrb[33].mxu0  ;;  %2700 = vmatpush3.bf16.msra.mxu1 %v1246_v10  ;;  %v3222_v10 = vld [vmem:[%s3804_s6 + $0x60] ss:$24 sps:$4 sm:$0xff]  }
 0x12d   : > { %v1255_v59 = vpack.c.bf16 %v3087_v53, %v824_v56 }
 0x12f   : > { %v3090_v61 = vpop.f32.mrb[34].mxu0  ;;  %1807 = vmatmul.mubr.bf16.vlgmr.msra.gmra.mrb[16].mxu1 %v3214_v54  ;;  %v3232_v54 = vld [vmem:[%s3804_s6 + $0x124] ss:$24 sps:$4 sm:$0xff]  }
 0x130   : > { %v834_v63 = vpop.f32.mrb[35].mxu0  ;;  %1814 = vmatprep.mubr.bf16.mxu1 %v3217_v57 }
 0x131   : > { %v1256_v0 = vpack.c.bf16 %v3090_v61, %v834_v63 }
 0x133   : > { %v3093_v1 = vpop.f32.mrb[36].mxu0 }
 0x134   : > { %v844_v3 = vpop.f32.mrb[37].mxu0 }
 0x135   : > { %v1257_v5 = vpack.c.bf16 %v3093_v1, %v844_v3 }
 0x137   : > { %v3096_v6 = vpop.f32.mrb[38].mxu0  ;;  %1815 = vmatmul.mubr.bf16.gmra.mrb[20].mxu1 %v3219_v2  ;;  %v3235_v2 = vld [vmem:[%s3804_s6 + $0x154] ss:$24 sps:$4 sm:$0xff]  }
 0x138   : > { %v854_v7 = vpop.f32.mrb[39].mxu0  ;;  %1822 = vmatprep.mubr.bf16.mxu1 %v3220_v4 }
 0x139   : > { %v1258_v8 = vpack.c.bf16 %v3096_v6, %v854_v7 }
 0x13b   : > { %v3099_v9 = vpop.f32.mrb[40].mxu0 }
 0x13c   : > { %v864_v11 = vpop.f32.mrb[41].mxu0 }
 0x13d   : > { %v1259_v13 = vpack.c.bf16 %v3099_v9, %v864_v11 }
 0x13f   : > { %v3102_v14 = vpop.f32.mrb[42].mxu0  ;;  %1823 = vmatmul.mubr.bf16.gmra.mrb[24].mxu1 %v3222_v10  ;;  %v3238_v10 = vld [vmem:[%s3804_s6 + $0x184] ss:$24 sps:$4 sm:$0xff]  }
 0x140   : > { %v874_v16 = vpop.f32.mrb[43].mxu0  ;;  %1830 = vmatprep.mubr.bf16.mxu1 %v3223_v12 }
 0x141   : > { %v1260_v18 = vpack.c.bf16 %v3102_v14, %v874_v16  ;;  %v3240_v16 = vld [vmem:[%s3804_s6 + $0x180] ss:$24 sps:$4 sm:$0xff]  }
 0x143   : > { %v3105_v20 = vpop.f32.mrb[44].mxu0 }
 0x144   : > { %v884_v22 = vpop.f32.mrb[45].mxu0 }
 0x145   : > { %v1261_v26 = vpack.c.bf16 %v3105_v20, %v884_v22 }
 0x147   : > { %v3875_v29 = vpop.f32.mrb[46].mxu0  ;;  %1831 = vmatmul.mubr.bf16.gmra.mrb[28].mxu1 %v3225_v21  ;;  %v3241_v21 = vld [vmem:[%s3804_s6 + $0x1b4] ss:$24 sps:$4 sm:$0xff]  }
 0x148   : > { %v894_v32 = vpop.f32.mrb[47].mxu0  ;;  %1838 = vmatprep.mubr.bf16.mxu1 %v3226_v24 }
 0x149   : > { %v1262_v33 = vpack.c.bf16 %v3875_v29, %v894_v32  ;;  %v3243_v29 = vld [vmem:[%s3804_s6 + $0x1b0] ss:$24 sps:$4 sm:$0xff]  }
 0x14b   : > { %v3111_v34 = vpop.f32.mrb[48].mxu0 }
 0x14c   : > { %v904_v38 = vpop.f32.mrb[49].mxu0 }
 0x14d   : > { %v1263_v44 = vpack.c.bf16 %v3111_v34, %v904_v38  ;;  %v3244_v34 = vld [vmem:[%s3804_s6 + $0x1e4] ss:$24 sps:$4 sm:$0xff]  }
 0x14f   : > { %v3114_v45 = vpop.f32.mrb[50].mxu0  ;;  %1839 = vmatmul.mubr.bf16.gmra.mrb[32].mxu1 %v3228_v36  ;;  %2797 = vmatprep.subr.bf16.mxu1 %v1263_v44  ;;  %v3247_v44 = vld [vmem:[%s3804_s6 + $0x214] ss:$24 sps:$4 sm:$0xff]  }
 0x150   : > { %v914_v46 = vpop.f32.mrb[51].mxu0  ;;  %2798 = vmatpush3.bf16.msra.mxu1 %v1255_v59  ;;  %1846 = vmatprep.mubr.bf16.mxu1 %v3229_v41  ;;  %v3234_v59 = vld [vmem:[%s3804_s6 + $0x120] ss:$24 sps:$4 sm:$0xff]  }
 0x151   : > { %v1264_v48 = vpack.c.bf16 %v3114_v45, %v914_v46 }
 0x153   : > { %v3117_v50 = vpop.f32.mrb[52].mxu0  ;;  %2799 = vmatprep.subr.bf16.mxu1 %v1264_v48  ;;  %v3252_v48 = vld [vmem:[%s3804_s6 + $0x240] ss:$24 sps:$4 sm:$0xff]  }
 0x154   : > { %v924_v53 = vpop.f32.mrb[53].mxu0  ;;  %2800 = vmatpush3.bf16.msra.mxu1 %v1256_v0 }
 0x155   : > { %v1265_v55 = vpack.c.bf16 %v3117_v50, %v924_v53  ;;  %v3255_v50 = vld [vmem:[%s3804_s6 + $0x270] ss:$24 sps:$4 sm:$0xff]   ;;  %v3283_v53 = vld [vmem:[%s3804_s6 + $0xa4] ss:$24 sps:$4 sm:$0xff]  }
 0x157   : > { %v3120_v56 = vpop.f32.mrb[54].mxu0  ;;  %1847 = vmatmul.mubr.bf16.gmra.mrb[36].mxu1 %v3231_v52  ;;  %2801 = vmatprep.subr.bf16.mxu1 %v1265_v55  ;;  %v3258_v52 = vld [vmem:[%s3804_s6 + $0x2a0] ss:$24 sps:$4 sm:$0xff]  }
 0x158   : > { %v934_v57 = vpop.f32.mrb[55].mxu0  ;;  %2802 = vmatpush3.bf16.msra.mxu1 %v1257_v5  ;;  %1854 = vmatprep.mubr.bf16.mxu1 %v3232_v54  ;;  %v3237_v5 = vld [vmem:[%s3804_s6 + $0x150] ss:$24 sps:$4 sm:$0xff]   ;;  %v3259_v54 = vld [vmem:[%s3804_s6 + $0x2d4] ss:$24 sps:$4 sm:$0xff]  }
 0x159   : > { %v1266_v61 = vpack.c.bf16 %v3120_v56, %v934_v57  ;;  %v3285_v55 = vld [vmem:[%s3804_s6 + $0xa0] ss:$24 sps:$4 sm:$0xff]   ;;  %v3261_v56 = vld [vmem:[%s3804_s6 + $0x2d0] ss:$24 sps:$4 sm:$0xff]   ;;  %v3289_v57 = vld [vmem:[%s3804_s6 + $0xd4] ss:$24 sps:$4 sm:$0xff]  }
 0x15b   : > { %v3123_v63 = vpop.f32.mrb[56].mxu0  ;;  %2803 = vmatprep.subr.bf16.mxu1 %v1266_v61  ;;  %v3264_v61 = vld [vmem:[%s3804_s6 + $0xc] ss:$24 sps:$4 sm:$0xff]  }
 0x15c   : > { %v944_v1 = vpop.f32.mrb[57].mxu0  ;;  %2804 = vmatpush3.bf16.msra.mxu1 %v1258_v8 }
 0x15d   : > { %v1267_v3 = vpack.c.bf16 %v3123_v63, %v944_v1  ;;  %v3291_v63 = vld [vmem:[%s3804_s6 + $0xd0] ss:$24 sps:$4 sm:$0xff]   ;;  %v3295_v1 = vld [vmem:[%s3804_s6 + $0x104] ss:$24 sps:$4 sm:$0xff]  }
 0x15f   : > { %v3126_v4 = vpop.f32.mrb[58].mxu0  ;;  %1855 = vmatmul.mubr.bf16.gmra.mrb[40].mxu1 %v3234_v59  ;;  %2805 = vmatprep.subr.bf16.mxu1 %v1267_v3  ;;  %v3262_v59 = vld [vmem:[%s3804_s6 + $0x8] ss:$24 sps:$4 sm:$0xff]  }
 0x160   : > { %v954_v0 = vpop.f32.mrb[59].mxu0  ;;  %2806 = vmatpush3.bf16.msra.mxu1 %v1259_v13  ;;  %1862 = vmatprep.mubr.bf16.mxu1 %v3235_v2  ;;  %v3268_v2 = vld [vmem:[%s3804_s6 + $0x3c] ss:$24 sps:$4 sm:$0xff]   ;;  %v3297_v3 = vld [vmem:[%s3804_s6 + $0x100] ss:$24 sps:$4 sm:$0xff]  }
 0x161   : > { %v1268_v6 = vpack.c.bf16 %v3126_v4, %v954_v0  ;;  %v3270_v4 = vld [vmem:[%s3804_s6 + $0x38] ss:$24 sps:$4 sm:$0xff]   ;;  %v3301_v0 = vld [vmem:[%s3804_s6 + $0x134] ss:$24 sps:$4 sm:$0xff]  }
 0x163   : > { %v3129_v7 = vpop.f32.mrb[60].mxu0  ;;  %2807 = vmatprep.subr.bf16.mxu1 %v1268_v6  ;;  %v3274_v6 = vld [vmem:[%s3804_s6 + $0x6c] ss:$24 sps:$4 sm:$0xff]  }
 0x164   : > { %v964_v9 = vpop.f32.mrb[61].mxu0  ;;  %2808 = vmatpush3.bf16.msra.mxu1 %v1260_v18 }
 0x165   : > { %v1269_v11 = vpack.c.bf16 %v3129_v7, %v964_v9  ;;  %v3303_v7 = vld [vmem:[%s3804_s6 + $0x130] ss:$24 sps:$4 sm:$0xff]   ;;  %v3307_v9 = vld [vmem:[%s3804_s6 + $0x164] ss:$24 sps:$4 sm:$0xff]  }
 0x167   : > { %v3132_v12 = vpop.f32.mrb[62].mxu0  ;;  %1863 = vmatmul.mubr.bf16.gmra.mrb[44].mxu1 %v3237_v5  ;;  %2809 = vmatprep.subr.bf16.mxu1 %v1269_v11  ;;  %v3276_v5 = vld [vmem:[%s3804_s6 + $0x68] ss:$24 sps:$4 sm:$0xff]  }
 0x168   : > { %v974_v8 = vpop.f32.mrb[63].mxu0  ;;  %2810 = vmatpush3.bf16.msra.mxu1 %v1261_v26  ;;  %1870 = vmatprep.mubr.bf16.mxu1 %v3238_v10  ;;  %v3280_v10 = vld [vmem:[%s3804_s6 + $0x9c] ss:$24 sps:$4 sm:$0xff]   ;;  %v3309_v11 = vld [vmem:[%s3804_s6 + $0x160] ss:$24 sps:$4 sm:$0xff]  }
 0x169   : > { %v1270_v14 = vpack.c.bf16 %v3132_v12, %v974_v8  ;;  %v3282_v12 = vld [vmem:[%s3804_s6 + $0x98] ss:$24 sps:$4 sm:$0xff]   ;;  %v3313_v8 = vld [vmem:[%s3804_s6 + $0x194] ss:$24 sps:$4 sm:$0xff]  }
 0x16b   : > { %v3135_v13 = vpop.f32.mrb[64].mxu0  ;;  %2811 = vmatprep.subr.bf16.mxu1 %v1270_v14  ;;  %v3286_v14 = vld [vmem:[%s3804_s6 + $0xcc] ss:$24 sps:$4 sm:$0xff]  }
 0x16c   : > { %v984_v20 = vpop.f32.mrb[65].mxu0  ;;  %2812 = vmatpush3.bf16.msra.mxu1 %v1262_v33 }
 0x16d   : > { %v1271_v22 = vpack.c.bf16 %v3135_v13, %v984_v20  ;;  %v3315_v13 = vld [vmem:[%s3804_s6 + $0x190] ss:$24 sps:$4 sm:$0xff]   ;;  %v3319_v20 = vld [vmem:[%s3804_s6 + $0x1c4] ss:$24 sps:$4 sm:$0xff]  }
 0x16f   : > { %1871 = vmatmul.mubr.bf16.gmra.mrb[48].mxu1 %v3240_v16  ;;  %2910 = vmatpush3.bf16.msra.mxu0 %v1271_v22  ;;  %v3138_v18 = vpop.f32.mrb[66].mxu0  ;;  %v3288_v16 = vld [vmem:[%s3804_s6 + $0xc8] ss:$24 sps:$4 sm:$0xff]  }
 0x170   : > { %1878 = vmatprep.mubr.bf16.mxu1 %v3241_v21  ;;  %v994_v24 = vpop.f32.mrb[67].mxu0  ;;  %2911 = vmatprep.subr.bf16.mxu0 %v1280_v62  ;;  %v3292_v21 = vld [vmem:[%s3804_s6 + $0xfc] ss:$24 sps:$4 sm:$0xff]   ;;  %v3321_v22 = vld [vmem:[%s3804_s6 + $0x1c0] ss:$24 sps:$4 sm:$0xff]  }
 0x171   : > { %v1272_v26 = vpack.c.bf16 %v3138_v18, %v994_v24  ;;  %v3294_v18 = vld [vmem:[%s3804_s6 + $0xf8] ss:$24 sps:$4 sm:$0xff]   ;;  %v3325_v24 = vld [vmem:[%s3804_s6 + $0x1f4] ss:$24 sps:$4 sm:$0xff]  }
 0x173   : > { %2912 = vmatpush3.bf16.msra.mxu0 %v1272_v26  ;;  %v3141_v32 = vpop.f32.mrb[68].mxu0  ;;  %v3298_v26 = vld [vmem:[%s3804_s6 + $0x12c] ss:$24 sps:$4 sm:$0xff]  }
 0x174   : > { %v1004_v36 = vpop.f32.mrb[69].mxu0  ;;  %2913 = vmatprep.subr.bf16.mxu0 %v1281_v19 }
 0x175   : > { %v1273_v33 = vpack.c.bf16 %v3141_v32, %v1004_v36  ;;  %v3300_v32 = vld [vmem:[%s3804_s6 + $0x128] ss:$24 sps:$4 sm:$0xff]   ;;  %v3304_v36 = vld [vmem:[%s3804_s6 + $0x15c] ss:$24 sps:$4 sm:$0xff]  }
 0x177   : > { %1879 = vmatmul.mubr.bf16.gmra.mrb[52].mxu1 %v3243_v29  ;;  %2914 = vmatpush3.bf16.msra.mxu0 %v1273_v33  ;;  %v3144_v38 = vpop.f32.mrb[70].mxu0  ;;  %v3327_v29 = vld [vmem:[%s3804_s6 + $0x1f0] ss:$24 sps:$4 sm:$0xff]   ;;  %v3333_v33 = vld [vmem:[%s3804_s6 + $0x220] ss:$24 sps:$4 sm:$0xff]  }
 0x178   : > { %1886 = vmatprep.mubr.bf16.mxu1 %v3244_v34  ;;  %v1014_v41 = vpop.f32.mrb[71].mxu0  ;;  %2915 = vmatprep.subr.bf16.mxu0 %v1282_v27  ;;  %v3331_v34 = vld [vmem:[%s3804_s6 + $0x224] ss:$24 sps:$4 sm:$0xff]  }
 0x179   : > { %v1274_v58 = vpack.c.bf16 %v3144_v38, %v1014_v41  ;;  %v3306_v38 = vld [vmem:[%s3804_s6 + $0x158] ss:$24 sps:$4 sm:$0xff]   ;;  %v3337_v41 = vld [vmem:[%s3804_s6 + $0x254] ss:$24 sps:$4 sm:$0xff]  }
 0x17b   : > { %v3147_v62 = vpop.f32.mrb[72].mxu0  ;;  %2916 = vmatpush3.bf16.msra.mxu0 %v1274_v58  ;;  %v3310_v58 = vld [vmem:[%s3804_s6 + $0x18c] ss:$24 sps:$4 sm:$0xff]  }
 0x17c   : > { %v1024_v45 = vpop.f32.mrb[73].mxu0  ;;  %2917 = vmatprep.subr.bf16.mxu0 %v1283_v31 }
 0x17d   : > { %v1275_v15 = vpack.c.bf16 %v3147_v62, %v1024_v45  ;;  %v3312_v62 = vld [vmem:[%s3804_s6 + $0x188] ss:$24 sps:$4 sm:$0xff]   ;;  %v3316_v45 = vld [vmem:[%s3804_s6 + $0x1bc] ss:$24 sps:$4 sm:$0xff]  }
 0x17f   : > { %1887 = vmatmul.mubr.bf16.gmra.mrb[56].mxu1 %v3246_v60  ;;  %v3150_v17 = vpop.f32.mrb[74].mxu0  ;;  %2918 = vmatpush3.bf16.msra.mxu0 %v1275_v15  ;;  %v3339_v60 = vld [vmem:[%s3804_s6 + $0x250] ss:$24 sps:$4 sm:$0xff]   ;;  %v3345_v15 = vld [vmem:[%s3804_s6 + $0x280] ss:$24 sps:$4 sm:$0xff]  }
 0x180   : > { %1894 = vmatprep.mubr.bf16.mxu1 %v3247_v44  ;;  %v1034_v19 = vpop.f32.mrb[75].mxu0  ;;  %2919 = vmatprep.subr.bf16.mxu0 %v1284_v39  ;;  %v3265_v39 = vld [vmem:[%s3804_s6 + $0x10] ss:$24 sps:$4 sm:$0xff]   ;;  %v3343_v44 = vld [vmem:[%s3804_s6 + $0x284] ss:$24 sps:$4 sm:$0xff]  }
 0x181   : > { %v1276_v23 = vpack.c.bf16 %v3150_v17, %v1034_v19  ;;  %v3318_v17 = vld [vmem:[%s3804_s6 + $0x1b8] ss:$24 sps:$4 sm:$0xff]   ;;  %v3349_v19 = vld [vmem:[%s3804_s6 + $0x2b4] ss:$24 sps:$4 sm:$0xff]  }
 0x183   : > { %v3153_v27 = vpop.f32.mrb[76].mxu0  ;;  %2920 = vmatpush3.bf16.msra.mxu0 %v1276_v23  ;;  %v3322_v23 = vld [vmem:[%s3804_s6 + $0x1ec] ss:$24 sps:$4 sm:$0xff]  }
 0x184   : > { %v1044_v30 = vpop.f32.mrb[77].mxu0  ;;  %2921 = vmatprep.subr.bf16.mxu0 %v1285_v43  ;;  %v3273_v43 = vld [vmem:[%s3804_s6 + $0x40] ss:$24 sps:$4 sm:$0xff]  }
 0x185   : > { %v1277_v31 = vpack.c.bf16 %v3153_v27, %v1044_v30  ;;  %v3324_v27 = vld [vmem:[%s3804_s6 + $0x1e8] ss:$24 sps:$4 sm:$0xff]   ;;  %v3328_v30 = vld [vmem:[%s3804_s6 + $0x21c] ss:$24 sps:$4 sm:$0xff]  }
 0x187   : > { %1895 = vmatmul.mubr.bf16.gmra.mrb[60].mxu1 %v3249_v25  ;;  %v3156_v46 = vpop.f32.mrb[78].mxu0  ;;  %2922 = vmatpush3.bf16.msra.mxu0 %v1277_v31  ;;  %v3351_v25 = vld [vmem:[%s3804_s6 + $0x2b0] ss:$24 sps:$4 sm:$0xff]   ;;  %v3357_v31 = vld [vmem:[%s3804_s6 + $0x2e0] ss:$24 sps:$4 sm:$0xff]  }
 0x188   : > { %1902 = vmatprep.mubr.bf16.mxu1 %v3250_v28  ;;  %v1054_v35 = vpop.f32.mrb[79].mxu0  ;;  %2923 = vmatprep.subr.bf16.mxu0 %v1286_v51  ;;  %v3279_v51 = vld [vmem:[%s3804_s6 + $0x70] ss:$24 sps:$4 sm:$0xff]   ;;  %v3355_v28 = vld [vmem:[%s3804_s6 + $0x2e4] ss:$24 sps:$4 sm:$0xff]  }
 0x189   : > { %v1278_v37 = vpack.c.bf16 %v3156_v46, %v1054_v35  ;;  %v3330_v35 = vld [vmem:[%s3804_s6 + $0x218] ss:$24 sps:$4 sm:$0xff]  }
 0x18b   : > { %2924 = vmatpush3.bf16.msra.mxu0 %v1278_v37 }
 0x18e   : > { %2129 = vmatmul.mubr.bf16.vlgmr.msra.gmra.mrb[80].mxu0 %v3265_v39  ;;  %v3334_v39 = vld [vmem:[%s3804_s6 + $0x24c] ss:$24 sps:$4 sm:$0xff]  }
 0x18f   : > { %1903 = vmatmul.mubr.bf16.gmra.mrb[64].mxu1 %v3252_v48  ;;  %2136 = vmatprep.mubr.bf16.mxu0 %v3271_v40 }
 0x190   : > { %1910 = vmatprep.mubr.bf16.mxu1 %v3253_v42 }
 0x196   : > { %2137 = vmatmul.mubr.bf16.gmra.mrb[84].mxu0 %v3273_v43 }
 0x197   : > { %1911 = vmatmul.mubr.bf16.gmra.mrb[68].mxu1 %v3255_v50  ;;  %2144 = vmatprep.mubr.bf16.mxu0 %v3277_v47  ;;  %v3336_v47 = vld [vmem:[%s3804_s6 + $0x248] ss:$24 sps:$4 sm:$0xff]  }
 0x198   : > { %1918 = vmatprep.mubr.bf16.mxu1 %v3256_v49 }
 0x19e   : > { %2145 = vmatmul.mubr.bf16.gmra.mrb[88].mxu0 %v3279_v51  ;;  %v3340_v51 = vld [vmem:[%s3804_s6 + $0x27c] ss:$24 sps:$4 sm:$0xff]  }
 0x19f   : > { %1919 = vmatmul.mubr.bf16.gmra.mrb[72].mxu1 %v3258_v52  ;;  %2152 = vmatprep.mubr.bf16.mxu0 %v3283_v53 }
 0x1a0   : > { %1926 = vmatprep.mubr.bf16.mxu1 %v3259_v54 }
 0x1a6   : > { %2153 = vmatmul.mubr.bf16.gmra.mrb[92].mxu0 %v3285_v55 }
 0x1a7   : > { %1927 = vmatmul.mubr.bf16.gmra.mrb[76].mxu1 %v3261_v56  ;;  %2160 = vmatprep.mubr.bf16.mxu0 %v3289_v57  ;;  %v3342_v57 = vld [vmem:[%s3804_s6 + $0x278] ss:$24 sps:$4 sm:$0xff]  }
 0x1a8   : > { %1967 = vmatprep.mubr.bf16.mxu1 %v3264_v61 }
 0x1ae   : > { %2161 = vmatmul.mubr.bf16.gmra.mrb[96].mxu0 %v3291_v63  ;;  %v3346_v63 = vld [vmem:[%s3804_s6 + $0x2ac] ss:$24 sps:$4 sm:$0xff]  }
 0x1af   : > { %1968 = vmatmul.mubr.bf16.vlgmr.msra.gmra.mrb[80].mxu1 %v3262_v59  ;;  %2168 = vmatprep.mubr.bf16.mxu0 %v3295_v1 }
 0x1b0   : > { %1975 = vmatprep.mubr.bf16.mxu1 %v3268_v2 }
 0x1b6   : > { %2169 = vmatmul.mubr.bf16.gmra.mrb[100].mxu0 %v3297_v3 }
 0x1b7   : > { %1976 = vmatmul.mubr.bf16.gmra.mrb[84].mxu1 %v3270_v4  ;;  %2176 = vmatprep.mubr.bf16.mxu0 %v3301_v0  ;;  %v3348_v0 = vld [vmem:[%s3804_s6 + $0x2a8] ss:$24 sps:$4 sm:$0xff]  }
 0x1b8   : > { %1983 = vmatprep.mubr.bf16.mxu1 %v3274_v6 }
 0x1be   : > { %2177 = vmatmul.mubr.bf16.gmra.mrb[104].mxu0 %v3303_v7  ;;  %v3352_v7 = vld [vmem:[%s3804_s6 + $0x2dc] ss:$24 sps:$4 sm:$0xff]  }
 0x1bf   : > { %1984 = vmatmul.mubr.bf16.gmra.mrb[88].mxu1 %v3276_v5  ;;  %2184 = vmatprep.mubr.bf16.mxu0 %v3307_v9 }
 0x1c0   : > { %1991 = vmatprep.mubr.bf16.mxu1 %v3280_v10 }
 0x1c6   : > { %2185 = vmatmul.mubr.bf16.gmra.mrb[108].mxu0 %v3309_v11 }
 0x1c7   : > { %1992 = vmatmul.mubr.bf16.gmra.mrb[92].mxu1 %v3282_v12  ;;  %2192 = vmatprep.mubr.bf16.mxu0 %v3313_v8  ;;  %v3354_v8 = vld [vmem:[%s3804_s6 + $0x2d8] ss:$24 sps:$4 sm:$0xff]  }
 0x1c8   : > { %1999 = vmatprep.mubr.bf16.mxu1 %v3286_v14 }
 0x1ce   : > { %2193 = vmatmul.mubr.bf16.gmra.mrb[112].mxu0 %v3315_v13 }
 0x1cf   : > { %2000 = vmatmul.mubr.bf16.gmra.mrb[96].mxu1 %v3288_v16  ;;  %2200 = vmatprep.mubr.bf16.mxu0 %v3319_v20 }
 0x1d0   : > { %2007 = vmatprep.mubr.bf16.mxu1 %v3292_v21 }
 0x1d6   : > { %2201 = vmatmul.mubr.bf16.gmra.mrb[116].mxu0 %v3321_v22 }
 0x1d7   : > { %2008 = vmatmul.mubr.bf16.gmra.mrb[100].mxu1 %v3294_v18  ;;  %2208 = vmatprep.mubr.bf16.mxu0 %v3325_v24 }
 0x1d8   : > { %2015 = vmatprep.mubr.bf16.mxu1 %v3298_v26 }
 0x1de   : > { %2209 = vmatmul.mubr.bf16.gmra.mrb[120].mxu0 %v3327_v29 }
 0x1df   : > { %2016 = vmatmul.mubr.bf16.gmra.mrb[104].mxu1 %v3300_v32  ;;  %2216 = vmatprep.mubr.bf16.mxu0 %v3331_v34 }
 0x1e0   : > { %2023 = vmatprep.mubr.bf16.mxu1 %v3304_v36 }
 0x1e6   : > { %2217 = vmatmul.mubr.bf16.gmra.mrb[124].mxu0 %v3333_v33 }
 0x1e7   : > { %2024 = vmatmul.mubr.bf16.gmra.mrb[108].mxu1 %v3306_v38  ;;  %2224 = vmatprep.mubr.bf16.mxu0 %v3337_v41 }
 0x1e8   : > { %2031 = vmatprep.mubr.bf16.mxu1 %v3310_v58 }
 0x1ee   : > { %2225 = vmatmul.mubr.bf16.gmra.mrb[128].mxu0 %v3339_v60 }
 0x1ef   : > { %2032 = vmatmul.mubr.bf16.gmra.mrb[112].mxu1 %v3312_v62  ;;  %2232 = vmatprep.mubr.bf16.mxu0 %v3343_v44 }
 0x1f0   : > { %2039 = vmatprep.mubr.bf16.mxu1 %v3316_v45 }
 0x1f6   : > { %2233 = vmatmul.mubr.bf16.gmra.mrb[132].mxu0 %v3345_v15 }
 0x1f7   : > { %2040 = vmatmul.mubr.bf16.gmra.mrb[116].mxu1 %v3318_v17  ;;  %2240 = vmatprep.mubr.bf16.mxu0 %v3349_v19 }
 0x1f8   : > { %2047 = vmatprep.mubr.bf16.mxu1 %v3322_v23 }
 0x1fe   : > { %2241 = vmatmul.mubr.bf16.gmra.mrb[136].mxu0 %v3351_v25 }
 0x1ff   : > { %2048 = vmatmul.mubr.bf16.gmra.mrb[120].mxu1 %v3324_v27  ;;  %2248 = vmatprep.mubr.bf16.mxu0 %v3355_v28 }
 0x200   : > { %2055 = vmatprep.mubr.bf16.mxu1 %v3328_v30 }
 0x202   : > { %v2701_v46 = vpop.f32.mrb[16].mxu1 }
 0x203   : > { %v2702_v37 = vpop.f32.mrb[17].mxu1 }
 0x204   : > { %v3978_v48 = vadd.f32 %v2702_v37, %v2701_v46  ;;  %v2704_v40 = vpop.f32.mrb[18].mxu1 }
 0x205   : > { %v2705_v42 = vpop.f32.mrb[19].mxu1 }
 0x206   : > { %2249 = vmatmul.mubr.bf16.gmra.mrb[140].mxu0 %v3357_v31  ;;  %v3980_v43 = vadd.f32 %v2705_v42, %v2704_v40 }
 0x207   : > { %2056 = vmatmul.mubr.bf16.gmra.mrb[124].mxu1 %v3330_v35 }
 0x208   : > { %2063 = vmatprep.mubr.bf16.mxu1 %v3334_v39 }
 0x20a   : > { %v2707_v50 = vpop.f32.mrb[20].mxu1 }
 0x20b   : > { %v2708_v49 = vpop.f32.mrb[21].mxu1 }
 0x20c   : > { %v3984_v52 = vadd.f32 %v2708_v49, %v2707_v50  ;;  %v2710_v53 = vpop.f32.mrb[22].mxu1 }
 0x20d   : > { %v2711_v54 = vpop.f32.mrb[23].mxu1 }
 0x20e   : > { %v3986_v55 = vadd.f32 %v2711_v54, %v2710_v53 }
 0x20f   : > { %2064 = vmatmul.mubr.bf16.gmra.mrb[128].mxu1 %v3336_v47 }
 0x210   : > { %2071 = vmatprep.mubr.bf16.mxu1 %v3340_v51 }
 0x212   : > { %v2713_v56 = vpop.f32.mrb[24].mxu1 }
 0x213   : > { %v2714_v61 = vpop.f32.mrb[25].mxu1 }
 0x214   : > { %v3990_v59 = vadd.f32 %v2714_v61, %v2713_v56  ;;  %v2716_v1 = vpop.f32.mrb[26].mxu1 }
 0x215   : > { %v2717_v2 = vpop.f32.mrb[27].mxu1 }
 0x216   : > { %v3992_v3 = vadd.f32 %v2717_v2, %v2716_v1 }
 0x217   : > { %2072 = vmatmul.mubr.bf16.gmra.mrb[132].mxu1 %v3342_v57 }
 0x218   : > { %2079 = vmatprep.mubr.bf16.mxu1 %v3346_v63 }
 0x21a   : > { %v2719_v4 = vpop.f32.mrb[28].mxu1 }
 0x21b   : > { %v2720_v6 = vpop.f32.mrb[29].mxu1 }
 0x21c   : > { %v3996_v5 = vadd.f32 %v2720_v6, %v2719_v4  ;;  %v2722_v9 = vpop.f32.mrb[30].mxu1 }
 0x21d   : > { %v2723_v10 = vpop.f32.mrb[31].mxu1 }
 0x21e   : > { %v3998_v11 = vadd.f32 %v2723_v10, %v2722_v9 }
 0x21f   : > { %2080 = vmatmul.mubr.bf16.gmra.mrb[136].mxu1 %v3348_v0 }
 0x220   : > { %2087 = vmatprep.mubr.bf16.mxu1 %v3352_v7 }
 0x222   : > { %v2725_v12 = vpop.f32.mrb[32].mxu1 }
 0x223   : > { %v2726_v14 = vpop.f32.mrb[33].mxu1 }
 0x224   : > { %v4001_v13 = vadd.f32 %v2726_v14, %v2725_v12  ;;  %v2728_v16 = vpop.f32.mrb[34].mxu1 }
 0x225   : > { %v2729_v20 = vpop.f32.mrb[35].mxu1 }
 0x226   : > { %v4003_v21 = vadd.f32 %v2729_v20, %v2728_v16 }
 0x227   : > { %2088 = vmatmul.mubr.bf16.gmra.mrb[140].mxu1 %v3354_v8 }
 0x22a   : > { %v2731_v22 = vpop.f32.mrb[36].mxu1 }
 0x22b   : > { %v2732_v18 = vpop.f32.mrb[37].mxu1 }
 0x22c   : > { %v4005_v24 = vadd.f32 %v2732_v18, %v2731_v22  ;;  %v2734_v26 = vpop.f32.mrb[38].mxu1 }
 0x22d   : > { %v2735_v29 = vpop.f32.mrb[39].mxu1 }
 0x22e   : > { %v4007_v32 = vadd.f32 %v2735_v29, %v2734_v26 }
 0x232   : > { %v2737_v34 = vpop.f32.mrb[40].mxu1 }
 0x233   : > { %v2738_v36 = vpop.f32.mrb[41].mxu1 }
 0x234   : > { %v4009_v33 = vadd.f32 %v2738_v36, %v2737_v34  ;;  %v2740_v38 = vpop.f32.mrb[42].mxu1 }
 0x235   : > { %v2741_v41 = vpop.f32.mrb[43].mxu1 }
 0x236   : > { %v4011_v58 = vadd.f32 %v2741_v41, %v2740_v38 }
 0x23a   : > { %v2743_v60 = vpop.f32.mrb[44].mxu1 }
 0x23b   : > { %v2744_v62 = vpop.f32.mrb[45].mxu1 }
 0x23c   : > { %v4013_v44 = vadd.f32 %v2744_v62, %v2743_v60  ;;  %v2746_v45 = vpop.f32.mrb[46].mxu1 }
 0x23d   : > { %v2747_v15 = vpop.f32.mrb[47].mxu1 }
 0x23e   : > { %v4015_v17 = vadd.f32 %v2747_v15, %v2746_v45 }
 0x242   : > { %v2749_v19 = vpop.f32.mrb[48].mxu1 }
 0x243   : > { %v2750_v23 = vpop.f32.mrb[49].mxu1 }
 0x244   : > { %v4017_v25 = vadd.f32 %v2750_v23, %v2749_v19  ;;  %v2752_v27 = vpop.f32.mrb[50].mxu1 }
 0x245   : > { %v2753_v28 = vpop.f32.mrb[51].mxu1 }
 0x246   : > { %v4019_v30 = vadd.f32 %v2753_v28, %v2752_v27 }
 0x24a   : > { %v2755_v31 = vpop.f32.mrb[52].mxu1 }
 0x24b   : > { %v2756_v46 = vpop.f32.mrb[53].mxu1 }
 0x24c   : > { %v4021_v35 = vadd.f32 %v2756_v46, %v2755_v31  ;;  %v2758_v37 = vpop.f32.mrb[54].mxu1 }
 0x24d   : > { %v2759_v39 = vpop.f32.mrb[55].mxu1 }
 0x24e   : > { %v4023_v40 = vadd.f32 %v2759_v39, %v2758_v37 }
 0x252   : > { %v2761_v42 = vpop.f32.mrb[56].mxu1 }
 0x253   : > { %v2762_v50 = vpop.f32.mrb[57].mxu1 }
 0x254   : > { %v4025_v47 = vadd.f32 %v2762_v50, %v2761_v42  ;;  %v2764_v49 = vpop.f32.mrb[58].mxu1 }
 0x255   : > { %v2765_v51 = vpop.f32.mrb[59].mxu1 }
 0x256   : > { %v4027_v53 = vadd.f32 %v2765_v51, %v2764_v49 }
 0x25a   : > { %v2767_v54 = vpop.f32.mrb[60].mxu1 }
 0x25b   : > { %v2768_v56 = vpop.f32.mrb[61].mxu1 }
 0x25c   : > { %v4029_v57 = vadd.f32 %v2768_v56, %v2767_v54  ;;  %v2770_v61 = vpop.f32.mrb[62].mxu1 }
 0x25d   : > { %v2771_v63 = vpop.f32.mrb[63].mxu1 }
 0x25e   : > { %v4031_v1 = vadd.f32 %v2771_v63, %v2770_v61 }
 0x261   : > { %v2925_v2 = vpop.f32.mrb[80].mxu0 }
 0x262   : > { %v2773_v4 = vpop.f32.mrb[64].mxu1  ;;  %v2926_v0 = vpop.f32.mrb[81].mxu0 }
 0x263   : > { %v2774_v6 = vpop.f32.mrb[65].mxu1  ;;  %v2927_v7 = vadd.f32 %v2926_v0, %v2925_v2  ;;  %v2928_v9 = vpop.f32.mrb[82].mxu0 }
 0x264   : > { %v4033_v10 = vadd.f32 %v2774_v6, %v2773_v4  ;;  %v2776_v12 = vpop.f32.mrb[66].mxu1  ;;  %v2929_v8 = vpop.f32.mrb[83].mxu0 }
 0x265   : > { %v2777_v14 = vpop.f32.mrb[67].mxu1  ;;  %v2930_v16 = vadd.f32 %v2929_v8, %v2928_v9 }
 0x266   : > { %v4035_v20 = vadd.f32 %v2777_v14, %v2776_v12 }
 0x269   : > { %v2931_v22 = vpop.f32.mrb[84].mxu0 }
 0x26a   : > { %v2779_v18 = vpop.f32.mrb[68].mxu1  ;;  %v2932_v26 = vpop.f32.mrb[85].mxu0 }
 0x26b   : > { %v2780_v29 = vpop.f32.mrb[69].mxu1  ;;  %v4037_v34 = vadd.f32 %v2932_v26, %v2931_v22  ;;  %v2934_v36 = vpop.f32.mrb[86].mxu0  ;;  %v4064_v22 = vld [vmem:[%s4284_s3] ss:$0 sm:$0xff] }
 0x26c   : > { %v4039_v38 = vadd.f32 %v2780_v29, %v2779_v18  ;;  %v2782_v41 = vpop.f32.mrb[70].mxu1  ;;  %v2935_v60 = vpop.f32.mrb[87].mxu0 }
 0x26d   : > { %v2783_v62 = vpop.f32.mrb[71].mxu1  ;;  %v4041_v45 = vadd.f32 %v2935_v60, %v2934_v36 }
 0x26e   : > { %v4043_v15 = vadd.f32 %v2783_v62, %v2782_v41  ;;  %v1809_v62 = vadd.f32 %v3978_v48, %v4064_v22 }
 0x271   : > { %v2937_v19 = vpop.f32.mrb[88].mxu0 }
 0x272   : > { %v2785_v23 = vpop.f32.mrb[72].mxu1  ;;  %v2938_v27 = vpop.f32.mrb[89].mxu0 }
 0x273   : > { %v2786_v28 = vpop.f32.mrb[73].mxu1  ;;  %v4045_v31 = vadd.f32 %v2938_v27, %v2937_v19  ;;  %v2940_v46 = vpop.f32.mrb[90].mxu0 }
 0x274   : > { %v4047_v37 = vadd.f32 %v2786_v28, %v2785_v23  ;;  %v2788_v39 = vpop.f32.mrb[74].mxu1  ;;  %v2941_v42 = vpop.f32.mrb[91].mxu0 }
 0x275   : > { %v2789_v50 = vpop.f32.mrb[75].mxu1  ;;  %v4049_v49 = vadd.f32 %v2941_v42, %v2940_v46 }
 0x276   : > { %v4051_v51 = vadd.f32 %v2789_v50, %v2788_v39  ;;  %v1812_v39 = vadd.f32 %v3980_v43, %v4064_v22 }
 0x279   : > { %v2943_v54 = vpop.f32.mrb[92].mxu0 }
 0x27a   : > { %v2791_v56 = vpop.f32.mrb[76].mxu1  ;;  %v2944_v61 = vpop.f32.mrb[93].mxu0 }
 0x27b   : > { %v2792_v63 = vpop.f32.mrb[77].mxu1  ;;  %v4053_v2 = vadd.f32 %v2944_v61, %v2943_v54  ;;  %v2946_v4 = vpop.f32.mrb[94].mxu0 }
 0x27c   : > { %v4055_v0 = vadd.f32 %v2792_v63, %v2791_v56  ;;  %v2794_v6 = vpop.f32.mrb[78].mxu1  ;;  %v2947_v9 = vpop.f32.mrb[95].mxu0 }
 0x27d   : > { %v2795_v12 = vpop.f32.mrb[79].mxu1  ;;  %v4057_v8 = vadd.f32 %v2947_v9, %v2946_v4 }
 0x27e   : > { %v4059_v14 = vadd.f32 %v2795_v12, %v2794_v6 }
 0x281   : > { %v2949_v18 = vpop.f32.mrb[96].mxu0 }
 0x282   : > { %v2813_v26 = vpop.f32.mrb[80].mxu1  ;;  %v2950_v29 = vpop.f32.mrb[97].mxu0 }
 0x283   : > { %v2814_v36 = vpop.f32.mrb[81].mxu1  ;;  %v4066_v41 = vadd.f32 %v2950_v29, %v2949_v18  ;;  %v2952_v60 = vpop.f32.mrb[98].mxu0  ;;  %v1817_v18 = vadd.f32 %v3984_v52, %v4064_v22 }
 0x284   : > { %v2815_v19 = vadd.f32 %v2814_v36, %v2813_v26  ;;  %v2816_v23 = vpop.f32.mrb[82].mxu1  ;;  %v2953_v27 = vpop.f32.mrb[99].mxu0 }
 0x285   : > { %v2817_v28 = vpop.f32.mrb[83].mxu1  ;;  %v4070_v46 = vadd.f32 %v2953_v27, %v2952_v60 }
 0x286   : > { %v1970_v42 = vadd.f32 %v2815_v19, %v1809_v62  ;;  %v2818_v50 = vadd.f32 %v2817_v28, %v2816_v23 }
 0x288   : > { %v1973_v54 = vadd.f32 %v2818_v50, %v1812_v39  ;;  %v2131_v56 = vadd.f32 %v2927_v7, %v1970_v42 }
 0x289   : > { %v2955_v48 = vpop.f32.mrb[100].mxu0 }
 0x28a   : > { %v2257_v61 = vmax.f32 %v2131_v56, 0.0  ;;  %v2134_v63 = vadd.f32 %v2930_v16, %v1973_v54  ;;  %v2819_v4 = vpop.f32.mrb[84].mxu1  ;;  %v2956_v6 = vpop.f32.mrb[101].mxu0  ;;  %v1820_v16 = vadd.f32 %v3986_v55, %v4064_v22  ;;  %v1825_v55 = vadd.f32 %v3990_v59, %v4064_v22 }
 0x28b   : > { %v2820_v9 = vpop.f32.mrb[85].mxu1  ;;  %v4080_v12 = vadd.f32 %v2956_v6, %v2955_v48  ;;  %v2958_v43 = vpop.f32.mrb[102].mxu0 }
 0x28c   : > { %2289 = vst.msk [vmem:[%s4078_s18] sm:$0xff] %vm309_vm0, %v2257_v61  ;;  %v2258_v7 = vmax.f32 %v2134_v63, 0.0  ;;  %v2821_v26 = vadd.f32 %v2820_v9, %v2819_v4  ;;  %v2822_v29 = vpop.f32.mrb[86].mxu1  ;;  %v2959_v36 = vpop.f32.mrb[103].mxu0 }
 0x28d   : > { %v2823_v60 = vpop.f32.mrb[87].mxu1  ;;  %v4086_v62 = vadd.f32 %v2959_v36, %v2958_v43 }
 0x28e   : > { %2290 = vst.msk [vmem:[%s4078_s18 + $0x8] sm:$0xff] %vm309_vm0, %v2258_v7  ;;  %v1978_v19 = vadd.f32 %v2821_v26, %v1817_v18  ;;  %v2824_v23 = vadd.f32 %v2823_v60, %v2822_v29 }
 0x290   : > { %v1981_v27 = vadd.f32 %v2824_v23, %v1820_v16  ;;  %v2139_v52 = vadd.f32 %v4037_v34, %v1978_v19 }
 0x291   : > { %v2961_v28 = vpop.f32.mrb[104].mxu0 }
 0x292   : > { %v2259_v39 = vmax.f32 %v2139_v52, 0.0  ;;  %v2142_v42 = vadd.f32 %v4041_v45, %v1981_v27  ;;  %v2825_v50 = vpop.f32.mrb[88].mxu1  ;;  %v2962_v54 = vpop.f32.mrb[105].mxu0  ;;  %v1828_v45 = vadd.f32 %v3992_v3, %v4064_v22  ;;  %v1833_v3 = vadd.f32 %v3996_v5, %v4064_v22 }
 0x293   : > { %v2826_v56 = vpop.f32.mrb[89].mxu1  ;;  %v4094_v48 = vadd.f32 %v2962_v54, %v2961_v28  ;;  %v2964_v61 = vpop.f32.mrb[106].mxu0 }
 0x294   : > { %2291 = vst.msk [vmem:[%s4078_s18 + $0x10] sm:$0xff] %vm309_vm0, %v2259_v39  ;;  %v2260_v63 = vmax.f32 %v2142_v42, 0.0  ;;  %v2827_v4 = vadd.f32 %v2826_v56, %v2825_v50  ;;  %v2828_v6 = vpop.f32.mrb[90].mxu1  ;;  %v2965_v34 = vpop.f32.mrb[107].mxu0 }
 0x295   : > { %v2829_v9 = vpop.f32.mrb[91].mxu1  ;;  %v4100_v43 = vadd.f32 %v2965_v34, %v2964_v61 }
 0x296   : > { %2292 = vst.msk [vmem:[%s4078_s18 + $0x18] sm:$0xff] %vm309_vm0, %v2260_v63  ;;  %v1986_v18 = vadd.f32 %v2827_v4, %v1825_v55  ;;  %v2830_v7 = vadd.f32 %v2829_v9, %v2828_v6 }
 0x298   : > { %v1989_v26 = vadd.f32 %v2830_v7, %v1828_v45  ;;  %v2147_v59 = vadd.f32 %v4045_v31, %v1986_v18 }
 0x299   : > { %v2967_v29 = vpop.f32.mrb[108].mxu0 }
 0x29a   : > { %v2261_v36 = vmax.f32 %v2147_v59, 0.0  ;;  %v2150_v60 = vadd.f32 %v4049_v49, %v1989_v26  ;;  %v2831_v16 = vpop.f32.mrb[92].mxu1  ;;  %v2968_v19 = vpop.f32.mrb[109].mxu0  ;;  %v1836_v49 = vadd.f32 %v3998_v11, %v4064_v22  ;;  %v1841_v11 = vadd.f32 %v4001_v13, %v4064_v22 }
 0x29b   : > { %v2832_v23 = vpop.f32.mrb[93].mxu1  ;;  %v4108_v27 = vadd.f32 %v2968_v19, %v2967_v29  ;;  %v2970_v52 = vpop.f32.mrb[110].mxu0 }
 0x29c   : > { %2293 = vst.msk [vmem:[%s4078_s18 + $0x20] sm:$0xff] %vm309_vm0, %v2261_v36  ;;  %v2262_v28 = vmax.f32 %v2150_v60, 0.0  ;;  %v2833_v39 = vadd.f32 %v2832_v23, %v2831_v16  ;;  %v2834_v42 = vpop.f32.mrb[94].mxu1  ;;  %v2971_v31 = vpop.f32.mrb[111].mxu0 }
 0x29d   : > { %v2835_v50 = vpop.f32.mrb[95].mxu1  ;;  %v4114_v54 = vadd.f32 %v2971_v31, %v2970_v52 }
 0x29e   : > { %2294 = vst.msk [vmem:[%s4078_s18 + $0x28] sm:$0xff] %vm309_vm0, %v2262_v28  ;;  %v1994_v56 = vadd.f32 %v2833_v39, %v1833_v3  ;;  %v2836_v61 = vadd.f32 %v2835_v50, %v2834_v42 }
 0x2a0   : > { %v1997_v55 = vadd.f32 %v2836_v61, %v1836_v49  ;;  %v2155_v5 = vadd.f32 %v4053_v2, %v1994_v56 }
 0x2a1   : > { %v2973_v63 = vpop.f32.mrb[112].mxu0 }
 0x2a2   : > { %v2263_v4 = vmax.f32 %v2155_v5, 0.0  ;;  %v2158_v6 = vadd.f32 %v4057_v8, %v1997_v55  ;;  %v2837_v34 = vpop.f32.mrb[96].mxu1  ;;  %v2974_v9 = vpop.f32.mrb[113].mxu0  ;;  %v1844_v8 = vadd.f32 %v4003_v21, %v4064_v22  ;;  %v1849_v21 = vadd.f32 %v4005_v24, %v4064_v22 }
 0x2a3   : > { %v2838_v45 = vpop.f32.mrb[97].mxu1  ;;  %v4122_v18 = vadd.f32 %v2974_v9, %v2973_v63  ;;  %v2976_v7 = vpop.f32.mrb[114].mxu0 }
 0x2a4   : > { %2295 = vst.msk [vmem:[%s4078_s18 + $0x30] sm:$0xff] %vm309_vm0, %v2263_v4  ;;  %v2264_v26 = vmax.f32 %v2158_v6, 0.0  ;;  %v2839_v59 = vadd.f32 %v2838_v45, %v2837_v34  ;;  %v2840_v29 = vpop.f32.mrb[98].mxu1  ;;  %v2977_v2 = vpop.f32.mrb[115].mxu0 }
 0x2a5   : > { %v2841_v36 = vpop.f32.mrb[99].mxu1  ;;  %v4128_v60 = vadd.f32 %v2977_v2, %v2976_v7 }
 0x2a6   : > { %2296 = vst.msk [vmem:[%s4078_s18 + $0x38] sm:$0xff] %vm309_vm0, %v2264_v26  ;;  %v2002_v16 = vadd.f32 %v2839_v59, %v1841_v11  ;;  %v2842_v19 = vadd.f32 %v2841_v36, %v2840_v29 }
 0x2a8   : > { %v2005_v23 = vadd.f32 %v2842_v19, %v1844_v8  ;;  %v2163_v13 = vadd.f32 %v4066_v41, %v2002_v16 }
 0x2a9   : > { %v2979_v52 = vpop.f32.mrb[116].mxu0 }
 0x2aa   : > { %v2265_v3 = vmax.f32 %v2163_v13, 0.0  ;;  %v2166_v28 = vadd.f32 %v4070_v46, %v2005_v23  ;;  %v2843_v39 = vpop.f32.mrb[100].mxu1  ;;  %v2980_v42 = vpop.f32.mrb[117].mxu0  ;;  %v1852_v46 = vadd.f32 %v4007_v32, %v4064_v22  ;;  %v1857_v32 = vadd.f32 %v4009_v33, %v4064_v22 }
 0x2ab   : > { %v2844_v31 = vpop.f32.mrb[101].mxu1  ;;  %v4136_v50 = vadd.f32 %v2980_v42, %v2979_v52  ;;  %v2982_v49 = vpop.f32.mrb[118].mxu0 }
 0x2ac   : > { %2297 = vst.msk [vmem:[%s4078_s18 + $0x40] sm:$0xff] %vm309_vm0, %v2265_v3  ;;  %v2266_v56 = vmax.f32 %v2166_v28, 0.0  ;;  %v2845_v61 = vadd.f32 %v2844_v31, %v2843_v39  ;;  %v2846_v55 = vpop.f32.mrb[102].mxu1  ;;  %v2983_v41 = vpop.f32.mrb[119].mxu0 }
 0x2ad   : > { %v2847_v5 = vpop.f32.mrb[103].mxu1  ;;  %v4142_v63 = vadd.f32 %v2983_v41, %v2982_v49 }
 0x2ae   : > { %2298 = vst.msk [vmem:[%s4078_s18 + $0x48] sm:$0xff] %vm309_vm0, %v2266_v56  ;;  %v2010_v4 = vadd.f32 %v2845_v61, %v1849_v21  ;;  %v2848_v6 = vadd.f32 %v2847_v5, %v2846_v55 }
 0x2b0   : > { %v2013_v34 = vadd.f32 %v2848_v6, %v1852_v46  ;;  %v2171_v24 = vadd.f32 %v4080_v12, %v2010_v4 }
 0x2b1   : > { %v2985_v9 = vpop.f32.mrb[120].mxu0 }
 0x2b2   : > { %v2267_v45 = vmax.f32 %v2171_v24, 0.0  ;;  %v2174_v7 = vadd.f32 %v4086_v62, %v2013_v34  ;;  %v2849_v11 = vpop.f32.mrb[104].mxu1  ;;  %v2986_v26 = vpop.f32.mrb[121].mxu0  ;;  %v1860_v62 = vadd.f32 %v4011_v58, %v4064_v22  ;;  %v1865_v58 = vadd.f32 %v4013_v44, %v4064_v22 }
 0x2b3   : > { %v2850_v59 = vpop.f32.mrb[105].mxu1  ;;  %v4150_v29 = vadd.f32 %v2986_v26, %v2985_v9  ;;  %v2988_v2 = vpop.f32.mrb[122].mxu0 }
 0x2b4   : > { %2299 = vst.msk [vmem:[%s4078_s18 + $0x50] sm:$0xff] %vm309_vm0, %v2267_v45  ;;  %v2268_v36 = vmax.f32 %v2174_v7, 0.0  ;;  %v2851_v8 = vadd.f32 %v2850_v59, %v2849_v11  ;;  %v2852_v16 = vpop.f32.mrb[106].mxu1  ;;  %v2989_v12 = vpop.f32.mrb[123].mxu0 }
 0x2b5   : > { %v2853_v19 = vpop.f32.mrb[107].mxu1  ;;  %v4156_v23 = vadd.f32 %v2989_v12, %v2988_v2 }
 0x2b6   : > { %2300 = vst.msk [vmem:[%s4078_s18 + $0x58] sm:$0xff] %vm309_vm0, %v2268_v36  ;;  %v2018_v13 = vadd.f32 %v2851_v8, %v1857_v32  ;;  %v2854_v52 = vadd.f32 %v2853_v19, %v2852_v16 }
 0x2b8   : > { %v2021_v3 = vadd.f32 %v2854_v52, %v1860_v62  ;;  %v2179_v33 = vadd.f32 %v4094_v48, %v2018_v13 }
 0x2b9   : > { %v2991_v28 = vpop.f32.mrb[124].mxu0 }
 0x2ba   : > { %v2269_v39 = vmax.f32 %v2179_v33, 0.0  ;;  %v2182_v42 = vadd.f32 %v4100_v43, %v2021_v3  ;;  %v2855_v31 = vpop.f32.mrb[108].mxu1  ;;  %v2992_v49 = vpop.f32.mrb[125].mxu0  ;;  %v1868_v43 = vadd.f32 %v4015_v17, %v4064_v22  ;;  %v1873_v17 = vadd.f32 %v4017_v25, %v4064_v22 }
 0x2bb   : > { %v2856_v21 = vpop.f32.mrb[109].mxu1  ;;  %v4164_v56 = vadd.f32 %v2992_v49, %v2991_v28  ;;  %v2994_v61 = vpop.f32.mrb[126].mxu0 }
 0x2bc   : > { %2301 = vst.msk [vmem:[%s4078_s18 + $0x60] sm:$0xff] %vm309_vm0, %v2269_v39  ;;  %v2270_v55 = vmax.f32 %v2182_v42, 0.0  ;;  %v2857_v41 = vadd.f32 %v2856_v21, %v2855_v31  ;;  %v2858_v5 = vpop.f32.mrb[110].mxu1  ;;  %v2995_v48 = vpop.f32.mrb[127].mxu0 }
 0x2bd   : > { %v2859_v46 = vpop.f32.mrb[111].mxu1  ;;  %v4170_v4 = vadd.f32 %v2995_v48, %v2994_v61 }
 0x2be   : > { %2302 = vst.msk [vmem:[%s4078_s18 + $0x68] sm:$0xff] %vm309_vm0, %v2270_v55  ;;  %v2026_v6 = vadd.f32 %v2857_v41, %v1865_v58  ;;  %v2860_v34 = vadd.f32 %v2859_v46, %v2858_v5 }
 0x2c0   : > { %v2029_v24 = vadd.f32 %v2860_v34, %v1868_v43  ;;  %v2187_v44 = vadd.f32 %v4108_v27, %v2026_v6 }
 0x2c1   : > { %v2997_v9 = vpop.f32.mrb[128].mxu0 }
 0x2c2   : > { %v2271_v45 = vmax.f32 %v2187_v44, 0.0  ;;  %v2190_v7 = vadd.f32 %v4114_v54, %v2029_v24  ;;  %v2861_v11 = vpop.f32.mrb[112].mxu1  ;;  %v2998_v26 = vpop.f32.mrb[129].mxu0  ;;  %v1876_v54 = vadd.f32 %v4019_v30, %v4064_v22  ;;  %v1881_v30 = vadd.f32 %v4021_v35, %v4064_v22 }
 0x2c3   : > { %v2862_v59 = vpop.f32.mrb[113].mxu1  ;;  %v4178_v2 = vadd.f32 %v2998_v26, %v2997_v9  ;;  %v3000_v32 = vpop.f32.mrb[130].mxu0 }
 0x2c4   : > { %2303 = vst.msk [vmem:[%s4078_s18 + $0x70] sm:$0xff] %vm309_vm0, %v2271_v45  ;;  %v2272_v36 = vmax.f32 %v2190_v7, 0.0  ;;  %v2863_v8 = vadd.f32 %v2862_v59, %v2861_v11  ;;  %v2864_v16 = vpop.f32.mrb[114].mxu1  ;;  %v3001_v27 = vpop.f32.mrb[131].mxu0 }
 0x2c5   : > { %v2865_v12 = vpop.f32.mrb[115].mxu1  ;;  %v4184_v19 = vadd.f32 %v3001_v27, %v3000_v32 }
 0x2c6   : > { %2304 = vst.msk [vmem:[%s4078_s18 + $0x78] sm:$0xff] %vm309_vm0, %v2272_v36  ;;  %v2034_v62 = vadd.f32 %v2863_v8, %v1873_v17  ;;  %v2866_v13 = vadd.f32 %v2865_v12, %v2864_v16 }
 0x2c8   : > { %v2037_v52 = vadd.f32 %v2866_v13, %v1876_v54  ;;  %v2195_v25 = vadd.f32 %v4122_v18, %v2034_v62 }
 0x2c9   : > { %v3003_v3 = vpop.f32.mrb[132].mxu0 }
 0x2ca   : > { %v2273_v33 = vmax.f32 %v2195_v25, 0.0  ;;  %v2198_v28 = vadd.f32 %v4128_v60, %v2037_v52  ;;  %v2867_v39 = vpop.f32.mrb[116].mxu1  ;;  %v3004_v42 = vpop.f32.mrb[133].mxu0  ;;  %v1884_v60 = vadd.f32 %v4023_v40, %v4064_v22  ;;  %v1889_v40 = vadd.f32 %v4025_v47, %v4064_v22 }
 0x2cb   : > { %v2868_v31 = vpop.f32.mrb[117].mxu1  ;;  %v4192_v49 = vadd.f32 %v3004_v42, %v3003_v3  ;;  %v3006_v21 = vpop.f32.mrb[134].mxu0 }
 0x2cc   : > { %2305 = vst.msk [vmem:[%s4078_s18 + $0x80] sm:$0xff] %vm309_vm0, %v2273_v33  ;;  %v2274_v61 = vmax.f32 %v2198_v28, 0.0  ;;  %v2869_v58 = vadd.f32 %v2868_v31, %v2867_v39  ;;  %v2870_v55 = vpop.f32.mrb[118].mxu1  ;;  %v3007_v18 = vpop.f32.mrb[135].mxu0 }
 0x2cd   : > { %v2871_v41 = vpop.f32.mrb[119].mxu1  ;;  %v4198_v5 = vadd.f32 %v3007_v18, %v3006_v21 }
 0x2ce   : > { %2306 = vst.msk [vmem:[%s4078_s18 + $0x88] sm:$0xff] %vm309_vm0, %v2274_v61  ;;  %v2042_v48 = vadd.f32 %v2869_v58, %v1881_v30  ;;  %v2872_v46 = vadd.f32 %v2871_v41, %v2870_v55 }
 0x2d0   : > { %v2045_v43 = vadd.f32 %v2872_v46, %v1884_v60  ;;  %v2203_v35 = vadd.f32 %v4136_v50, %v2042_v48  ;;  %v1905_v48 = vadd.f32 %v4033_v10, %v4064_v22 }
 0x2d1   : > { %v3009_v6 = vpop.f32.mrb[136].mxu0 }
 0x2d2   : > { %v2275_v34 = vmax.f32 %v2203_v35, 0.0  ;;  %v2206_v24 = vadd.f32 %v4142_v63, %v2045_v43  ;;  %v2873_v44 = vpop.f32.mrb[120].mxu1  ;;  %v3010_v9 = vpop.f32.mrb[137].mxu0  ;;  %v1892_v63 = vadd.f32 %v4027_v53, %v4064_v22  ;;  %v1897_v53 = vadd.f32 %v4029_v57, %v4064_v22 }
 0x2d3   : > { %v2874_v45 = vpop.f32.mrb[121].mxu1  ;;  %v4206_v7 = vadd.f32 %v3010_v9, %v3009_v6  ;;  %v3012_v11 = vpop.f32.mrb[138].mxu0  ;;  %v1908_v6 = vadd.f32 %v4035_v20, %v4064_v22 }
 0x2d4   : > { %2307 = vst.msk [vmem:[%s4078_s18 + $0x90] sm:$0xff] %vm309_vm0, %v2275_v34  ;;  %v2276_v26 = vmax.f32 %v2206_v24, 0.0  ;;  %v2875_v59 = vadd.f32 %v2874_v45, %v2873_v44  ;;  %v2876_v32 = vpop.f32.mrb[122].mxu1  ;;  %v3013_v50 = vpop.f32.mrb[139].mxu0 }
 0x2d5   : > { %v2877_v17 = vpop.f32.mrb[123].mxu1  ;;  %v4212_v36 = vadd.f32 %v3013_v50, %v3012_v11  ;;  %v1913_v11 = vadd.f32 %v4039_v38, %v4064_v22 }
 0x2d6   : > { %2308 = vst.msk [vmem:[%s4078_s18 + $0x98] sm:$0xff] %vm309_vm0, %v2276_v26  ;;  %v2050_v8 = vadd.f32 %v2875_v59, %v1889_v40  ;;  %v2878_v16 = vadd.f32 %v2877_v17, %v2876_v32  ;;  %v1916_v32 = vadd.f32 %v4043_v15, %v4064_v22 }
 0x2d8   : > { %v2053_v27 = vadd.f32 %v2878_v16, %v1892_v63  ;;  %v2211_v47 = vadd.f32 %v4150_v29, %v2050_v8 }
 0x2d9   : > { %v3015_v12 = vpop.f32.mrb[140].mxu0 }
 0x2da   : > { %v2277_v54 = vmax.f32 %v2211_v47, 0.0  ;;  %v2214_v62 = vadd.f32 %v4156_v23, %v2053_v27  ;;  %v2879_v13 = vpop.f32.mrb[124].mxu1  ;;  %v3016_v52 = vpop.f32.mrb[141].mxu0  ;;  %v1900_v23 = vadd.f32 %v4031_v1, %v4064_v22  ;;  %v1921_v27 = vadd.f32 %v4047_v37, %v4064_v22 }
 0x2db   : > { %v2880_v25 = vpop.f32.mrb[125].mxu1  ;;  %v4220_v3 = vadd.f32 %v3016_v52, %v3015_v12  ;;  %v3018_v33 = vpop.f32.mrb[142].mxu0 }
 0x2dc   : > { %2309 = vst.msk [vmem:[%s4078_s18 + $0xa0] sm:$0xff] %vm309_vm0, %v2277_v54  ;;  %v2278_v28 = vmax.f32 %v2214_v62, 0.0  ;;  %v2881_v39 = vadd.f32 %v2880_v25, %v2879_v13  ;;  %v2882_v29 = vpop.f32.mrb[126].mxu1  ;;  %v3019_v42 = vpop.f32.mrb[143].mxu0  ;;  %v1924_v62 = vadd.f32 %v4051_v51, %v4064_v22 }
 0x2dd   : > { %v2883_v31 = vpop.f32.mrb[127].mxu1  ;;  %v4226_v21 = vadd.f32 %v3019_v42, %v3018_v33 }
 0x2de   : > { %2310 = vst.msk [vmem:[%s4078_s18 + $0xa8] sm:$0xff] %vm309_vm0, %v2278_v28  ;;  %v2058_v30 = vadd.f32 %v2881_v39, %v1897_v53  ;;  %v2884_v61 = vadd.f32 %v2883_v31, %v2882_v29  ;;  %v1929_v28 = vadd.f32 %v4055_v0, %v4064_v22  ;;  %v1932_v31 = vadd.f32 %v4059_v14, %v4064_v22 }
 0x2e0   : > { %v2061_v58 = vadd.f32 %v2884_v61, %v1900_v23  ;;  %v2219_v57 = vadd.f32 %v4164_v56, %v2058_v30 }
 0x2e2   : > { %v2279_v55 = vmax.f32 %v2219_v57, 0.0  ;;  %v2222_v18 = vadd.f32 %v4170_v4, %v2061_v58  ;;  %v2885_v41 = vpop.f32.mrb[128].mxu1 }
 0x2e3   : > { %v2886_v60 = vpop.f32.mrb[129].mxu1 }
 0x2e4   : > { %2311 = vst.msk [vmem:[%s4078_s18 + $0xb0] sm:$0xff] %vm309_vm0, %v2279_v55  ;;  %v2280_v1 = vmax.f32 %v2222_v18, 0.0  ;;  %v2887_v46 = vadd.f32 %v2886_v60, %v2885_v41  ;;  %v2888_v43 = vpop.f32.mrb[130].mxu1 }
 0x2e5   : > { %v2889_v35 = vpop.f32.mrb[131].mxu1 }
 0x2e6   : > { %2312 = vst.msk [vmem:[%s4078_s18 + $0xb8] sm:$0xff] %vm309_vm0, %v2280_v1  ;;  %v2066_v56 = vadd.f32 %v2887_v46, %v1905_v48  ;;  %v2890_v4 = vadd.f32 %v2889_v35, %v2888_v43 }
 0x2e8   : > { %v2069_v34 = vadd.f32 %v2890_v4, %v1908_v6  ;;  %v2227_v24 = vadd.f32 %v4178_v2, %v2066_v56 }
 0x2ea   : > { %v2281_v44 = vmax.f32 %v2227_v24, 0.0  ;;  %v2230_v10 = vadd.f32 %v4184_v19, %v2069_v34  ;;  %v2891_v9 = vpop.f32.mrb[132].mxu1 }
 0x2eb   : > { %v2892_v45 = vpop.f32.mrb[133].mxu1 }
 0x2ec   : > { %2313 = vst.msk [vmem:[%s4078_s18 + $0xc0] sm:$0xff] %vm309_vm0, %v2281_v44  ;;  %v2282_v20 = vmax.f32 %v2230_v10, 0.0  ;;  %v2893_v40 = vadd.f32 %v2892_v45, %v2891_v9  ;;  %v2894_v26 = vpop.f32.mrb[134].mxu1 }
 0x2ed   : > { %v2895_v59 = vpop.f32.mrb[135].mxu1 }
 0x2ee   : > { %2314 = vst.msk [vmem:[%s4078_s18 + $0xc8] sm:$0xff] %vm309_vm0, %v2282_v20  ;;  %v2074_v2 = vadd.f32 %v2893_v40, %v1913_v11  ;;  %v2896_v19 = vadd.f32 %v2895_v59, %v2894_v26 }
 0x2f0   : > { %v2077_v50 = vadd.f32 %v2896_v19, %v1916_v32  ;;  %v2235_v17 = vadd.f32 %v4192_v49, %v2074_v2 }
 0x2f2   : > { %v2283_v63 = vmax.f32 %v2235_v17, 0.0  ;;  %v2238_v38 = vadd.f32 %v4198_v5, %v2077_v50  ;;  %v2897_v8 = vpop.f32.mrb[136].mxu1 }
 0x2f3   : > { %v2898_v16 = vpop.f32.mrb[137].mxu1 }
 0x2f4   : > { %2315 = vst.msk [vmem:[%s4078_s18 + $0xd0] sm:$0xff] %vm309_vm0, %v2283_v63  ;;  %v2284_v15 = vmax.f32 %v2238_v38, 0.0  ;;  %v2899_v47 = vadd.f32 %v2898_v16, %v2897_v8  ;;  %v2900_v12 = vpop.f32.mrb[138].mxu1 }
 0x2f5   : > { %v2901_v54 = vpop.f32.mrb[139].mxu1 }
 0x2f6   : > { %2316 = vst.msk [vmem:[%s4078_s18 + $0xd8] sm:$0xff] %vm309_vm0, %v2284_v15  ;;  %v2082_v49 = vadd.f32 %v2899_v47, %v1921_v27  ;;  %v2902_v5 = vadd.f32 %v2901_v54, %v2900_v12 }
 0x2f8   : > { %v2085_v13 = vadd.f32 %v2902_v5, %v1924_v62  ;;  %v2243_v52 = vadd.f32 %v4206_v7, %v2082_v49 }
 0x2fa   : > { %v2285_v25 = vmax.f32 %v2243_v52, 0.0  ;;  %v2246_v37 = vadd.f32 %v4212_v36, %v2085_v13  ;;  %v2903_v33 = vpop.f32.mrb[140].mxu1 }
 0x2fb   : > { %v2904_v53 = vpop.f32.mrb[141].mxu1 }
 0x2fc   : > { %2317 = vst.msk [vmem:[%s4078_s18 + $0xe0] sm:$0xff] %vm309_vm0, %v2285_v25  ;;  %v2286_v51 = vmax.f32 %v2246_v37, 0.0  ;;  %v2905_v39 = vadd.f32 %v2904_v53, %v2903_v33  ;;  %v2906_v29 = vpop.f32.mrb[142].mxu1 }
 0x2fd   : > { %v2907_v42 = vpop.f32.mrb[143].mxu1 }
 0x2fe   : > { %2318 = vst.msk [vmem:[%s4078_s18 + $0xe8] sm:$0xff] %vm309_vm0, %v2286_v51  ;;  %v2090_v7 = vadd.f32 %v2905_v39, %v1929_v28  ;;  %v2908_v36 = vadd.f32 %v2907_v42, %v2906_v29 }
 0x300   : > { %v2093_v23 = vadd.f32 %v2908_v36, %v1932_v31  ;;  %v2251_v30 = vadd.f32 %v4220_v3, %v2090_v7 }
 0x302   : > { %v2287_v61 = vmax.f32 %v2251_v30, 0.0  ;;  %v2254_v0 = vadd.f32 %v4226_v21, %v2093_v23 }
 0x304   : > { %2319 = vst.msk [vmem:[%s4078_s18 + $0xf0] sm:$0xff] %vm309_vm0, %v2287_v61  ;;  %v2288_v58 = vmax.f32 %v2254_v0, 0.0 }
 0x306   : > { %2320 = vst.msk [vmem:[%s4078_s18 + $0xf8] sm:$0xff] %vm309_vm0, %v2288_v58 }
 0x307 PF: > { %s14_s15 = sadd.s32 1, %s3364_s15  }
 0x308   : > { %p11_p4 = scmp.ge.s32.totalorder %s14_s15, 5  }
 0x30a   :  { %13 = sbr.rel (!%p11_p4) target bundleno = 1 (0x1), region = 66 }

</bundles_post_ra>
